<compile_context>
chip_gen: v6e
topology: v6e:2x2x1
jax: 0.10.0
libtpu: 0.0.40
codegen_flags: <defaults>
</compile_context>

<pallas_src>
import jax
import jax.numpy as jnp
from jax import lax
from jax.experimental import pallas as pl
from jax.experimental.pallas import tpu as pltpu

NEG_SLOPE = 0.01                  # F.leaky_relu default negative slope
COMPUTE_DTYPE = jnp.bfloat16      # MXU-native operand dtype (accumulation stays f32)


def _leaky(a):
    return jnp.where(a >= 0, a, NEG_SLOPE * a)


def _round_up(v, m):
    return ((v + m - 1) // m) * m


def _pick_chunk(s, target=16):
    """Largest divisor of s that is <= target (timesteps streamed per grid step)."""
    best = 1
    for t in range(1, min(s, target) + 1):
        if s % t == 0:
            best = t
    return best


def _vmem_limit_bytes():
    """~75% of detected per-core VMEM, capped at 100 MiB (48 MiB safe fallback)."""
    cap = 64 * 1024 * 1024
    try:
        cap = int(getattr(pltpu.get_tpu_info(), "vmem_capacity_bytes", cap))
    except Exception:
        pass
    return min(cap * 3 // 4, 100 * 1024 * 1024)


# --------------------------------- kernel ----------------------------------

def ffn_recurrence_kernel(x_ref, wih_ref, whh_ref, bgi_ref, bhn_ref, wl_ref,
                          yp_ref, gi_sc, a_sc, h_sc):
    # x_ref   : (TS, B, Dp)   bf16  input chunk (same chunk read by both directions)
    # wih_ref : (Dp, 3H)      bf16  per-direction input->gates weight (r|z|n)
    # whh_ref : (H, 3H)       bf16  per-direction hidden->gates weight
    # bgi_ref : (1, 3H)       f32   b_ih + [b_hh_r, b_hh_z, 0]   (hoisted)
    # bhn_ref : (1, H)        f32   b_hh_n (must stay inside r * (...))
    # wl_ref  : (H, Dp)       bf16  per-direction half of the Linear weight
    # yp_ref  : (TS, B, Dp)   f32   per-direction partial Linear output
    # gi_sc   : (TS, B, 3H)   bf16  chunk input-gate pre-activations
    # a_sc    : (TS, B, H)    bf16  chunk leaky_relu(hidden)
    # h_sc    : (2, B, H)     f32   per-direction recurrent carry (persists on grid)
    TS, B, Dp = x_ref.shape
    H = whh_ref.shape[0]
    d = pl.program_id(0)      # 0 = forward scan, 1 = backward scan
    c = pl.program_id(1)      # sequential chunk index for this direction

    @pl.when(c == 0)
    def _():                  # each direction starts from h = 0
        h_sc[d] = jnp.zeros(h_sc.shape[1:], h_sc.dtype)

    # Fused input projection for the whole chunk: (TS*B, Dp) @ (Dp, 3H), f32 accum,
    # r/z hidden biases already folded into bgi.
    x2d = x_ref[...].reshape(TS * B, Dp)
    gi = jnp.dot(x2d, wih_ref[...], preferred_element_type=jnp.float32) + bgi_ref[...]
    gi_sc[...] = gi.reshape(TS, B, 3 * H).astype(gi_sc.dtype)

    is_fwd = d == 0
    whh = whh_ref[...]
    bhn = bhn_ref[...]        # hoisted out of the unrolled loop

    def step(j, h):
        # forward walks local times 0..TS-1; backward walks TS-1..0
        t = jnp.where(is_fwd, j, TS - 1 - j)
        gi_t = gi_sc[t].astype(jnp.float32)                       # (B, 3H)
        gh = jnp.dot(h.astype(whh.dtype), whh,
                     preferred_element_type=jnp.float32)          # (B, 3H)
        # PyTorch GRU, gate order (r, z, n); H is a multiple of 128 -> lane-aligned.
        r = jax.nn.sigmoid(gi_t[:, :H] + gh[:, :H])
        z = jax.nn.sigmoid(gi_t[:, H:2 * H] + gh[:, H:2 * H])
        n = jnp.tanh(gi_t[:, 2 * H:] + r * (gh[:, 2 * H:] + bhn))
        h_new = (1.0 - z) * n + z * h
        # Dropout(p=0) is the identity; leaky_relu applied here, Linear after loop.
        a_sc[t] = _leaky(h_new).astype(a_sc.dtype)
        return h_new

    # Latency-bound scan -> fully unrolled so the LLO scheduler can overlap MXU
    # push / EUP sigmoid+tanh / VPU blend of neighbouring steps.
    h_sc[d] = lax.fori_loop(0, TS, step, h_sc[d], unroll=True)

    # Per-direction partial of the output Linear for this chunk (lane-dense store);
    # the two partials are summed (plus bias) by a cheap XLA add in the wrapper.
    a2d = a_sc[...].reshape(TS * B, H)
    yp_ref[...] = jnp.dot(a2d, wl_ref[...],
                          preferred_element_type=jnp.float32
                          ).reshape(TS, B, Dp).astype(yp_ref.dtype)


# ----------------------------- parameter setup -----------------------------

def init_ffn_params(key, d_model):
    """Deterministic synthetic params, PyTorch layout (gate order r, z, n)."""
    H = 2 * d_model
    ks = jax.random.split(key, 10)
    gru_bound = 1.0 / float(H) ** 0.5
    lin_bound = 1.0 / float(2 * H) ** 0.5

    def u(k, shape, bound):
        return jax.random.uniform(k, shape, jnp.float32, -bound, bound)

    return dict(
        w_ih_f=u(ks[0], (3 * H, d_model), gru_bound),
        w_hh_f=u(ks[1], (3 * H, H), gru_bound),
        b_ih_f=u(ks[2], (3 * H,), gru_bound),
        b_hh_f=u(ks[3], (3 * H,), gru_bound),
        w_ih_b=u(ks[4], (3 * H, d_model), gru_bound),
        w_hh_b=u(ks[5], (3 * H, H), gru_bound),
        b_ih_b=u(ks[6], (3 * H,), gru_bound),
        b_hh_b=u(ks[7], (3 * H,), gru_bound),
        w_lin=u(ks[8], (d_model, 2 * H), lin_bound),
        b_lin=u(ks[9], (d_model,), lin_bound),
    )


def _pack_direction(w_ih, w_hh, b_ih, b_hh, w_lin_half, D, Dp):
    """PyTorch-layout GRU direction params -> padded, gate-aligned, right-matmul
    operands.  H (=2*D) is padded to Hp (=2*Dp, multiple of 128) so each gate's
    column range [g*Hp, g*Hp+H) is lane-aligned; padded hidden units see zero
    weights/bias and stay at 0 through the recurrence."""
    H, Hp = 2 * D, 2 * Dp
    wih = jnp.zeros((Dp, 3 * Hp), COMPUTE_DTYPE)
    whh = jnp.zeros((Hp, 3 * Hp), COMPUTE_DTYPE)
    bgi = jnp.zeros((1, 3 * Hp), jnp.float32)
    wih_t = w_ih.T.astype(COMPUTE_DTYPE)          # (D, 3H), gate order r|z|n
    whh_t = w_hh.T.astype(COMPUTE_DTYPE)          # (H, 3H)
    # b_hh for r and z is hoisted into the input-projection bias; b_hh_n cannot be
    # (it is multiplied by r inside the step).
    b_gate = (b_ih + jnp.concatenate(
        [b_hh[:H], b_hh[H:2 * H], jnp.zeros((H,), b_hh.dtype)])).astype(jnp.float32)
    for g in range(3):
        wih = wih.at[:D, g * Hp:g * Hp + H].set(wih_t[:, g * H:(g + 1) * H])
        whh = whh.at[:H, g * Hp:g * Hp + H].set(whh_t[:, g * H:(g + 1) * H])
        bgi = bgi.at[0, g * Hp:g * Hp + H].set(b_gate[g * H:(g + 1) * H])
    bhn = jnp.zeros((1, Hp), jnp.float32).at[0, :H].set(b_hh[2 * H:].astype(jnp.float32))
    wl = jnp.zeros((Hp, Dp), COMPUTE_DTYPE).at[:H, :D].set(
        w_lin_half.T.astype(COMPUTE_DTYPE))
    return wih, whh, bgi, bhn, wl


@jax.jit
def ffn_forward(x, params):
    S, B, D = x.shape
    H = 2 * D
    Dp = _round_up(max(D, 128), 128)   # lane-dense x / y blocks; H multiple of 128
    Hp = 2 * Dp
    Bp = _round_up(B, 8)               # sublane-aligned batch (pad rows discarded)
    TS = _pick_chunk(S, target=16)     # timesteps streamed per grid step
    nc = S // TS

    # padded, bf16, gate-aligned operands (stacked over the two directions)
    fwd = _pack_direction(params["w_ih_f"], params["w_hh_f"], params["b_ih_f"],
                          params["b_hh_f"], params["w_lin"][:, :H], D, Dp)
    bwd = _pack_direction(params["w_ih_b"], params["w_hh_b"], params["b_ih_b"],
                          params["b_hh_b"], params["w_lin"][:, H:], D, Dp)
    wih, whh, bgi, bhn, wl = [jnp.stack([f, b]) for f, b in zip(fwd, bwd)]

    x_p = jnp.zeros((S, Bp, Dp), COMPUTE_DTYPE).at[:, :B, :D].set(
        x.astype(COMPUTE_DTYPE))

    # backward direction walks the chunks in reverse via the index maps only
    def chunk_idx(d, c):
        return (1 - d) * c + d * (nc - 1 - c)

    in_specs = [
        pl.BlockSpec((TS, Bp, Dp), lambda d, c: (chunk_idx(d, c), 0, 0)),
        pl.BlockSpec((None, Dp, 3 * Hp), lambda d, c: (d, 0, 0)),
        pl.BlockSpec((None, Hp, 3 * Hp), lambda d, c: (d, 0, 0)),
        pl.BlockSpec((None, 1, 3 * Hp), lambda d, c: (d, 0, 0)),
        pl.BlockSpec((None, 1, Hp), lambda d, c: (d, 0, 0)),
        pl.BlockSpec((None, Hp, Dp), lambda d, c: (d, 0, 0)),
    ]
    out_specs = pl.BlockSpec((None, TS, Bp, Dp),
                             lambda d, c: (d, chunk_idx(d, c), 0, 0))

    y_partial = pl.pallas_call(
        ffn_recurrence_kernel,
        out_shape=jax.ShapeDtypeStruct((2, S, Bp, Dp), jnp.float32),
        grid_spec=pltpu.PrefetchScalarGridSpec(
            num_scalar_prefetch=0,
            grid=(2, nc),
            in_specs=in_specs,
            out_specs=out_specs,
            scratch_shapes=[
                pltpu.VMEM((TS, Bp, 3 * Hp), COMPUTE_DTYPE),   # chunk gate pre-acts
                pltpu.VMEM((TS, Bp, Hp), COMPUTE_DTYPE),       # chunk leaky(hidden)
                pltpu.VMEM((2, Bp, Hp), jnp.float32),          # per-direction carry
            ],
        ),
        compiler_params=pltpu.CompilerParams(
            dimension_semantics=("parallel", "arbitrary"),
            vmem_limit_bytes=_vmem_limit_bytes(),
        ),
    )(x_p, wih, whh, bgi, bhn, wl)

    # Cheap epilogue in XLA: sum direction partials, add bias, drop padding.
    y = (y_partial[0, :, :B, :D] + y_partial[1, :, :B, :D]
         + params["b_lin"].astype(jnp.float32))
    return y


# ----------------------------- pure-JAX reference -----------------------------

def ffn_reference(x, p):
    def gru_dir(x_seq, w_ih, w_hh, b_ih, b_hh):
        H = w_hh.shape[1]

        def cell(h, x_t):
            gi = x_t @ w_ih.T + b_ih
            gh = h @ w_hh.T + b_hh
            r = jax.nn.sigmoid(gi[:, :H] + gh[:, :H])
            z = jax.nn.sigmoid(gi[:, H:2 * H] + gh[:, H:2 * H])
            n = jnp.tanh(gi[:, 2 * H:] + r * gh[:, 2 * H:])
            h_new = (1.0 - z) * n + z * h
            return h_new, h_new

        h0 = jnp.zeros((x_seq.shape[1], H), jnp.float32)
        _, hs = lax.scan(cell, h0, x_seq)
        return hs

    hf = gru_dir(x, p["w_ih_f"], p["w_hh_f"], p["b_ih_f"], p["b_hh_f"])
    hb = gru_dir(x[::-1], p["w_ih_b"], p["w_hh_b"], p["b_ih_b"], p["b_hh_b"])[::-1]
    h = jnp.concatenate([hf, hb], axis=-1)
    a = jnp.where(h >= 0, h, NEG_SLOPE * h)
    return a @ p["w_lin"].T + p["b_lin"]


if __name__ == "__main__":
    d_model, seq_len, batch = 16, 8, 2
    key = jax.random.PRNGKey(0)
    k_params, k_x = jax.random.split(key)

    params = init_ffn_params(k_params, d_model)
    x = jax.random.normal(k_x, (seq_len, batch, d_model), jnp.float32)

    out = jax.block_until_ready(ffn_forward(x, params))
    ref = jax.block_until_ready(ffn_reference(x, params))

    assert out.shape == (seq_len, batch, d_model)
    # bf16 operands with f32 accumulation / carry -> loosened tolerance vs f32 ref.
    assert jnp.allclose(out, ref, rtol=5e-2, atol=5e-2), "mismatch vs reference"

    print("KERNEL_OK")
</pallas_src>

<mosaic_0001>
module attributes {stable_mosaic.version = 11 : i64} {
  func.func @ffn_recurrence_kernel(%arg0: i32, %arg1: i32, %arg2: memref<8x8x128xbf16, #tpu.memory_space<vmem>>, %arg3: memref<1x128x768xbf16, #tpu.memory_space<vmem>>, %arg4: memref<1x256x768xbf16, #tpu.memory_space<vmem>>, %arg5: memref<1x1x768xf32, #tpu.memory_space<vmem>>, %arg6: memref<1x1x256xf32, #tpu.memory_space<vmem>>, %arg7: memref<1x256x128xbf16, #tpu.memory_space<vmem>>, %arg8: memref<1x8x8x128xf32, #tpu.memory_space<vmem>>, %arg9: memref<8x8x768xbf16, #tpu.memory_space<vmem>>, %arg10: memref<8x8x256xbf16, #tpu.memory_space<vmem>>, %arg11: memref<2x8x256xf32, #tpu.memory_space<vmem>>) attributes {dimension_semantics = [#tpu.dimension_semantics<parallel>, #tpu.dimension_semantics<arbitrary>], iteration_bounds = array<i64: 2, 1>, scalar_prefetch = 0 : i64, scratch_operands = 3 : i64, tpu.core_type = #tpu.core_type<tc>, window_params = [{transform_indices = @transform_0, window_bounds = array<i64: 8, 8, 128>}, {transform_indices = @transform_1, window_bounds = array<i64: 1, 128, 768>}, {transform_indices = @transform_2, window_bounds = array<i64: 1, 256, 768>}, {transform_indices = @transform_3, window_bounds = array<i64: 1, 1, 768>}, {transform_indices = @transform_4, window_bounds = array<i64: 1, 1, 256>}, {transform_indices = @transform_5, window_bounds = array<i64: 1, 256, 128>}, {transform_indices = @transform_6, window_bounds = array<i64: 1, 8, 8, 128>}]} {
    %c0_i32 = arith.constant 0 : i32
    %0 = arith.cmpi eq, %arg1, %c0_i32 : i32
    %1 = arith.extui %0 : i1 to i32
    %c0_i32_0 = arith.constant 0 : i32
    %2 = arith.cmpi ne, %1, %c0_i32_0 : i32
    scf.if %2 {
      %cst_123 = arith.constant 0.000000e+00 : f32
      %404 = vector.broadcast %cst_123 : f32 to vector<8x256xf32>
      %405 = arith.index_cast %arg0 : i32 to index
      %c0_124 = arith.constant 0 : index
      %c0_125 = arith.constant 0 : index
      %406 = vector.load %arg11[%405, %c0_124, %c0_125] : memref<2x8x256xf32, #tpu.memory_space<vmem>>, vector<1x8x256xf32>
      %407 = vector.shape_cast %406 : vector<1x8x256xf32> to vector<8x256xf32>
      %408 = vector.shape_cast %404 : vector<8x256xf32> to vector<1x8x256xf32>
      tpu.vector_store %arg11[%405, %c0_124, %c0_125], %408 {strides = array<i32>} : memref<2x8x256xf32, #tpu.memory_space<vmem>>, vector<1x8x256xf32>,
    } else {
    }
    %c0 = arith.constant 0 : index
    %c0_1 = arith.constant 0 : index
    %c0_2 = arith.constant 0 : index
    %3 = vector.load %arg2[%c0, %c0_1, %c0_2] : memref<8x8x128xbf16, #tpu.memory_space<vmem>>, vector<8x8x128xbf16>
    %4 = vector.shape_cast %3 : vector<8x8x128xbf16> to vector<64x128xbf16>
    %c0_3 = arith.constant 0 : index
    %c0_4 = arith.constant 0 : index
    %c0_5 = arith.constant 0 : index
    %5 = vector.load %arg3[%c0_3, %c0_4, %c0_5] : memref<1x128x768xbf16, #tpu.memory_space<vmem>>, vector<1x128x768xbf16>
    %6 = vector.shape_cast %5 : vector<1x128x768xbf16> to vector<128x768xbf16>
    %cst = arith.constant dense<0.000000e+00> : vector<64x768xf32>
    %7 = tpu.matmul %4, %6, %cst {dimension_numbers = #tpu.dot_dimension_numbers<[1], [0], [0], [1], [0, 0, 1, 1], [], []>} : vector<64x128xbf16>, vector<128x768xbf16>, vector<64x768xf32> -> vector<64x768xf32>
    %c0_6 = arith.constant 0 : index
    %c0_7 = arith.constant 0 : index
    %c0_8 = arith.constant 0 : index
    %8 = vector.load %arg5[%c0_6, %c0_7, %c0_8] : memref<1x1x768xf32, #tpu.memory_space<vmem>>, vector<1x1x768xf32>
    %9 = vector.shape_cast %8 : vector<1x1x768xf32> to vector<1x768xf32>
    %10 = vector.broadcast %9 : vector<1x768xf32> to vector<64x768xf32>
    %11 = arith.addf %7, %10 : vector<64x768xf32>
    %12 = vector.shape_cast %11 : vector<64x768xf32> to vector<8x8x768xf32>
    %13 = arith.truncf %12 : vector<8x8x768xf32> to vector<8x8x768xbf16>
    %c0_9 = arith.constant 0 : index
    %c0_10 = arith.constant 0 : index
    %c0_11 = arith.constant 0 : index
    %14 = vector.load %arg9[%c0_9, %c0_10, %c0_11] : memref<8x8x768xbf16, #tpu.memory_space<vmem>>, vector<8x8x768xbf16>
    tpu.vector_store %arg9[%c0_9, %c0_10, %c0_11], %13 {strides = array<i32>} : memref<8x8x768xbf16, #tpu.memory_space<vmem>>, vector<8x8x768xbf16>,
    %c0_i32_12 = arith.constant 0 : i32
    %15 = arith.cmpi eq, %arg0, %c0_i32_12 : i32
    %c0_13 = arith.constant 0 : index
    %c0_14 = arith.constant 0 : index
    %c0_15 = arith.constant 0 : index
    %16 = vector.load %arg4[%c0_13, %c0_14, %c0_15] : memref<1x256x768xbf16, #tpu.memory_space<vmem>>, vector<1x256x768xbf16>
    %17 = vector.shape_cast %16 : vector<1x256x768xbf16> to vector<256x768xbf16>
    %c0_16 = arith.constant 0 : index
    %c0_17 = arith.constant 0 : index
    %c0_18 = arith.constant 0 : index
    %18 = vector.load %arg6[%c0_16, %c0_17, %c0_18] : memref<1x1x256xf32, #tpu.memory_space<vmem>>, vector<1x1x256xf32>
    %19 = vector.shape_cast %18 : vector<1x1x256xf32> to vector<1x256xf32>
    %20 = arith.index_cast %arg0 : i32 to index
    %c0_19 = arith.constant 0 : index
    %c0_20 = arith.constant 0 : index
    %21 = vector.load %arg11[%20, %c0_19, %c0_20] : memref<2x8x256xf32, #tpu.memory_space<vmem>>, vector<1x8x256xf32>
    %22 = vector.shape_cast %21 : vector<1x8x256xf32> to vector<8x256xf32>
    %c0_i32_21 = arith.constant 0 : i32
    %c7_i32 = arith.constant 7 : i32
    %23 = arith.subi %c7_i32, %c0_i32_21 : i32
    %24 = arith.select %15, %c0_i32_21, %23 : i32
    %25 = arith.index_cast %24 : i32 to index
    %c0_22 = arith.constant 0 : index
    %c0_23 = arith.constant 0 : index
    %26 = vector.load %arg9[%25, %c0_22, %c0_23] : memref<8x8x768xbf16, #tpu.memory_space<vmem>>, vector<1x8x768xbf16>
    %27 = vector.shape_cast %26 : vector<1x8x768xbf16> to vector<8x768xbf16>
    %28 = arith.extf %27 : vector<8x768xbf16> to vector<8x768xf32>
    %29 = arith.truncf %22 : vector<8x256xf32> to vector<8x256xbf16>
    %cst_24 = arith.constant dense<0.000000e+00> : vector<8x768xf32>
    %30 = tpu.matmul %29, %17, %cst_24 {dimension_numbers = #tpu.dot_dimension_numbers<[1], [0], [0], [1], [0, 0, 1, 1], [], []>} : vector<8x256xbf16>, vector<256x768xbf16>, vector<8x768xf32> -> vector<8x768xf32>
    %31 = vector.extract_strided_slice %28 {offsets = [0, 0], sizes = [8, 256], strides = [1, 1]} : vector<8x768xf32> to vector<8x256xf32>
    %32 = vector.extract_strided_slice %30 {offsets = [0, 0], sizes = [8, 256], strides = [1, 1]} : vector<8x768xf32> to vector<8x256xf32>
    %33 = arith.addf %31, %32 : vector<8x256xf32>
    %34 = arith.negf %33 : vector<8x256xf32>
    %35 = math.exp %34 : vector<8x256xf32>
    %cst_25 = arith.constant 1.000000e+00 : f32
    %36 = vector.broadcast %cst_25 : f32 to vector<8x256xf32>
    %37 = arith.addf %36, %35 : vector<8x256xf32>
    %38 = arith.divf %36, %37 : vector<8x256xf32>
    %39 = vector.extract_strided_slice %28 {offsets = [0, 256], sizes = [8, 256], strides = [1, 1]} : vector<8x768xf32> to vector<8x256xf32>
    %40 = vector.extract_strided_slice %30 {offsets = [0, 256], sizes = [8, 256], strides = [1, 1]} : vector<8x768xf32> to vector<8x256xf32>
    %41 = arith.addf %39, %40 : vector<8x256xf32>
    %42 = arith.negf %41 : vector<8x256xf32>
    %43 = math.exp %42 : vector<8x256xf32>
    %cst_26 = arith.constant 1.000000e+00 : f32
    %44 = vector.broadcast %cst_26 : f32 to vector<8x256xf32>
    %45 = arith.addf %44, %43 : vector<8x256xf32>
    %46 = arith.divf %44, %45 : vector<8x256xf32>
    %47 = vector.extract_strided_slice %28 {offsets = [0, 512], sizes = [8, 256], strides = [1, 1]} : vector<8x768xf32> to vector<8x256xf32>
    %48 = vector.extract_strided_slice %30 {offsets = [0, 512], sizes = [8, 256], strides = [1, 1]} : vector<8x768xf32> to vector<8x256xf32>
    %49 = vector.broadcast %19 : vector<1x256xf32> to vector<8x256xf32>
    %50 = arith.addf %48, %49 : vector<8x256xf32>
    %51 = arith.mulf %38, %50 : vector<8x256xf32>
    %52 = arith.addf %47, %51 : vector<8x256xf32>
    %53 = math.tanh %52 : vector<8x256xf32>
    %cst_27 = arith.constant 1.000000e+00 : f32
    %54 = vector.broadcast %cst_27 : f32 to vector<8x256xf32>
    %55 = arith.subf %54, %46 : vector<8x256xf32>
    %56 = arith.mulf %55, %53 : vector<8x256xf32>
    %57 = arith.mulf %46, %22 : vector<8x256xf32>
    %58 = arith.addf %56, %57 : vector<8x256xf32>
    %cst_28 = arith.constant 0.000000e+00 : f32
    %59 = vector.broadcast %cst_28 : f32 to vector<8x256xf32>
    %60 = arith.cmpf oge, %58, %59 : vector<8x256xf32>
    %cst_29 = arith.constant 0.00999999977 : f32
    %61 = vector.broadcast %cst_29 : f32 to vector<8x256xf32>
    %62 = arith.mulf %61, %58 : vector<8x256xf32>
    %63 = arith.select %60, %58, %62 : vector<8x256xi1>, vector<8x256xf32>
    %64 = arith.truncf %63 : vector<8x256xf32> to vector<8x256xbf16>
    %65 = arith.index_cast %24 : i32 to index
    %c0_30 = arith.constant 0 : index
    %c0_31 = arith.constant 0 : index
    %66 = vector.load %arg10[%65, %c0_30, %c0_31] : memref<8x8x256xbf16, #tpu.memory_space<vmem>>, vector<1x8x256xbf16>
    %67 = vector.shape_cast %66 : vector<1x8x256xbf16> to vector<8x256xbf16>
    %68 = vector.shape_cast %64 : vector<8x256xbf16> to vector<1x8x256xbf16>
    tpu.vector_store %arg10[%65, %c0_30, %c0_31], %68 {strides = array<i32>} : memref<8x8x256xbf16, #tpu.memory_space<vmem>>, vector<1x8x256xbf16>,
    %c1_i32 = arith.constant 1 : i32
    %c7_i32_32 = arith.constant 7 : i32
    %69 = arith.subi %c7_i32_32, %c1_i32 : i32
    %70 = arith.select %15, %c1_i32, %69 : i32
    %71 = arith.index_cast %70 : i32 to index
    %c0_33 = arith.constant 0 : index
    %c0_34 = arith.constant 0 : index
    %72 = vector.load %arg9[%71, %c0_33, %c0_34] : memref<8x8x768xbf16, #tpu.memory_space<vmem>>, vector<1x8x768xbf16>
    %73 = vector.shape_cast %72 : vector<1x8x768xbf16> to vector<8x768xbf16>
    %74 = arith.extf %73 : vector<8x768xbf16> to vector<8x768xf32>
    %75 = arith.truncf %58 : vector<8x256xf32> to vector<8x256xbf16>
    %cst_35 = arith.constant dense<0.000000e+00> : vector<8x768xf32>
    %76 = tpu.matmul %75, %17, %cst_35 {dimension_numbers = #tpu.dot_dimension_numbers<[1], [0], [0], [1], [0, 0, 1, 1], [], []>} : vector<8x256xbf16>, vector<256x768xbf16>, vector<8x768xf32> -> vector<8x768xf32>
    %77 = vector.extract_strided_slice %74 {offsets = [0, 0], sizes = [8, 256], strides = [1, 1]} : vector<8x768xf32> to vector<8x256xf32>
    %78 = vector.extract_strided_slice %76 {offsets = [0, 0], sizes = [8, 256], strides = [1, 1]} : vector<8x768xf32> to vector<8x256xf32>
    %79 = arith.addf %77, %78 : vector<8x256xf32>
    %80 = arith.negf %79 : vector<8x256xf32>
    %81 = math.exp %80 : vector<8x256xf32>
    %cst_36 = arith.constant 1.000000e+00 : f32
    %82 = vector.broadcast %cst_36 : f32 to vector<8x256xf32>
    %83 = arith.addf %82, %81 : vector<8x256xf32>
    %84 = arith.divf %82, %83 : vector<8x256xf32>
    %85 = vector.extract_strided_slice %74 {offsets = [0, 256], sizes = [8, 256], strides = [1, 1]} : vector<8x768xf32> to vector<8x256xf32>
    %86 = vector.extract_strided_slice %76 {offsets = [0, 256], sizes = [8, 256], strides = [1, 1]} : vector<8x768xf32> to vector<8x256xf32>
    %87 = arith.addf %85, %86 : vector<8x256xf32>
    %88 = arith.negf %87 : vector<8x256xf32>
    %89 = math.exp %88 : vector<8x256xf32>
    %cst_37 = arith.constant 1.000000e+00 : f32
    %90 = vector.broadcast %cst_37 : f32 to vector<8x256xf32>
    %91 = arith.addf %90, %89 : vector<8x256xf32>
    %92 = arith.divf %90, %91 : vector<8x256xf32>
    %93 = vector.extract_strided_slice %74 {offsets = [0, 512], sizes = [8, 256], strides = [1, 1]} : vector<8x768xf32> to vector<8x256xf32>
    %94 = vector.extract_strided_slice %76 {offsets = [0, 512], sizes = [8, 256], strides = [1, 1]} : vector<8x768xf32> to vector<8x256xf32>
    %95 = vector.broadcast %19 : vector<1x256xf32> to vector<8x256xf32>
    %96 = arith.addf %94, %95 : vector<8x256xf32>
    %97 = arith.mulf %84, %96 : vector<8x256xf32>
    %98 = arith.addf %93, %97 : vector<8x256xf32>
    %99 = math.tanh %98 : vector<8x256xf32>
    %cst_38 = arith.constant 1.000000e+00 : f32
    %100 = vector.broadcast %cst_38 : f32 to vector<8x256xf32>
    %101 = arith.subf %100, %92 : vector<8x256xf32>
    %102 = arith.mulf %101, %99 : vector<8x256xf32>
    %103 = arith.mulf %92, %58 : vector<8x256xf32>
    %104 = arith.addf %102, %103 : vector<8x256xf32>
    %cst_39 = arith.constant 0.000000e+00 : f32
    %105 = vector.broadcast %cst_39 : f32 to vector<8x256xf32>
    %106 = arith.cmpf oge, %104, %105 : vector<8x256xf32>
    %cst_40 = arith.constant 0.00999999977 : f32
    %107 = vector.broadcast %cst_40 : f32 to vector<8x256xf32>
    %108 = arith.mulf %107, %104 : vector<8x256xf32>
    %109 = arith.select %106, %104, %108 : vector<8x256xi1>, vector<8x256xf32>
    %110 = arith.truncf %109 : vector<8x256xf32> to vector<8x256xbf16>
    %111 = arith.index_cast %70 : i32 to index
    %c0_41 = arith.constant 0 : index
    %c0_42 = arith.constant 0 : index
    %112 = vector.load %arg10[%111, %c0_41, %c0_42] : memref<8x8x256xbf16, #tpu.memory_space<vmem>>, vector<1x8x256xbf16>
    %113 = vector.shape_cast %112 : vector<1x8x256xbf16> to vector<8x256xbf16>
    %114 = vector.shape_cast %110 : vector<8x256xbf16> to vector<1x8x256xbf16>
    tpu.vector_store %arg10[%111, %c0_41, %c0_42], %114 {strides = array<i32>} : memref<8x8x256xbf16, #tpu.memory_space<vmem>>, vector<1x8x256xbf16>,
    %c2_i32 = arith.constant 2 : i32
    %c7_i32_43 = arith.constant 7 : i32
    %115 = arith.subi %c7_i32_43, %c2_i32 : i32
    %116 = arith.select %15, %c2_i32, %115 : i32
    %117 = arith.index_cast %116 : i32 to index
    %c0_44 = arith.constant 0 : index
    %c0_45 = arith.constant 0 : index
    %118 = vector.load %arg9[%117, %c0_44, %c0_45] : memref<8x8x768xbf16, #tpu.memory_space<vmem>>, vector<1x8x768xbf16>
    %119 = vector.shape_cast %118 : vector<1x8x768xbf16> to vector<8x768xbf16>
    %120 = arith.extf %119 : vector<8x768xbf16> to vector<8x768xf32>
    %121 = arith.truncf %104 : vector<8x256xf32> to vector<8x256xbf16>
    %cst_46 = arith.constant dense<0.000000e+00> : vector<8x768xf32>
    %122 = tpu.matmul %121, %17, %cst_46 {dimension_numbers = #tpu.dot_dimension_numbers<[1], [0], [0], [1], [0, 0, 1, 1], [], []>} : vector<8x256xbf16>, vector<256x768xbf16>, vector<8x768xf32> -> vector<8x768xf32>
    %123 = vector.extract_strided_slice %120 {offsets = [0, 0], sizes = [8, 256], strides = [1, 1]} : vector<8x768xf32> to vector<8x256xf32>
    %124 = vector.extract_strided_slice %122 {offsets = [0, 0], sizes = [8, 256], strides = [1, 1]} : vector<8x768xf32> to vector<8x256xf32>
    %125 = arith.addf %123, %124 : vector<8x256xf32>
    %126 = arith.negf %125 : vector<8x256xf32>
    %127 = math.exp %126 : vector<8x256xf32>
    %cst_47 = arith.constant 1.000000e+00 : f32
    %128 = vector.broadcast %cst_47 : f32 to vector<8x256xf32>
    %129 = arith.addf %128, %127 : vector<8x256xf32>
    %130 = arith.divf %128, %129 : vector<8x256xf32>
    %131 = vector.extract_strided_slice %120 {offsets = [0, 256], sizes = [8, 256], strides = [1, 1]} : vector<8x768xf32> to vector<8x256xf32>
    %132 = vector.extract_strided_slice %122 {offsets = [0, 256], sizes = [8, 256], strides = [1, 1]} : vector<8x768xf32> to vector<8x256xf32>
    %133 = arith.addf %131, %132 : vector<8x256xf32>
    %134 = arith.negf %133 : vector<8x256xf32>
    %135 = math.exp %134 : vector<8x256xf32>
    %cst_48 = arith.constant 1.000000e+00 : f32
    %136 = vector.broadcast %cst_48 : f32 to vector<8x256xf32>
    %137 = arith.addf %136, %135 : vector<8x256xf32>
    %138 = arith.divf %136, %137 : vector<8x256xf32>
    %139 = vector.extract_strided_slice %120 {offsets = [0, 512], sizes = [8, 256], strides = [1, 1]} : vector<8x768xf32> to vector<8x256xf32>
    %140 = vector.extract_strided_slice %122 {offsets = [0, 512], sizes = [8, 256], strides = [1, 1]} : vector<8x768xf32> to vector<8x256xf32>
    %141 = vector.broadcast %19 : vector<1x256xf32> to vector<8x256xf32>
    %142 = arith.addf %140, %141 : vector<8x256xf32>
    %143 = arith.mulf %130, %142 : vector<8x256xf32>
    %144 = arith.addf %139, %143 : vector<8x256xf32>
    %145 = math.tanh %144 : vector<8x256xf32>
    %cst_49 = arith.constant 1.000000e+00 : f32
    %146 = vector.broadcast %cst_49 : f32 to vector<8x256xf32>
    %147 = arith.subf %146, %138 : vector<8x256xf32>
    %148 = arith.mulf %147, %145 : vector<8x256xf32>
    %149 = arith.mulf %138, %104 : vector<8x256xf32>
    %150 = arith.addf %148, %149 : vector<8x256xf32>
    %cst_50 = arith.constant 0.000000e+00 : f32
    %151 = vector.broadcast %cst_50 : f32 to vector<8x256xf32>
    %152 = arith.cmpf oge, %150, %151 : vector<8x256xf32>
    %cst_51 = arith.constant 0.00999999977 : f32
    %153 = vector.broadcast %cst_51 : f32 to vector<8x256xf32>
    %154 = arith.mulf %153, %150 : vector<8x256xf32>
    %155 = arith.select %152, %150, %154 : vector<8x256xi1>, vector<8x256xf32>
    %156 = arith.truncf %155 : vector<8x256xf32> to vector<8x256xbf16>
    %157 = arith.index_cast %116 : i32 to index
    %c0_52 = arith.constant 0 : index
    %c0_53 = arith.constant 0 : index
    %158 = vector.load %arg10[%157, %c0_52, %c0_53] : memref<8x8x256xbf16, #tpu.memory_space<vmem>>, vector<1x8x256xbf16>
    %159 = vector.shape_cast %158 : vector<1x8x256xbf16> to vector<8x256xbf16>
    %160 = vector.shape_cast %156 : vector<8x256xbf16> to vector<1x8x256xbf16>
    tpu.vector_store %arg10[%157, %c0_52, %c0_53], %160 {strides = array<i32>} : memref<8x8x256xbf16, #tpu.memory_space<vmem>>, vector<1x8x256xbf16>,
    %c3_i32 = arith.constant 3 : i32
    %c7_i32_54 = arith.constant 7 : i32
    %161 = arith.subi %c7_i32_54, %c3_i32 : i32
    %162 = arith.select %15, %c3_i32, %161 : i32
    %163 = arith.index_cast %162 : i32 to index
    %c0_55 = arith.constant 0 : index
    %c0_56 = arith.constant 0 : index
    %164 = vector.load %arg9[%163, %c0_55, %c0_56] : memref<8x8x768xbf16, #tpu.memory_space<vmem>>, vector<1x8x768xbf16>
    %165 = vector.shape_cast %164 : vector<1x8x768xbf16> to vector<8x768xbf16>
    %166 = arith.extf %165 : vector<8x768xbf16> to vector<8x768xf32>
    %167 = arith.truncf %150 : vector<8x256xf32> to vector<8x256xbf16>
    %cst_57 = arith.constant dense<0.000000e+00> : vector<8x768xf32>
    %168 = tpu.matmul %167, %17, %cst_57 {dimension_numbers = #tpu.dot_dimension_numbers<[1], [0], [0], [1], [0, 0, 1, 1], [], []>} : vector<8x256xbf16>, vector<256x768xbf16>, vector<8x768xf32> -> vector<8x768xf32>
    %169 = vector.extract_strided_slice %166 {offsets = [0, 0], sizes = [8, 256], strides = [1, 1]} : vector<8x768xf32> to vector<8x256xf32>
    %170 = vector.extract_strided_slice %168 {offsets = [0, 0], sizes = [8, 256], strides = [1, 1]} : vector<8x768xf32> to vector<8x256xf32>
    %171 = arith.addf %169, %170 : vector<8x256xf32>
    %172 = arith.negf %171 : vector<8x256xf32>
    %173 = math.exp %172 : vector<8x256xf32>
    %cst_58 = arith.constant 1.000000e+00 : f32
    %174 = vector.broadcast %cst_58 : f32 to vector<8x256xf32>
    %175 = arith.addf %174, %173 : vector<8x256xf32>
    %176 = arith.divf %174, %175 : vector<8x256xf32>
    %177 = vector.extract_strided_slice %166 {offsets = [0, 256], sizes = [8, 256], strides = [1, 1]} : vector<8x768xf32> to vector<8x256xf32>
    %178 = vector.extract_strided_slice %168 {offsets = [0, 256], sizes = [8, 256], strides = [1, 1]} : vector<8x768xf32> to vector<8x256xf32>
    %179 = arith.addf %177, %178 : vector<8x256xf32>
    %180 = arith.negf %179 : vector<8x256xf32>
    %181 = math.exp %180 : vector<8x256xf32>
    %cst_59 = arith.constant 1.000000e+00 : f32
    %182 = vector.broadcast %cst_59 : f32 to vector<8x256xf32>
    %183 = arith.addf %182, %181 : vector<8x256xf32>
    %184 = arith.divf %182, %183 : vector<8x256xf32>
    %185 = vector.extract_strided_slice %166 {offsets = [0, 512], sizes = [8, 256], strides = [1, 1]} : vector<8x768xf32> to vector<8x256xf32>
    %186 = vector.extract_strided_slice %168 {offsets = [0, 512], sizes = [8, 256], strides = [1, 1]} : vector<8x768xf32> to vector<8x256xf32>
    %187 = vector.broadcast %19 : vector<1x256xf32> to vector<8x256xf32>
    %188 = arith.addf %186, %187 : vector<8x256xf32>
    %189 = arith.mulf %176, %188 : vector<8x256xf32>
    %190 = arith.addf %185, %189 : vector<8x256xf32>
    %191 = math.tanh %190 : vector<8x256xf32>
    %cst_60 = arith.constant 1.000000e+00 : f32
    %192 = vector.broadcast %cst_60 : f32 to vector<8x256xf32>
    %193 = arith.subf %192, %184 : vector<8x256xf32>
    %194 = arith.mulf %193, %191 : vector<8x256xf32>
    %195 = arith.mulf %184, %150 : vector<8x256xf32>
    %196 = arith.addf %194, %195 : vector<8x256xf32>
    %cst_61 = arith.constant 0.000000e+00 : f32
    %197 = vector.broadcast %cst_61 : f32 to vector<8x256xf32>
    %198 = arith.cmpf oge, %196, %197 : vector<8x256xf32>
    %cst_62 = arith.constant 0.00999999977 : f32
    %199 = vector.broadcast %cst_62 : f32 to vector<8x256xf32>
    %200 = arith.mulf %199, %196 : vector<8x256xf32>
    %201 = arith.select %198, %196, %200 : vector<8x256xi1>, vector<8x256xf32>
    %202 = arith.truncf %201 : vector<8x256xf32> to vector<8x256xbf16>
    %203 = arith.index_cast %162 : i32 to index
    %c0_63 = arith.constant 0 : index
    %c0_64 = arith.constant 0 : index
    %204 = vector.load %arg10[%203, %c0_63, %c0_64] : memref<8x8x256xbf16, #tpu.memory_space<vmem>>, vector<1x8x256xbf16>
    %205 = vector.shape_cast %204 : vector<1x8x256xbf16> to vector<8x256xbf16>
    %206 = vector.shape_cast %202 : vector<8x256xbf16> to vector<1x8x256xbf16>
    tpu.vector_store %arg10[%203, %c0_63, %c0_64], %206 {strides = array<i32>} : memref<8x8x256xbf16, #tpu.memory_space<vmem>>, vector<1x8x256xbf16>,
    %c4_i32 = arith.constant 4 : i32
    %c7_i32_65 = arith.constant 7 : i32
    %207 = arith.subi %c7_i32_65, %c4_i32 : i32
    %208 = arith.select %15, %c4_i32, %207 : i32
    %209 = arith.index_cast %208 : i32 to index
    %c0_66 = arith.constant 0 : index
    %c0_67 = arith.constant 0 : index
    %210 = vector.load %arg9[%209, %c0_66, %c0_67] : memref<8x8x768xbf16, #tpu.memory_space<vmem>>, vector<1x8x768xbf16>
    %211 = vector.shape_cast %210 : vector<1x8x768xbf16> to vector<8x768xbf16>
    %212 = arith.extf %211 : vector<8x768xbf16> to vector<8x768xf32>
    %213 = arith.truncf %196 : vector<8x256xf32> to vector<8x256xbf16>
    %cst_68 = arith.constant dense<0.000000e+00> : vector<8x768xf32>
    %214 = tpu.matmul %213, %17, %cst_68 {dimension_numbers = #tpu.dot_dimension_numbers<[1], [0], [0], [1], [0, 0, 1, 1], [], []>} : vector<8x256xbf16>, vector<256x768xbf16>, vector<8x768xf32> -> vector<8x768xf32>
    %215 = vector.extract_strided_slice %212 {offsets = [0, 0], sizes = [8, 256], strides = [1, 1]} : vector<8x768xf32> to vector<8x256xf32>
    %216 = vector.extract_strided_slice %214 {offsets = [0, 0], sizes = [8, 256], strides = [1, 1]} : vector<8x768xf32> to vector<8x256xf32>
    %217 = arith.addf %215, %216 : vector<8x256xf32>
    %218 = arith.negf %217 : vector<8x256xf32>
    %219 = math.exp %218 : vector<8x256xf32>
    %cst_69 = arith.constant 1.000000e+00 : f32
    %220 = vector.broadcast %cst_69 : f32 to vector<8x256xf32>
    %221 = arith.addf %220, %219 : vector<8x256xf32>
    %222 = arith.divf %220, %221 : vector<8x256xf32>
    %223 = vector.extract_strided_slice %212 {offsets = [0, 256], sizes = [8, 256], strides = [1, 1]} : vector<8x768xf32> to vector<8x256xf32>
    %224 = vector.extract_strided_slice %214 {offsets = [0, 256], sizes = [8, 256], strides = [1, 1]} : vector<8x768xf32> to vector<8x256xf32>
    %225 = arith.addf %223, %224 : vector<8x256xf32>
    %226 = arith.negf %225 : vector<8x256xf32>
    %227 = math.exp %226 : vector<8x256xf32>
    %cst_70 = arith.constant 1.000000e+00 : f32
    %228 = vector.broadcast %cst_70 : f32 to vector<8x256xf32>
    %229 = arith.addf %228, %227 : vector<8x256xf32>
    %230 = arith.divf %228, %229 : vector<8x256xf32>
    %231 = vector.extract_strided_slice %212 {offsets = [0, 512], sizes = [8, 256], strides = [1, 1]} : vector<8x768xf32> to vector<8x256xf32>
    %232 = vector.extract_strided_slice %214 {offsets = [0, 512], sizes = [8, 256], strides = [1, 1]} : vector<8x768xf32> to vector<8x256xf32>
    %233 = vector.broadcast %19 : vector<1x256xf32> to vector<8x256xf32>
    %234 = arith.addf %232, %233 : vector<8x256xf32>
    %235 = arith.mulf %222, %234 : vector<8x256xf32>
    %236 = arith.addf %231, %235 : vector<8x256xf32>
    %237 = math.tanh %236 : vector<8x256xf32>
    %cst_71 = arith.constant 1.000000e+00 : f32
    %238 = vector.broadcast %cst_71 : f32 to vector<8x256xf32>
    %239 = arith.subf %238, %230 : vector<8x256xf32>
    %240 = arith.mulf %239, %237 : vector<8x256xf32>
    %241 = arith.mulf %230, %196 : vector<8x256xf32>
    %242 = arith.addf %240, %241 : vector<8x256xf32>
    %cst_72 = arith.constant 0.000000e+00 : f32
    %243 = vector.broadcast %cst_72 : f32 to vector<8x256xf32>
    %244 = arith.cmpf oge, %242, %243 : vector<8x256xf32>
    %cst_73 = arith.constant 0.00999999977 : f32
    %245 = vector.broadcast %cst_73 : f32 to vector<8x256xf32>
    %246 = arith.mulf %245, %242 : vector<8x256xf32>
    %247 = arith.select %244, %242, %246 : vector<8x256xi1>, vector<8x256xf32>
    %248 = arith.truncf %247 : vector<8x256xf32> to vector<8x256xbf16>
    %249 = arith.index_cast %208 : i32 to index
    %c0_74 = arith.constant 0 : index
    %c0_75 = arith.constant 0 : index
    %250 = vector.load %arg10[%249, %c0_74, %c0_75] : memref<8x8x256xbf16, #tpu.memory_space<vmem>>, vector<1x8x256xbf16>
    %251 = vector.shape_cast %250 : vector<1x8x256xbf16> to vector<8x256xbf16>
    %252 = vector.shape_cast %248 : vector<8x256xbf16> to vector<1x8x256xbf16>
    tpu.vector_store %arg10[%249, %c0_74, %c0_75], %252 {strides = array<i32>} : memref<8x8x256xbf16, #tpu.memory_space<vmem>>, vector<1x8x256xbf16>,
    %c5_i32 = arith.constant 5 : i32
    %c7_i32_76 = arith.constant 7 : i32
    %253 = arith.subi %c7_i32_76, %c5_i32 : i32
    %254 = arith.select %15, %c5_i32, %253 : i32
    %255 = arith.index_cast %254 : i32 to index
    %c0_77 = arith.constant 0 : index
    %c0_78 = arith.constant 0 : index
    %256 = vector.load %arg9[%255, %c0_77, %c0_78] : memref<8x8x768xbf16, #tpu.memory_space<vmem>>, vector<1x8x768xbf16>
    %257 = vector.shape_cast %256 : vector<1x8x768xbf16> to vector<8x768xbf16>
    %258 = arith.extf %257 : vector<8x768xbf16> to vector<8x768xf32>
    %259 = arith.truncf %242 : vector<8x256xf32> to vector<8x256xbf16>
    %cst_79 = arith.constant dense<0.000000e+00> : vector<8x768xf32>
    %260 = tpu.matmul %259, %17, %cst_79 {dimension_numbers = #tpu.dot_dimension_numbers<[1], [0], [0], [1], [0, 0, 1, 1], [], []>} : vector<8x256xbf16>, vector<256x768xbf16>, vector<8x768xf32> -> vector<8x768xf32>
    %261 = vector.extract_strided_slice %258 {offsets = [0, 0], sizes = [8, 256], strides = [1, 1]} : vector<8x768xf32> to vector<8x256xf32>
    %262 = vector.extract_strided_slice %260 {offsets = [0, 0], sizes = [8, 256], strides = [1, 1]} : vector<8x768xf32> to vector<8x256xf32>
    %263 = arith.addf %261, %262 : vector<8x256xf32>
    %264 = arith.negf %263 : vector<8x256xf32>
    %265 = math.exp %264 : vector<8x256xf32>
    %cst_80 = arith.constant 1.000000e+00 : f32
    %266 = vector.broadcast %cst_80 : f32 to vector<8x256xf32>
    %267 = arith.addf %266, %265 : vector<8x256xf32>
    %268 = arith.divf %266, %267 : vector<8x256xf32>
    %269 = vector.extract_strided_slice %258 {offsets = [0, 256], sizes = [8, 256], strides = [1, 1]} : vector<8x768xf32> to vector<8x256xf32>
    %270 = vector.extract_strided_slice %260 {offsets = [0, 256], sizes = [8, 256], strides = [1, 1]} : vector<8x768xf32> to vector<8x256xf32>
    %271 = arith.addf %269, %270 : vector<8x256xf32>
    %272 = arith.negf %271 : vector<8x256xf32>
    %273 = math.exp %272 : vector<8x256xf32>
    %cst_81 = arith.constant 1.000000e+00 : f32
    %274 = vector.broadcast %cst_81 : f32 to vector<8x256xf32>
    %275 = arith.addf %274, %273 : vector<8x256xf32>
    %276 = arith.divf %274, %275 : vector<8x256xf32>
    %277 = vector.extract_strided_slice %258 {offsets = [0, 512], sizes = [8, 256], strides = [1, 1]} : vector<8x768xf32> to vector<8x256xf32>
    %278 = vector.extract_strided_slice %260 {offsets = [0, 512], sizes = [8, 256], strides = [1, 1]} : vector<8x768xf32> to vector<8x256xf32>
    %279 = vector.broadcast %19 : vector<1x256xf32> to vector<8x256xf32>
    %280 = arith.addf %278, %279 : vector<8x256xf32>
    %281 = arith.mulf %268, %280 : vector<8x256xf32>
    %282 = arith.addf %277, %281 : vector<8x256xf32>
    %283 = math.tanh %282 : vector<8x256xf32>
    %cst_82 = arith.constant 1.000000e+00 : f32
    %284 = vector.broadcast %cst_82 : f32 to vector<8x256xf32>
    %285 = arith.subf %284, %276 : vector<8x256xf32>
    %286 = arith.mulf %285, %283 : vector<8x256xf32>
    %287 = arith.mulf %276, %242 : vector<8x256xf32>
    %288 = arith.addf %286, %287 : vector<8x256xf32>
    %cst_83 = arith.constant 0.000000e+00 : f32
    %289 = vector.broadcast %cst_83 : f32 to vector<8x256xf32>
    %290 = arith.cmpf oge, %288, %289 : vector<8x256xf32>
    %cst_84 = arith.constant 0.00999999977 : f32
    %291 = vector.broadcast %cst_84 : f32 to vector<8x256xf32>
    %292 = arith.mulf %291, %288 : vector<8x256xf32>
    %293 = arith.select %290, %288, %292 : vector<8x256xi1>, vector<8x256xf32>
    %294 = arith.truncf %293 : vector<8x256xf32> to vector<8x256xbf16>
    %295 = arith.index_cast %254 : i32 to index
    %c0_85 = arith.constant 0 : index
    %c0_86 = arith.constant 0 : index
    %296 = vector.load %arg10[%295, %c0_85, %c0_86] : memref<8x8x256xbf16, #tpu.memory_space<vmem>>, vector<1x8x256xbf16>
    %297 = vector.shape_cast %296 : vector<1x8x256xbf16> to vector<8x256xbf16>
    %298 = vector.shape_cast %294 : vector<8x256xbf16> to vector<1x8x256xbf16>
    tpu.vector_store %arg10[%295, %c0_85, %c0_86], %298 {strides = array<i32>} : memref<8x8x256xbf16, #tpu.memory_space<vmem>>, vector<1x8x256xbf16>,
    %c6_i32 = arith.constant 6 : i32
    %c7_i32_87 = arith.constant 7 : i32
    %299 = arith.subi %c7_i32_87, %c6_i32 : i32
    %300 = arith.select %15, %c6_i32, %299 : i32
    %301 = arith.index_cast %300 : i32 to index
    %c0_88 = arith.constant 0 : index
    %c0_89 = arith.constant 0 : index
    %302 = vector.load %arg9[%301, %c0_88, %c0_89] : memref<8x8x768xbf16, #tpu.memory_space<vmem>>, vector<1x8x768xbf16>
    %303 = vector.shape_cast %302 : vector<1x8x768xbf16> to vector<8x768xbf16>
    %304 = arith.extf %303 : vector<8x768xbf16> to vector<8x768xf32>
    %305 = arith.truncf %288 : vector<8x256xf32> to vector<8x256xbf16>
    %cst_90 = arith.constant dense<0.000000e+00> : vector<8x768xf32>
    %306 = tpu.matmul %305, %17, %cst_90 {dimension_numbers = #tpu.dot_dimension_numbers<[1], [0], [0], [1], [0, 0, 1, 1], [], []>} : vector<8x256xbf16>, vector<256x768xbf16>, vector<8x768xf32> -> vector<8x768xf32>
    %307 = vector.extract_strided_slice %304 {offsets = [0, 0], sizes = [8, 256], strides = [1, 1]} : vector<8x768xf32> to vector<8x256xf32>
    %308 = vector.extract_strided_slice %306 {offsets = [0, 0], sizes = [8, 256], strides = [1, 1]} : vector<8x768xf32> to vector<8x256xf32>
    %309 = arith.addf %307, %308 : vector<8x256xf32>
    %310 = arith.negf %309 : vector<8x256xf32>
    %311 = math.exp %310 : vector<8x256xf32>
    %cst_91 = arith.constant 1.000000e+00 : f32
    %312 = vector.broadcast %cst_91 : f32 to vector<8x256xf32>
    %313 = arith.addf %312, %311 : vector<8x256xf32>
    %314 = arith.divf %312, %313 : vector<8x256xf32>
    %315 = vector.extract_strided_slice %304 {offsets = [0, 256], sizes = [8, 256], strides = [1, 1]} : vector<8x768xf32> to vector<8x256xf32>
    %316 = vector.extract_strided_slice %306 {offsets = [0, 256], sizes = [8, 256], strides = [1, 1]} : vector<8x768xf32> to vector<8x256xf32>
    %317 = arith.addf %315, %316 : vector<8x256xf32>
    %318 = arith.negf %317 : vector<8x256xf32>
    %319 = math.exp %318 : vector<8x256xf32>
    %cst_92 = arith.constant 1.000000e+00 : f32
    %320 = vector.broadcast %cst_92 : f32 to vector<8x256xf32>
    %321 = arith.addf %320, %319 : vector<8x256xf32>
    %322 = arith.divf %320, %321 : vector<8x256xf32>
    %323 = vector.extract_strided_slice %304 {offsets = [0, 512], sizes = [8, 256], strides = [1, 1]} : vector<8x768xf32> to vector<8x256xf32>
    %324 = vector.extract_strided_slice %306 {offsets = [0, 512], sizes = [8, 256], strides = [1, 1]} : vector<8x768xf32> to vector<8x256xf32>
    %325 = vector.broadcast %19 : vector<1x256xf32> to vector<8x256xf32>
    %326 = arith.addf %324, %325 : vector<8x256xf32>
    %327 = arith.mulf %314, %326 : vector<8x256xf32>
    %328 = arith.addf %323, %327 : vector<8x256xf32>
    %329 = math.tanh %328 : vector<8x256xf32>
    %cst_93 = arith.constant 1.000000e+00 : f32
    %330 = vector.broadcast %cst_93 : f32 to vector<8x256xf32>
    %331 = arith.subf %330, %322 : vector<8x256xf32>
    %332 = arith.mulf %331, %329 : vector<8x256xf32>
    %333 = arith.mulf %322, %288 : vector<8x256xf32>
    %334 = arith.addf %332, %333 : vector<8x256xf32>
    %cst_94 = arith.constant 0.000000e+00 : f32
    %335 = vector.broadcast %cst_94 : f32 to vector<8x256xf32>
    %336 = arith.cmpf oge, %334, %335 : vector<8x256xf32>
    %cst_95 = arith.constant 0.00999999977 : f32
    %337 = vector.broadcast %cst_95 : f32 to vector<8x256xf32>
    %338 = arith.mulf %337, %334 : vector<8x256xf32>
    %339 = arith.select %336, %334, %338 : vector<8x256xi1>, vector<8x256xf32>
    %340 = arith.truncf %339 : vector<8x256xf32> to vector<8x256xbf16>
    %341 = arith.index_cast %300 : i32 to index
    %c0_96 = arith.constant 0 : index
    %c0_97 = arith.constant 0 : index
    %342 = vector.load %arg10[%341, %c0_96, %c0_97] : memref<8x8x256xbf16, #tpu.memory_space<vmem>>, vector<1x8x256xbf16>
    %343 = vector.shape_cast %342 : vector<1x8x256xbf16> to vector<8x256xbf16>
    %344 = vector.shape_cast %340 : vector<8x256xbf16> to vector<1x8x256xbf16>
    tpu.vector_store %arg10[%341, %c0_96, %c0_97], %344 {strides = array<i32>} : memref<8x8x256xbf16, #tpu.memory_space<vmem>>, vector<1x8x256xbf16>,
    %c7_i32_98 = arith.constant 7 : i32
    %c7_i32_99 = arith.constant 7 : i32
    %345 = arith.subi %c7_i32_99, %c7_i32_98 : i32
    %346 = arith.select %15, %c7_i32_98, %345 : i32
    %347 = arith.index_cast %346 : i32 to index
    %c0_100 = arith.constant 0 : index
    %c0_101 = arith.constant 0 : index
    %348 = vector.load %arg9[%347, %c0_100, %c0_101] : memref<8x8x768xbf16, #tpu.memory_space<vmem>>, vector<1x8x768xbf16>
    %349 = vector.shape_cast %348 : vector<1x8x768xbf16> to vector<8x768xbf16>
    %350 = arith.extf %349 : vector<8x768xbf16> to vector<8x768xf32>
    %351 = arith.truncf %334 : vector<8x256xf32> to vector<8x256xbf16>
    %cst_102 = arith.constant dense<0.000000e+00> : vector<8x768xf32>
    %352 = tpu.matmul %351, %17, %cst_102 {dimension_numbers = #tpu.dot_dimension_numbers<[1], [0], [0], [1], [0, 0, 1, 1], [], []>} : vector<8x256xbf16>, vector<256x768xbf16>, vector<8x768xf32> -> vector<8x768xf32>
    %353 = vector.extract_strided_slice %350 {offsets = [0, 0], sizes = [8, 256], strides = [1, 1]} : vector<8x768xf32> to vector<8x256xf32>
    %354 = vector.extract_strided_slice %352 {offsets = [0, 0], sizes = [8, 256], strides = [1, 1]} : vector<8x768xf32> to vector<8x256xf32>
    %355 = arith.addf %353, %354 : vector<8x256xf32>
    %356 = arith.negf %355 : vector<8x256xf32>
    %357 = math.exp %356 : vector<8x256xf32>
    %cst_103 = arith.constant 1.000000e+00 : f32
    %358 = vector.broadcast %cst_103 : f32 to vector<8x256xf32>
    %359 = arith.addf %358, %357 : vector<8x256xf32>
    %360 = arith.divf %358, %359 : vector<8x256xf32>
    %361 = vector.extract_strided_slice %350 {offsets = [0, 256], sizes = [8, 256], strides = [1, 1]} : vector<8x768xf32> to vector<8x256xf32>
    %362 = vector.extract_strided_slice %352 {offsets = [0, 256], sizes = [8, 256], strides = [1, 1]} : vector<8x768xf32> to vector<8x256xf32>
    %363 = arith.addf %361, %362 : vector<8x256xf32>
    %364 = arith.negf %363 : vector<8x256xf32>
    %365 = math.exp %364 : vector<8x256xf32>
    %cst_104 = arith.constant 1.000000e+00 : f32
    %366 = vector.broadcast %cst_104 : f32 to vector<8x256xf32>
    %367 = arith.addf %366, %365 : vector<8x256xf32>
    %368 = arith.divf %366, %367 : vector<8x256xf32>
    %369 = vector.extract_strided_slice %350 {offsets = [0, 512], sizes = [8, 256], strides = [1, 1]} : vector<8x768xf32> to vector<8x256xf32>
    %370 = vector.extract_strided_slice %352 {offsets = [0, 512], sizes = [8, 256], strides = [1, 1]} : vector<8x768xf32> to vector<8x256xf32>
    %371 = vector.broadcast %19 : vector<1x256xf32> to vector<8x256xf32>
    %372 = arith.addf %370, %371 : vector<8x256xf32>
    %373 = arith.mulf %360, %372 : vector<8x256xf32>
    %374 = arith.addf %369, %373 : vector<8x256xf32>
    %375 = math.tanh %374 : vector<8x256xf32>
    %cst_105 = arith.constant 1.000000e+00 : f32
    %376 = vector.broadcast %cst_105 : f32 to vector<8x256xf32>
    %377 = arith.subf %376, %368 : vector<8x256xf32>
    %378 = arith.mulf %377, %375 : vector<8x256xf32>
    %379 = arith.mulf %368, %334 : vector<8x256xf32>
    %380 = arith.addf %378, %379 : vector<8x256xf32>
    %cst_106 = arith.constant 0.000000e+00 : f32
    %381 = vector.broadcast %cst_106 : f32 to vector<8x256xf32>
    %382 = arith.cmpf oge, %380, %381 : vector<8x256xf32>
    %cst_107 = arith.constant 0.00999999977 : f32
    %383 = vector.broadcast %cst_107 : f32 to vector<8x256xf32>
    %384 = arith.mulf %383, %380 : vector<8x256xf32>
    %385 = arith.select %382, %380, %384 : vector<8x256xi1>, vector<8x256xf32>
    %386 = arith.truncf %385 : vector<8x256xf32> to vector<8x256xbf16>
    %387 = arith.index_cast %346 : i32 to index
    %c0_108 = arith.constant 0 : index
    %c0_109 = arith.constant 0 : index
    %388 = vector.load %arg10[%387, %c0_108, %c0_109] : memref<8x8x256xbf16, #tpu.memory_space<vmem>>, vector<1x8x256xbf16>
    %389 = vector.shape_cast %388 : vector<1x8x256xbf16> to vector<8x256xbf16>
    %390 = vector.shape_cast %386 : vector<8x256xbf16> to vector<1x8x256xbf16>
    tpu.vector_store %arg10[%387, %c0_108, %c0_109], %390 {strides = array<i32>} : memref<8x8x256xbf16, #tpu.memory_space<vmem>>, vector<1x8x256xbf16>,
    %c8_i32 = arith.constant 8 : i32
    %391 = arith.index_cast %arg0 : i32 to index
    %c0_110 = arith.constant 0 : index
    %c0_111 = arith.constant 0 : index
    %392 = vector.load %arg11[%391, %c0_110, %c0_111] : memref<2x8x256xf32, #tpu.memory_space<vmem>>, vector<1x8x256xf32>
    %393 = vector.shape_cast %392 : vector<1x8x256xf32> to vector<8x256xf32>
    %394 = vector.shape_cast %380 : vector<8x256xf32> to vector<1x8x256xf32>
    tpu.vector_store %arg11[%391, %c0_110, %c0_111], %394 {strides = array<i32>} : memref<2x8x256xf32, #tpu.memory_space<vmem>>, vector<1x8x256xf32>,
    %c0_112 = arith.constant 0 : index
    %c0_113 = arith.constant 0 : index
    %c0_114 = arith.constant 0 : index
    %395 = vector.load %arg10[%c0_112, %c0_113, %c0_114] : memref<8x8x256xbf16, #tpu.memory_space<vmem>>, vector<8x8x256xbf16>
    %396 = vector.shape_cast %395 : vector<8x8x256xbf16> to vector<64x256xbf16>
    %c0_115 = arith.constant 0 : index
    %c0_116 = arith.constant 0 : index
    %c0_117 = arith.constant 0 : index
    %397 = vector.load %arg7[%c0_115, %c0_116, %c0_117] : memref<1x256x128xbf16, #tpu.memory_space<vmem>>, vector<1x256x128xbf16>
    %398 = vector.shape_cast %397 : vector<1x256x128xbf16> to vector<256x128xbf16>
    %cst_118 = arith.constant dense<0.000000e+00> : vector<64x128xf32>
    %399 = tpu.matmul %396, %398, %cst_118 {dimension_numbers = #tpu.dot_dimension_numbers<[1], [0], [0], [1], [0, 0, 1, 1], [], []>} : vector<64x256xbf16>, vector<256x128xbf16>, vector<64x128xf32> -> vector<64x128xf32>
    %400 = vector.shape_cast %399 : vector<64x128xf32> to vector<8x8x128xf32>
    %c0_119 = arith.constant 0 : index
    %c0_120 = arith.constant 0 : index
    %c0_121 = arith.constant 0 : index
    %c0_122 = arith.constant 0 : index
    %401 = vector.load %arg8[%c0_119, %c0_120, %c0_121, %c0_122] : memref<1x8x8x128xf32, #tpu.memory_space<vmem>>, vector<1x8x8x128xf32>
    %402 = vector.shape_cast %401 : vector<1x8x8x128xf32> to vector<8x8x128xf32>
    %403 = vector.shape_cast %400 : vector<8x8x128xf32> to vector<1x8x8x128xf32>
    tpu.vector_store %arg8[%c0_119, %c0_120, %c0_121, %c0_122], %403 {strides = array<i32>} : memref<1x8x8x128xf32, #tpu.memory_space<vmem>>, vector<1x8x8x128xf32>,
    return
  }
  func.func @transform_0(%arg0: i32, %arg1: i32) -> (i32, i32, i32) {
    %c1_i32 = arith.constant 1 : i32
    %0 = arith.subi %c1_i32, %arg0 : i32
    %1 = arith.muli %0, %arg1 : i32
    %c0_i32 = arith.constant 0 : i32
    %2 = arith.subi %c0_i32, %arg1 : i32
    %3 = arith.muli %arg0, %2 : i32
    %4 = arith.addi %1, %3 : i32
    %c0_i32_0 = arith.constant 0 : i32
    %c0_i32_1 = arith.constant 0 : i32
    %c0_i32_2 = arith.constant 0 : i32
    return %4, %c0_i32_0, %c0_i32_1 : i32, i32, i32
  }
  func.func @transform_1(%arg0: i32, %arg1: i32) -> (i32, i32, i32) {
    %c0_i32 = arith.constant 0 : i32
    %c0_i32_0 = arith.constant 0 : i32
    %c0_i32_1 = arith.constant 0 : i32
    return %arg0, %c0_i32, %c0_i32_0 : i32, i32, i32
  }
  func.func @transform_2(%arg0: i32, %arg1: i32) -> (i32, i32, i32) {
    %c0_i32 = arith.constant 0 : i32
    %c0_i32_0 = arith.constant 0 : i32
    %c0_i32_1 = arith.constant 0 : i32
    return %arg0, %c0_i32, %c0_i32_0 : i32, i32, i32
  }
  func.func @transform_3(%arg0: i32, %arg1: i32) -> (i32, i32, i32) {
    %c0_i32 = arith.constant 0 : i32
    %c0_i32_0 = arith.constant 0 : i32
    %c0_i32_1 = arith.constant 0 : i32
    return %arg0, %c0_i32, %c0_i32_0 : i32, i32, i32
  }
  func.func @transform_4(%arg0: i32, %arg1: i32) -> (i32, i32, i32) {
    %c0_i32 = arith.constant 0 : i32
    %c0_i32_0 = arith.constant 0 : i32
    %c0_i32_1 = arith.constant 0 : i32
    return %arg0, %c0_i32, %c0_i32_0 : i32, i32, i32
  }
  func.func @transform_5(%arg0: i32, %arg1: i32) -> (i32, i32, i32) {
    %c0_i32 = arith.constant 0 : i32
    %c0_i32_0 = arith.constant 0 : i32
    %c0_i32_1 = arith.constant 0 : i32
    return %arg0, %c0_i32, %c0_i32_0 : i32, i32, i32
  }
  func.func @transform_6(%arg0: i32, %arg1: i32) -> (i32, i32, i32, i32) {
    %c1_i32 = arith.constant 1 : i32
    %0 = arith.subi %c1_i32, %arg0 : i32
    %1 = arith.muli %0, %arg1 : i32
    %c0_i32 = arith.constant 0 : i32
    %2 = arith.subi %c0_i32, %arg1 : i32
    %3 = arith.muli %arg0, %2 : i32
    %4 = arith.addi %1, %3 : i32
    %c0_i32_0 = arith.constant 0 : i32
    %c0_i32_1 = arith.constant 0 : i32
    %c0_i32_2 = arith.constant 0 : i32
    return %arg0, %4, %c0_i32_0, %c0_i32_1 : i32, i32, i32, i32
  }
}

</mosaic_0001>

<bundles_post_ra>
// kernel: ffn_forward.1
= control target key start
LH: loop header
LB: loop body
LE: loop exit
PB: predicated region body
PF: predicated region fallthrough
CT: control target
= control target key end

     0   :  { %s4926_s21 = smov 0   ;;  %s4928_s22 = smov 0   ;;  %s7007_s0 = inlined_call_operand.vmem [shape: bf16[8,8,128], index: 0, kind: input, shape index: {}]   ;;  %s7008_s1 = inlined_call_operand.vmem [shape: bf16[2,128,768], index: 1, kind: input, shape index: {}]   ;;  %s7009_s2 = inlined_call_operand.vmem [shape: bf16[2,256,768], index: 2, kind: input, shape index: {}]   ;;  %s7010_s3 = inlined_call_operand.vmem [shape: f32[2,1,768], index: 3, kind: input, shape index: {}]   ;;  %s7011_s4 = inlined_call_operand.vmem [shape: f32[2,1,256], index: 4, kind: input, shape index: {}]   ;;  %s7012_s5 = inlined_call_operand.vmem [shape: bf16[2,256,128], index: 5, kind: input, shape index: {}]   ;;  %s7013_s6 = inlined_call_operand.vmem [shape: f32[2,8,8,128], index: 6, kind: output, shape index: {}]  }
   0x1   :  { %s4930_s23 = smov 0  }
   0x2 LB: > { %s28_s24 = sadd.s32 1, %s4883_s22  ;;  %p3870_p0 = scmp.ge.s32.totalorder %s4887_s23, 1  ;;  %s4887_s23 = sphi %s4930_s23, %s16_s23   ;;  %s4883_s22 = sphi %s4928_s22, %s7526_s22   ;;  %s4879_s21 = sphi %s4926_s21, %s7525_s21  }
   0x3   : > { %p30_p1 = scmp.ge.s32.totalorder %s28_s24, 2  ;;  %p305_p2 = scmp.lt.s32.totalorder %s4887_s23, 3 }
   0x5   : > { %s7528_s24 = smov (%p30_p1, %s28_s24), 0  ;;  %p306_p3 = pnand %p3870_p0, %p305_p2 }
   0x7   : > { %309 = sbr.rel (%p306_p3) target bundleno = 2642 (0xa52), region = 44 }
   0xc   : > { %p388_p4 = scmp.lt.s32.totalorder %s4879_s21, 1  ;;  %v4889_v0 = vmov 0   ;;  %v5003_v35 = vld [vmem:[%s7007_s0] sm:$0xff]   ;;  %v5031_v44 = vld [vmem:[%s7007_s0 + $0x8] sm:$0xff]   ;;  %v5060_v53 = vld [vmem:[%s7007_s0 + $0x10] sm:$0xff]   ;;  %p1228_p5 = scmp.eq.s32.totalorder %s4879_s21, 0 }
   0xd   : > { %825 = vmatprep.mubr.bf16.mxu0 %v4889_v0  ;;  %898 = vmatprep.mubr.bf16.mxu1 %v4889_v0  ;;  %v5089_v62 = vld [vmem:[%s7007_s0 + $0x18] sm:$0xff]  }
   0xe   : > { %s4950_s25 = scalar_select %p388_p4, %s4879_s21, 1 }
   0xf   : > { %s5577_s27 = scalar_select %p1228_p5, 0, 7 }
  0x10   : > { %s4236_s26 = smul.u32 384, %s4950_s25 }
  0x11   : > { %s4237_s30 = smul.u32 768, %s4950_s25  ;;  %s4174_s11 = sshll.u32 %s5577_s27, 3 }
  0x12   : > { %s4956_s29 = scalar_lea.vmem %s7008_s1, %s4236_s26  ;;  %s4238_s18 = smul.u32 6, %s4950_s25 }
  0x13   : > { %v4265_v1 = vld [vmem:[%s4956_s29 + $0x154] ss:$24 sps:$4 sm:$0xff]   ;;  %v4269_v3 = vld [vmem:[%s4956_s29 + $0x150] ss:$24 sps:$4 sm:$0xff]   ;;  %v4271_v5 = vld [vmem:[%s4956_s29 + $0x124] ss:$24 sps:$4 sm:$0xff]   ;;  %s4988_s9 = scalar_lea.vmem %s7009_s2, %s4237_s30 }
  0x14   : > { %v4267_v2 = vld [vmem:[%s4956_s29 + $0x15c] ss:$24 sps:$4 sm:$0xff]   ;;  %793 = vmatprep.subr.bf16.mxu0 %v4265_v1  ;;  %v4270_v4 = vld [vmem:[%s4956_s29 + $0x158] ss:$24 sps:$4 sm:$0xff]   ;;  %v4273_v6 = vld [vmem:[%s4956_s29 + $0x12c] ss:$24 sps:$4 sm:$0xff]   ;;  %s401_s26 = scalar_lea.vmem %s7010_s3, %s4238_s18 }
  0x15   : > { %866 = vmatprep.subr.bf16.mxu1 %v4267_v2  ;;  %794 = vmatpush1.bf16.msra.mxu0 %v4269_v3  ;;  %v4275_v7 = vld [vmem:[%s4956_s29 + $0x120] ss:$24 sps:$4 sm:$0xff]   ;;  %v4277_v9 = vld [vmem:[%s4956_s29 + $0xf4] ss:$24 sps:$4 sm:$0xff]   ;;  %v4281_v11 = vld [vmem:[%s4956_s29 + $0xf0] ss:$24 sps:$4 sm:$0xff]  }
  0x16   : > { %867 = vmatpush1.bf16.msra.mxu1 %v4270_v4  ;;  %795 = vmatprep.subr.bf16.mxu0 %v4271_v5  ;;  %v4276_v8 = vld [vmem:[%s4956_s29 + $0x128] ss:$24 sps:$4 sm:$0xff]   ;;  %v4279_v10 = vld [vmem:[%s4956_s29 + $0xfc] ss:$24 sps:$4 sm:$0xff]   ;;  %v4282_v12 = vld [vmem:[%s4956_s29 + $0xf8] ss:$24 sps:$4 sm:$0xff]  }
  0x17   : > { %868 = vmatprep.subr.bf16.mxu1 %v4273_v6  ;;  %v4283_v13 = vld [vmem:[%s4956_s29 + $0xc4] ss:$24 sps:$4 sm:$0xff]   ;;  %v4287_v15 = vld [vmem:[%s4956_s29 + $0xc0] ss:$24 sps:$4 sm:$0xff]   ;;  %v4289_v17 = vld [vmem:[%s4956_s29 + $0x94] ss:$24 sps:$4 sm:$0xff]  }
  0x18   : > { %v4285_v14 = vld [vmem:[%s4956_s29 + $0xcc] ss:$24 sps:$4 sm:$0xff]   ;;  %v4288_v16 = vld [vmem:[%s4956_s29 + $0xc8] ss:$24 sps:$4 sm:$0xff]   ;;  %v4291_v18 = vld [vmem:[%s4956_s29 + $0x9c] ss:$24 sps:$4 sm:$0xff]  }
  0x19   : > { %796 = vmatpush1.bf16.msra.mxu0 %v4275_v7  ;;  %v4293_v19 = vld [vmem:[%s4956_s29 + $0x90] ss:$24 sps:$4 sm:$0xff]   ;;  %v4295_v21 = vld [vmem:[%s4956_s29 + $0x64] ss:$24 sps:$4 sm:$0xff]   ;;  %v4299_v23 = vld [vmem:[%s4956_s29 + $0x60] ss:$24 sps:$4 sm:$0xff]  }
  0x1a   : > { %869 = vmatpush1.bf16.msra.mxu1 %v4276_v8  ;;  %797 = vmatprep.subr.bf16.mxu0 %v4277_v9  ;;  %v4294_v20 = vld [vmem:[%s4956_s29 + $0x98] ss:$24 sps:$4 sm:$0xff]   ;;  %v4297_v22 = vld [vmem:[%s4956_s29 + $0x6c] ss:$24 sps:$4 sm:$0xff]   ;;  %v4300_v24 = vld [vmem:[%s4956_s29 + $0x68] ss:$24 sps:$4 sm:$0xff]  }
  0x1b   : > { %870 = vmatprep.subr.bf16.mxu1 %v4279_v10  ;;  %v4301_v25 = vld [vmem:[%s4956_s29 + $0x34] ss:$24 sps:$4 sm:$0xff]   ;;  %v4305_v27 = vld [vmem:[%s4956_s29 + $0x30] ss:$24 sps:$4 sm:$0xff]   ;;  %v4307_v29 = vld [vmem:[%s4956_s29 + $0x4] ss:$24 sps:$4 sm:$0xff]  }
  0x1c   : > { %v4303_v26 = vld [vmem:[%s4956_s29 + $0x3c] ss:$24 sps:$4 sm:$0xff]   ;;  %v4306_v28 = vld [vmem:[%s4956_s29 + $0x38] ss:$24 sps:$4 sm:$0xff]   ;;  %v4309_v30 = vld [vmem:[%s4956_s29 + $0xc] ss:$24 sps:$4 sm:$0xff]  }
  0x1d   : > { %798 = vmatpush1.bf16.msra.mxu0 %v4281_v11  ;;  %v4311_v31 = vld [vmem:[%s4956_s29] ss:$24 sps:$4 sm:$0xff]   ;;  %v4316_v33 = vld [vmem:[%s4956_s29 + $0x164] ss:$24 sps:$4 sm:$0xff]   ;;  %v4998_v34 = vld [vmem:[%s4988_s9 + $0x154] ss:$24 sps:$4 sm:$0xff]  }
  0x1e   : > { %871 = vmatpush1.bf16.msra.mxu1 %v4282_v12  ;;  %799 = vmatprep.subr.bf16.mxu0 %v4283_v13  ;;  %v4312_v32 = vld [vmem:[%s4956_s29 + $0x8] ss:$24 sps:$4 sm:$0xff]   ;;  %v4322_v38 = vld [vmem:[%s4956_s29 + $0x134] ss:$24 sps:$4 sm:$0xff]   ;;  %v5012_v39 = vld [vmem:[%s4988_s9 + $0x124] ss:$24 sps:$4 sm:$0xff]  }
  0x1f   : > { %872 = vmatprep.subr.bf16.mxu1 %v4285_v14  ;;  %v4314_v36 = vld [vmem:[%s4956_s29 + $0x160] ss:$24 sps:$4 sm:$0xff]   ;;  %v5007_v37 = vld [vmem:[%s4988_s9 + $0x150] ss:$24 sps:$4 sm:$0xff]   ;;  %v4329_v42 = vld [vmem:[%s4956_s29 + $0x104] ss:$24 sps:$4 sm:$0xff]  }
  0x20   : > { %v4320_v40 = vld [vmem:[%s4956_s29 + $0x130] ss:$24 sps:$4 sm:$0xff]   ;;  %v5018_v41 = vld [vmem:[%s4988_s9 + $0x120] ss:$24 sps:$4 sm:$0xff]   ;;  %v5024_v43 = vld [vmem:[%s4988_s9 + $0xf4] ss:$24 sps:$4 sm:$0xff]  }
  0x21   : > { %800 = vmatpush1.bf16.msra.mxu0 %v4287_v15  ;;  %v4327_v45 = vld [vmem:[%s4956_s29 + $0x100] ss:$24 sps:$4 sm:$0xff]   ;;  %v5035_v46 = vld [vmem:[%s4988_s9 + $0xf0] ss:$24 sps:$4 sm:$0xff]   ;;  %v4335_v47 = vld [vmem:[%s4956_s29 + $0xd4] ss:$24 sps:$4 sm:$0xff]  }
  0x22   : > { %873 = vmatpush1.bf16.msra.mxu1 %v4288_v16  ;;  %801 = vmatprep.subr.bf16.mxu0 %v4289_v17  ;;  %v5041_v48 = vld [vmem:[%s4988_s9 + $0xc4] ss:$24 sps:$4 sm:$0xff]   ;;  %v4333_v49 = vld [vmem:[%s4956_s29 + $0xd0] ss:$24 sps:$4 sm:$0xff]   ;;  %v5048_v50 = vld [vmem:[%s4988_s9 + $0xc0] ss:$24 sps:$4 sm:$0xff]  }
  0x23   : > { %874 = vmatprep.subr.bf16.mxu1 %v4291_v18  ;;  %v4342_v51 = vld [vmem:[%s4956_s29 + $0xa4] ss:$24 sps:$4 sm:$0xff]   ;;  %v5053_v52 = vld [vmem:[%s4988_s9 + $0x94] ss:$24 sps:$4 sm:$0xff]   ;;  %v4340_v54 = vld [vmem:[%s4956_s29 + $0xa0] ss:$24 sps:$4 sm:$0xff]  }
  0x24   : > { %v5064_v55 = vld [vmem:[%s4988_s9 + $0x90] ss:$24 sps:$4 sm:$0xff]   ;;  %v4348_v56 = vld [vmem:[%s4956_s29 + $0x74] ss:$24 sps:$4 sm:$0xff]   ;;  %v5070_v57 = vld [vmem:[%s4988_s9 + $0x64] ss:$24 sps:$4 sm:$0xff]  }
  0x25   : > { %802 = vmatpush1.bf16.msra.mxu0 %v4293_v19  ;;  %v4346_v58 = vld [vmem:[%s4956_s29 + $0x70] ss:$24 sps:$4 sm:$0xff]   ;;  %v5077_v59 = vld [vmem:[%s4988_s9 + $0x60] ss:$24 sps:$4 sm:$0xff]   ;;  %v4355_v60 = vld [vmem:[%s4956_s29 + $0x44] ss:$24 sps:$4 sm:$0xff]  }
  0x26   : > { %875 = vmatpush1.bf16.msra.mxu1 %v4294_v20  ;;  %803 = vmatprep.subr.bf16.mxu0 %v4295_v21  ;;  %v5082_v61 = vld [vmem:[%s4988_s9 + $0x34] ss:$24 sps:$4 sm:$0xff]   ;;  %v4353_v63 = vld [vmem:[%s4956_s29 + $0x40] ss:$24 sps:$4 sm:$0xff]   ;;  %v5093_v1 = vld [vmem:[%s4988_s9 + $0x30] ss:$24 sps:$4 sm:$0xff]  }
  0x27   : > { %876 = vmatprep.subr.bf16.mxu1 %v4297_v22  ;;  %v4361_v2 = vld [vmem:[%s4956_s29 + $0x14] ss:$24 sps:$4 sm:$0xff]   ;;  %v5099_v3 = vld [vmem:[%s4988_s9 + $0x4] ss:$24 sps:$4 sm:$0xff]   ;;  %v4359_v4 = vld [vmem:[%s4956_s29 + $0x10] ss:$24 sps:$4 sm:$0xff]  }
  0x28   : > { %v5106_v5 = vld [vmem:[%s4988_s9] ss:$24 sps:$4 sm:$0xff]   ;;  %v5109_v6 = vld [vmem:[%s4988_s9 + $0x2d4] ss:$24 sps:$4 sm:$0xff]   ;;  %v7014_v8 = vmov 0.0|0.0   ;;  %s4172_s28 = smul.u32 24, %s5577_s27 }
  0x29   : > { %804 = vmatpush1.bf16.msra.mxu0 %v4299_v23  ;;  %v5113_v7 = vld [vmem:[%s4988_s9 + $0x15c] ss:$24 sps:$4 sm:$0xff]   ;;  %v5118_v9 = vld [vmem:[%s4988_s9 + $0x2d0] ss:$24 sps:$4 sm:$0xff]   ;;  %v5130_v12 = vld [vmem:[%s4988_s9 + $0x12c] ss:$24 sps:$4 sm:$0xff]  }
  0x2a   : > { %877 = vmatpush1.bf16.msra.mxu1 %v4300_v24  ;;  %805 = vmatprep.subr.bf16.mxu0 %v4301_v25  ;;  %v5121_v10 = vld [vmem:[%s4988_s9 + $0x158] ss:$24 sps:$4 sm:$0xff]   ;;  %v5125_v11 = vld [vmem:[%s4988_s9 + $0x2a4] ss:$24 sps:$4 sm:$0xff]   ;;  %v5139_v14 = vld [vmem:[%s4988_s9 + $0x128] ss:$24 sps:$4 sm:$0xff]  }
  0x2b   : > { %878 = vmatprep.subr.bf16.mxu1 %v4303_v26  ;;  %v5134_v13 = vld [vmem:[%s4988_s9 + $0x2a0] ss:$24 sps:$4 sm:$0xff]   ;;  %v5142_v15 = vld [vmem:[%s4988_s9 + $0x274] ss:$24 sps:$4 sm:$0xff]   ;;  %v5151_v17 = vld [vmem:[%s4988_s9 + $0x270] ss:$24 sps:$4 sm:$0xff]  }
  0x2c   : > { %v5147_v16 = vld [vmem:[%s4988_s9 + $0xfc] ss:$24 sps:$4 sm:$0xff]   ;;  %v5154_v18 = vld [vmem:[%s4988_s9 + $0xf8] ss:$24 sps:$4 sm:$0xff]   ;;  %v5164_v20 = vld [vmem:[%s4988_s9 + $0xcc] ss:$24 sps:$4 sm:$0xff]  }
  0x2d   : > { %806 = vmatpush1.bf16.msra.mxu0 %v4305_v27  ;;  %v5159_v19 = vld [vmem:[%s4988_s9 + $0x244] ss:$24 sps:$4 sm:$0xff]   ;;  %v5168_v21 = vld [vmem:[%s4988_s9 + $0x240] ss:$24 sps:$4 sm:$0xff]   ;;  %v5176_v23 = vld [vmem:[%s4988_s9 + $0x214] ss:$24 sps:$4 sm:$0xff]  }
  0x2e   : > { %879 = vmatpush1.bf16.msra.mxu1 %v4306_v28  ;;  %807 = vmatprep.subr.bf16.mxu0 %v4307_v29  ;;  %v5173_v22 = vld [vmem:[%s4988_s9 + $0xc8] ss:$24 sps:$4 sm:$0xff]   ;;  %v5181_v24 = vld [vmem:[%s4988_s9 + $0x9c] ss:$24 sps:$4 sm:$0xff]   ;;  %v5188_v26 = vld [vmem:[%s4988_s9 + $0x98] ss:$24 sps:$4 sm:$0xff]  }
  0x2f   : > { %880 = vmatprep.subr.bf16.mxu1 %v4309_v30  ;;  %v5185_v25 = vld [vmem:[%s4988_s9 + $0x210] ss:$24 sps:$4 sm:$0xff]   ;;  %v5193_v27 = vld [vmem:[%s4988_s9 + $0x1e4] ss:$24 sps:$4 sm:$0xff]   ;;  %v5202_v29 = vld [vmem:[%s4988_s9 + $0x1e0] ss:$24 sps:$4 sm:$0xff]  }
  0x30   : > { %v5198_v28 = vld [vmem:[%s4988_s9 + $0x6c] ss:$24 sps:$4 sm:$0xff]   ;;  %v5207_v30 = vld [vmem:[%s4988_s9 + $0x68] ss:$24 sps:$4 sm:$0xff]   ;;  %s5580_s29 = scalar_lea.vmem [#allocation2], %s4172_s28  ;;  %s3873_s30 = sshll.u32 %s4950_s25, 1 }
  0x31   : > { %808 = vmatpush1.bf16.msra.mxu0 %v4311_v31  ;;  %v5210_v31 = vld [vmem:[%s4988_s9 + $0x1b4] ss:$24 sps:$4 sm:$0xff]   ;;  %s405_s10 = scalar_lea.vmem %s7011_s4, %s3873_s30  ;;  %s2020_s12 = scalar_lea.vmem [#allocation3], %s4174_s11 }
  0x32   : > { %881 = vmatpush1.bf16.msra.mxu1 %v4312_v32  ;;  %939 = vmatprep.subr.bf16.mxu0 %v4316_v33  ;;  %v5215_v32 = vld [vmem:[%s4988_s9 + $0x3c] ss:$24 sps:$4 sm:$0xff]   ;;  %v5219_v33 = vld [vmem:[%s4988_s9 + $0x1b0] ss:$24 sps:$4 sm:$0xff]   ;;  %s5852_s13 = scalar_select %p1228_p5, 1, 6 }
  0x33   : > { %1826 = vmatprep.subr.bf16.mxu1 %v4998_v34  ;;  %s6130_s18 = scalar_select %p1228_p5, 2, 5 }
  0x34   : > { %826 = vmatmul.mubr.bf16.vlgmr.msra.gmra.mxu0 %v5003_v35  ;;  %s4175_s14 = smul.u32 24, %s5852_s13  ;;  %s4177_s16 = sshll.u32 %s5852_s13, 3 }
  0x35   : > { %899 = vmatmul.mubr.bf16.vlgmr.msra.gmra.mxu1 %v5003_v35  ;;  %940 = vmatpush1.bf16.msra.mxu0 %v4314_v36  ;;  %v5227_v36 = vld [vmem:[%s4988_s9 + $0x184] ss:$24 sps:$4 sm:$0xff]   ;;  %s2220_s17 = scalar_lea.vmem [#allocation3], %s4177_s16  ;;  %s4178_s19 = smul.u32 24, %s6130_s18 }
  0x36   : > { %1827 = vmatpush1.bf16.msra.mxu1 %v5007_v37  ;;  %941 = vmatprep.subr.bf16.mxu0 %v4322_v38  ;;  %v5232_v38 = vld [vmem:[%s4988_s9 + $0xc] ss:$24 sps:$4 sm:$0xff]   ;;  %s2025_s15 = scalar_lea.vmem [#allocation2], %s4175_s14 }
  0x37   : > { %1828 = vmatprep.subr.bf16.mxu1 %v5012_v39  ;;  %835 = vmatprep.mubr.bf16.mxu0 %v4889_v0  ;;  %s2225_s20 = scalar_lea.vmem [#allocation2], %s4178_s19 }
  0x38   : > { %908 = vmatprep.mubr.bf16.mxu1 %v4889_v0  ;;  %s6255_s28 = scalar_select %p1228_p5, 3, 4 }
  0x39   : > { %942 = vmatpush1.bf16.msra.mxu0 %v4320_v40  ;;  %v5239_v40 = vld [vmem:[%s4988_s9 + $0x8] ss:$24 sps:$4 sm:$0xff]   ;;  %s6917_s19 = scalar_select %p1228_p5, 6, 1 }
  0x3a   : > { %1829 = vmatpush1.bf16.msra.mxu1 %v5018_v41  ;;  %943 = vmatprep.subr.bf16.mxu0 %v4329_v42  ;;  %v5244_v42 = vld [vmem:[%s4988_s9 + $0x2dc] ss:$24 sps:$4 sm:$0xff]   ;;  %s4183_s7 = sshll.u32 %s6255_s28, 3 }
  0x3b   : > { %1830 = vmatprep.subr.bf16.mxu1 %v5024_v43  ;;  %s2620_s8 = scalar_lea.vmem [#allocation3], %s4183_s7 }
  0x3c   : > { %836 = vmatmul.mubr.bf16.gmra.mxu0 %v5031_v44 }
  0x3d   : > { %909 = vmatmul.mubr.bf16.gmra.mxu1 %v5031_v44  ;;  %944 = vmatpush1.bf16.msra.mxu0 %v4327_v45  ;;  %v5255_v45 = vld [vmem:[%s4988_s9 + $0x2d8] ss:$24 sps:$4 sm:$0xff]  }
  0x3e   : > { %1831 = vmatpush1.bf16.msra.mxu1 %v5035_v46  ;;  %945 = vmatprep.subr.bf16.mxu0 %v4335_v47  ;;  %v5258_v47 = vld [vmem:[%s4988_s9 + $0x160] ss:$24 sps:$4 sm:$0xff]  }
  0x3f   : > { %1832 = vmatprep.subr.bf16.mxu1 %v5041_v48  ;;  %845 = vmatprep.mubr.bf16.mxu0 %v4889_v0  ;;  %7218 = vst [vmem:[#allocation5_spill] sm:$0xff] %v5258_v47 }
  0x40   : > { %918 = vmatprep.mubr.bf16.mxu1 %v4889_v0 }
  0x41   : > { %946 = vmatpush1.bf16.msra.mxu0 %v4333_v49  ;;  %v5263_v49 = vld [vmem:[%s4988_s9 + $0x2ac] ss:$24 sps:$4 sm:$0xff]  }
  0x42   : > { %1833 = vmatpush1.bf16.msra.mxu1 %v5048_v50  ;;  %947 = vmatprep.subr.bf16.mxu0 %v4342_v51  ;;  %v5266_v51 = vld [vmem:[%s4988_s9 + $0x134] ss:$24 sps:$4 sm:$0xff]  }
  0x43   : > { %1834 = vmatprep.subr.bf16.mxu1 %v5053_v52  ;;  %7219 = vst [vmem:[#allocation6_spill] sm:$0xff] %v5266_v51 }
  0x44   : > { %846 = vmatmul.mubr.bf16.gmra.mxu0 %v5060_v53 }
  0x45   : > { %919 = vmatmul.mubr.bf16.gmra.mxu1 %v5060_v53  ;;  %948 = vmatpush1.bf16.msra.mxu0 %v4340_v54  ;;  %v5275_v54 = vld [vmem:[%s4988_s9 + $0x130] ss:$24 sps:$4 sm:$0xff]  }
  0x46   : > { %1835 = vmatpush1.bf16.msra.mxu1 %v5064_v55  ;;  %949 = vmatprep.subr.bf16.mxu0 %v4348_v56  ;;  %7220 = vst [vmem:[#allocation7_spill] sm:$0xff] %v5275_v54  ;;  %v5280_v56 = vld [vmem:[%s4988_s9 + $0x27c] ss:$24 sps:$4 sm:$0xff]  }
  0x47   : > { %1836 = vmatprep.subr.bf16.mxu1 %v5070_v57  ;;  %855 = vmatprep.mubr.bf16.mxu0 %v4889_v0 }
  0x48   : > { %928 = vmatprep.mubr.bf16.mxu1 %v4889_v0 }
  0x49   : > { %950 = vmatpush1.bf16.msra.mxu0 %v4346_v58  ;;  %v5283_v58 = vld [vmem:[%s4988_s9 + $0x104] ss:$24 sps:$4 sm:$0xff]  }
  0x4a   : > { %1837 = vmatpush1.bf16.msra.mxu1 %v5077_v59  ;;  %951 = vmatprep.subr.bf16.mxu0 %v4355_v60  ;;  %7221 = vst [vmem:[#allocation8_spill] sm:$0xff] %v5283_v58  ;;  %v5289_v60 = vld [vmem:[%s4988_s9 + $0x278] ss:$24 sps:$4 sm:$0xff]  }
  0x4b   : > { %1838 = vmatprep.subr.bf16.mxu1 %v5082_v61 }
  0x4c   : > { %856 = vmatmul.mubr.bf16.gmra.mxu0 %v5089_v62 }
  0x4d   : > { %929 = vmatmul.mubr.bf16.gmra.mxu1 %v5089_v62  ;;  %952 = vmatpush1.bf16.msra.mxu0 %v4353_v63  ;;  %v5297_v63 = vld [vmem:[%s4988_s9 + $0x24c] ss:$24 sps:$4 sm:$0xff]  }
  0x4e   : > { %1839 = vmatpush1.bf16.msra.mxu1 %v5093_v1  ;;  %953 = vmatprep.subr.bf16.mxu0 %v4361_v2  ;;  %v5300_v2 = vld [vmem:[%s4988_s9 + $0xd4] ss:$24 sps:$4 sm:$0xff]  }
  0x4f   : > { %1840 = vmatprep.subr.bf16.mxu1 %v5099_v3  ;;  %971 = vmatprep.mubr.bf16.mxu0 %v4889_v0  ;;  %7223 = vst [vmem:[#allocation10_spill] sm:$0xff] %v5300_v2 }
  0x50   : > { %1858 = vmatprep.mubr.bf16.mxu1 %v7014_v8 }
  0x51   : > { %954 = vmatpush1.bf16.msra.mxu0 %v4359_v4  ;;  %v5305_v4 = vld [vmem:[%s4988_s9 + $0x248] ss:$24 sps:$4 sm:$0xff]  }
  0x52   : > { %1841 = vmatpush1.bf16.msra.mxu1 %v5106_v5  ;;  %1867 = vmatprep.subr.bf16.mxu0 %v5113_v7  ;;  %7224 = vst [vmem:[#allocation11_spill] sm:$0xff] %v5305_v4 }
  0x53   : > { %1842 = vmatprep.subr.bf16.mxu1 %v5109_v6 }
  0x54   : > { %972 = vmatmul.mubr.bf16.vlgmr.msra.gmra.mxu0 %v5003_v35  ;;  %v5222_v35 = vld [vmem:[%s4988_s9 + $0x38] ss:$24 sps:$4 sm:$0xff]  }
  0x55   : > { %1868 = vmatpush1.bf16.msra.mxu0 %v5121_v10  ;;  %981 = vmatprep.mubr.bf16.mxu0 %v4889_v0 }
  0x56   : > { %1843 = vmatpush2.bf16.msra.mxu1 %v5118_v9  ;;  %1869 = vmatprep.subr.bf16.mxu0 %v5130_v12 }
  0x57   : > { %1844 = vmatprep.subr.bf16.mxu1 %v5125_v11 }
  0x59   : > { %1870 = vmatpush1.bf16.msra.mxu0 %v5139_v14 }
  0x5a   : > { %1845 = vmatpush2.bf16.msra.mxu1 %v5134_v13  ;;  %1871 = vmatprep.subr.bf16.mxu0 %v5147_v16 }
  0x5b   : > { %1846 = vmatprep.subr.bf16.mxu1 %v5142_v15 }
  0x5c   : > { %982 = vmatmul.mubr.bf16.gmra.mxu0 %v5031_v44  ;;  %v5249_v44 = vld [vmem:[%s4988_s9 + $0x164] ss:$24 sps:$4 sm:$0xff]  }
  0x5d   : > { %1872 = vmatpush1.bf16.msra.mxu0 %v5154_v18  ;;  %991 = vmatprep.mubr.bf16.mxu0 %v4889_v0 }
  0x5e   : > { %1847 = vmatpush2.bf16.msra.mxu1 %v5151_v17  ;;  %1873 = vmatprep.subr.bf16.mxu0 %v5164_v20 }
  0x5f   : > { %1848 = vmatprep.subr.bf16.mxu1 %v5159_v19 }
  0x61   : > { %1874 = vmatpush1.bf16.msra.mxu0 %v5173_v22 }
  0x62   : > { %1849 = vmatpush2.bf16.msra.mxu1 %v5168_v21  ;;  %1875 = vmatprep.subr.bf16.mxu0 %v5181_v24 }
  0x63   : > { %1850 = vmatprep.subr.bf16.mxu1 %v5176_v23 }
  0x64   : > { %992 = vmatmul.mubr.bf16.gmra.mxu0 %v5060_v53  ;;  %v5272_v53 = vld [vmem:[%s4988_s9 + $0x2a8] ss:$24 sps:$4 sm:$0xff]  }
  0x65   : > { %1876 = vmatpush1.bf16.msra.mxu0 %v5188_v26  ;;  %1001 = vmatprep.mubr.bf16.mxu0 %v4889_v0  ;;  %v5236_v0 = vld [vmem:[%s4988_s9 + $0x180] ss:$24 sps:$4 sm:$0xff]  }
  0x66   : > { %1851 = vmatpush2.bf16.msra.mxu1 %v5185_v25  ;;  %1877 = vmatprep.subr.bf16.mxu0 %v5198_v28 }
  0x67   : > { %1852 = vmatprep.subr.bf16.mxu1 %v5193_v27 }
  0x69   : > { %1878 = vmatpush1.bf16.msra.mxu0 %v5207_v30 }
  0x6a   : > { %1853 = vmatpush2.bf16.msra.mxu1 %v5202_v29  ;;  %1879 = vmatprep.subr.bf16.mxu0 %v5215_v32 }
  0x6b   : > { %1854 = vmatprep.subr.bf16.mxu1 %v5210_v31 }
  0x6c   : > { %1002 = vmatmul.mubr.bf16.gmra.mxu0 %v5089_v62  ;;  %v5292_v62 = vld [vmem:[%s4988_s9 + $0x100] ss:$24 sps:$4 sm:$0xff]  }
  0x6d   : > { %1880 = vmatpush1.bf16.msra.mxu0 %v5222_v35  ;;  %1899 = vmatprep.mubr.bf16.mxu0 %v7014_v8  ;;  %7222 = vst [vmem:[#allocation9_spill] sm:$0xff] %v5292_v62 }
  0x6e   : > { %1855 = vmatpush2.bf16.msra.mxu1 %v5219_v33  ;;  %1881 = vmatprep.subr.bf16.mxu0 %v5232_v38 }
  0x6f   : > { %1856 = vmatprep.subr.bf16.mxu1 %v5227_v36 }
  0x71   : > { %1882 = vmatpush1.bf16.msra.mxu0 %v5239_v40 }
  0x72   : > { %1857 = vmatpush2.bf16.msra.mxu1 %v5236_v0  ;;  %1883 = vmatprep.subr.bf16.mxu0 %v5244_v42 }
  0x73   : > { %1908 = vmatprep.subr.bf16.mxu1 %v5249_v44 }
  0x75   : > { %1859 = vmatmul.mubr.bf16.vlgmr.msra.gmra.mxu1 %v7014_v8  ;;  %1884 = vmatpush2.bf16.msra.mxu0 %v5255_v45 }
  0x76   : > { %1909 = vmatpush1.bf16.msra.mxu1 %v5258_v47  ;;  %1885 = vmatprep.subr.bf16.mxu0 %v5263_v49  ;;  %v5332_v47 = vld [vmem:[%s4988_s9 + $0x74] ss:$24 sps:$4 sm:$0xff]  }
  0x77   : > { %1910 = vmatprep.subr.bf16.mxu1 %v5266_v51  ;;  %1940 = vmatprep.mubr.bf16.mxu1 %v7014_v8  ;;  %v5308_v8 = vld [vmem:[%s4988_s9 + $0xd0] ss:$24 sps:$4 sm:$0xff]   ;;  %v5324_v51 = vld [vmem:[%s4988_s9 + $0xa0] ss:$24 sps:$4 sm:$0xff]   ;;  %7231 = vst [vmem:[#allocation18_spill] sm:$0xff] %v5332_v47 }
  0x78   : > { %7225 = vst [vmem:[#allocation12_spill] sm:$0xff] %v5308_v8  ;;  %7229 = vst [vmem:[#allocation16_spill] sm:$0xff] %v5324_v51 }
  0x79   : > { %1886 = vmatpush2.bf16.msra.mxu0 %v5272_v53 }
  0x7a   : > { %1911 = vmatpush1.bf16.msra.mxu1 %v5275_v54  ;;  %1887 = vmatprep.subr.bf16.mxu0 %v5280_v56  ;;  %v5316_v54 = vld [vmem:[%s4988_s9 + $0xa4] ss:$24 sps:$4 sm:$0xff]  }
  0x7b   : > { %1912 = vmatprep.subr.bf16.mxu1 %v5283_v58  ;;  %v5313_v58 = vld [vmem:[%s4988_s9 + $0x21c] ss:$24 sps:$4 sm:$0xff]   ;;  %7227 = vst [vmem:[#allocation14_spill] sm:$0xff] %v5316_v54 }
  0x7c   : > { %7226 = vst [vmem:[#allocation13_spill] sm:$0xff] %v5313_v58 }
  0x7d   : > { %1888 = vmatpush2.bf16.msra.mxu0 %v5289_v60 }
  0x7e   : > { %1913 = vmatpush1.bf16.msra.mxu1 %v5292_v62  ;;  %1889 = vmatprep.subr.bf16.mxu0 %v5297_v63  ;;  %v5321_v62 = vld [vmem:[%s4988_s9 + $0x218] ss:$24 sps:$4 sm:$0xff]  }
  0x7f   : > { %1914 = vmatprep.subr.bf16.mxu1 %v5300_v2  ;;  %7228 = vst [vmem:[#allocation15_spill] sm:$0xff] %v5321_v62  ;;  %v5329_v2 = vld [vmem:[%s4988_s9 + $0x1ec] ss:$24 sps:$4 sm:$0xff]  }
  0x80   : > { %7230 = vst [vmem:[#allocation17_spill] sm:$0xff] %v5329_v2 }
  0x81   : > { %1890 = vmatpush2.bf16.msra.mxu0 %v5305_v4  ;;  %v5340_v4 = vld [vmem:[%s4988_s9 + $0x70] ss:$24 sps:$4 sm:$0xff]  }
  0x82   : > { %1915 = vmatpush1.bf16.msra.mxu1 %v5308_v8  ;;  %1891 = vmatprep.subr.bf16.mxu0 %v5313_v58  ;;  %v5337_v8 = vld [vmem:[%s4988_s9 + $0x1e8] ss:$24 sps:$4 sm:$0xff]   ;;  %7233 = vst [vmem:[#allocation20_spill] sm:$0xff] %v5340_v4  ;;  %v5348_v58 = vld [vmem:[%s4988_s9 + $0x44] ss:$24 sps:$4 sm:$0xff]  }
  0x83   : > { %1916 = vmatprep.subr.bf16.mxu1 %v5316_v54  ;;  %7232 = vst [vmem:[#allocation19_spill] sm:$0xff] %v5337_v8  ;;  %v5345_v54 = vld [vmem:[%s4988_s9 + $0x1bc] ss:$24 sps:$4 sm:$0xff]   ;;  %7234 = vst [vmem:[#allocation21_spill] sm:$0xff] %v5348_v58 }
  0x85   : > { %1892 = vmatpush2.bf16.msra.mxu0 %v5321_v62  ;;  %v5356_v62 = vld [vmem:[%s4988_s9 + $0x40] ss:$24 sps:$4 sm:$0xff]  }
  0x86   : > { %1917 = vmatpush1.bf16.msra.mxu1 %v5324_v51  ;;  %1893 = vmatprep.subr.bf16.mxu0 %v5329_v2  ;;  %v5353_v51 = vld [vmem:[%s4988_s9 + $0x1b8] ss:$24 sps:$4 sm:$0xff]   ;;  %7236 = vst [vmem:[#allocation23_spill] sm:$0xff] %v5356_v62  ;;  %v5364_v2 = vld [vmem:[%s4988_s9 + $0x14] ss:$24 sps:$4 sm:$0xff]  }
  0x87   : > { %1918 = vmatprep.subr.bf16.mxu1 %v5332_v47  ;;  %7235 = vst [vmem:[#allocation22_spill] sm:$0xff] %v5353_v51  ;;  %v5361_v47 = vld [vmem:[%s4988_s9 + $0x18c] ss:$24 sps:$4 sm:$0xff]   ;;  %7238 = vst [vmem:[#allocation25_spill] sm:$0xff] %v5364_v2 }
  0x88   : > { %7237 = vst [vmem:[#allocation24_spill] sm:$0xff] %v5361_v47 }
  0x89   : > { %1894 = vmatpush2.bf16.msra.mxu0 %v5337_v8  ;;  %v5372_v8 = vld [vmem:[%s4988_s9 + $0x10] ss:$24 sps:$4 sm:$0xff]  }
  0x8a   : > { %1919 = vmatpush1.bf16.msra.mxu1 %v5340_v4  ;;  %1895 = vmatprep.subr.bf16.mxu0 %v5345_v54  ;;  %v5369_v4 = vld [vmem:[%s4988_s9 + $0x188] ss:$24 sps:$4 sm:$0xff]   ;;  %7239 = vst [vmem:[#allocation26_spill] sm:$0xff] %v5372_v8 }
  0x8b   : > { %1920 = vmatprep.subr.bf16.mxu1 %v5348_v58  ;;  %v5377_v58 = vld [vmem:[%s4988_s9 + $0x2e4] ss:$24 sps:$4 sm:$0xff]  }
  0x8c   : > { %7240 = vst [vmem:[#allocation27_spill] sm:$0xff] %v5377_v58 }
  0x8d   : > { %1896 = vmatpush2.bf16.msra.mxu0 %v5353_v51  ;;  %v5382_v51 = vld [vmem:[%s4988_s9 + $0x2e0] ss:$24 sps:$4 sm:$0xff]  }
  0x8e   : > { %1921 = vmatpush1.bf16.msra.mxu1 %v5356_v62  ;;  %1897 = vmatprep.subr.bf16.mxu0 %v5361_v47  ;;  %7241 = vst [vmem:[#allocation28_spill] sm:$0xff] %v5382_v51  ;;  %v5386_v62 = vld [vmem:[%s4988_s9 + $0x2b4] ss:$24 sps:$4 sm:$0xff]   ;;  %v7242_v47 = vmov 0.0|0.0  }
  0x8f   : > { %1922 = vmatprep.subr.bf16.mxu1 %v5364_v2  ;;  %v5392_v2 = vld [vmem:[%s4988_s9 + $0x2b0] ss:$24 sps:$4 sm:$0xff]  }
  0x91   : > { %1898 = vmatpush2.bf16.msra.mxu0 %v5369_v4 }
  0x92   : > { %1923 = vmatpush1.bf16.msra.mxu1 %v5372_v8  ;;  %2037 = vmatprep.subr.bf16.mxu0 %v4998_v34  ;;  %v5397_v8 = vld [vmem:[%s4988_s9 + $0x284] ss:$24 sps:$4 sm:$0xff]  }
  0x93   : > { %1924 = vmatprep.subr.bf16.mxu1 %v5377_v58  ;;  %v5402_v58 = vld [vmem:[%s4988_s9 + $0x280] ss:$24 sps:$4 sm:$0xff]  }
  0x94   : > { %1900 = vmatmul.mubr.bf16.vlgmr.msra.gmra.mxu0 %v7242_v47 }
  0x95   : > { %2038 = vmatpush1.bf16.msra.mxu0 %v5007_v37  ;;  %v5412_v37 = vld [vmem:[%s4988_s9 + $0x250] ss:$24 sps:$4 sm:$0xff]  }
  0x96   : > { %1925 = vmatpush2.bf16.msra.mxu1 %v5382_v51  ;;  %2039 = vmatprep.subr.bf16.mxu0 %v5012_v39  ;;  %v5407_v51 = vld [vmem:[%s4988_s9 + $0x254] ss:$24 sps:$4 sm:$0xff]   ;;  %v5417_v39 = vld [vmem:[%s4988_s9 + $0x224] ss:$24 sps:$4 sm:$0xff]  }
  0x97   : > { %1926 = vmatprep.subr.bf16.mxu1 %v5386_v62 }
  0x99   : > { %2040 = vmatpush1.bf16.msra.mxu0 %v5018_v41  ;;  %v5422_v41 = vld [vmem:[%s4988_s9 + $0x220] ss:$24 sps:$4 sm:$0xff]  }
  0x9a   : > { %1927 = vmatpush2.bf16.msra.mxu1 %v5392_v2  ;;  %2041 = vmatprep.subr.bf16.mxu0 %v5024_v43  ;;  %v5427_v43 = vld [vmem:[%s4988_s9 + $0x1f4] ss:$24 sps:$4 sm:$0xff]  }
  0x9b   : > { %1928 = vmatprep.subr.bf16.mxu1 %v5397_v8 }
  0x9d   : > { %2042 = vmatpush1.bf16.msra.mxu0 %v5035_v46  ;;  %v5432_v46 = vld [vmem:[%s4988_s9 + $0x1f0] ss:$24 sps:$4 sm:$0xff]  }
  0x9e   : > { %1929 = vmatpush2.bf16.msra.mxu1 %v5402_v58  ;;  %2043 = vmatprep.subr.bf16.mxu0 %v5041_v48  ;;  %v5437_v48 = vld [vmem:[%s4988_s9 + $0x1c4] ss:$24 sps:$4 sm:$0xff]  }
  0x9f   : > { %1930 = vmatprep.subr.bf16.mxu1 %v5407_v51 }
  0xa1   : > { %2044 = vmatpush1.bf16.msra.mxu0 %v5048_v50  ;;  %v5442_v50 = vld [vmem:[%s4988_s9 + $0x1c0] ss:$24 sps:$4 sm:$0xff]  }
  0xa2   : > { %1931 = vmatpush2.bf16.msra.mxu1 %v5412_v37  ;;  %2045 = vmatprep.subr.bf16.mxu0 %v5053_v52  ;;  %v5447_v52 = vld [vmem:[%s4988_s9 + $0x194] ss:$24 sps:$4 sm:$0xff]  }
  0xa3   : > { %1932 = vmatprep.subr.bf16.mxu1 %v5417_v39 }
  0xa5   : > { %2046 = vmatpush1.bf16.msra.mxu0 %v5064_v55  ;;  %v5452_v55 = vld [vmem:[%s4988_s9 + $0x190] ss:$24 sps:$4 sm:$0xff]  }
  0xa6   : > { %1933 = vmatpush2.bf16.msra.mxu1 %v5422_v41  ;;  %2047 = vmatprep.subr.bf16.mxu0 %v5070_v57  ;;  %v7243_v57 = vld [vmem:[#allocation11_spill] sm:$0xff] }
  0xa7   : > { %1934 = vmatprep.subr.bf16.mxu1 %v5427_v43 }
  0xa9   : > { %2048 = vmatpush1.bf16.msra.mxu0 %v5077_v59  ;;  %v7244_v59 = vld [vmem:[#allocation13_spill] sm:$0xff] }
  0xaa   : > { %1935 = vmatpush2.bf16.msra.mxu1 %v5432_v46  ;;  %2049 = vmatprep.subr.bf16.mxu0 %v5082_v61  ;;  %v499_v61 = vlaneseq }
  0xab   : > { %1936 = vmatprep.subr.bf16.mxu1 %v5437_v48 }
  0xad   : > { %2050 = vmatpush1.bf16.msra.mxu0 %v5093_v1  ;;  %v7245_v1 = vld [vmem:[#allocation15_spill] sm:$0xff] }
  0xae   : > { %1937 = vmatpush2.bf16.msra.mxu1 %v5442_v50  ;;  %2051 = vmatprep.subr.bf16.mxu0 %v5099_v3  ;;  %v7246_v3 = vld [vmem:[#allocation17_spill] sm:$0xff] }
  0xaf   : > { %1938 = vmatprep.subr.bf16.mxu1 %v5447_v52 }
  0xb1   : > { %2052 = vmatpush1.bf16.msra.mxu0 %v5106_v5  ;;  %v5505_v5 = vshrl.u32 %v499_v61, 7 }
  0xb2   : > { %1939 = vmatpush2.bf16.msra.mxu1 %v5452_v55  ;;  %2053 = vmatprep.subr.bf16.mxu0 %v5109_v6  ;;  %v7247_v6 = vld [vmem:[#allocation19_spill] sm:$0xff] }
  0xb3   : > { %2078 = vmatprep.subr.bf16.mxu1 %v5113_v7  ;;  %v501_v7 = vsub.s32 0, %v5505_v5 }
  0xb5   : > { %1941 = vmatmul.mubr.bf16.vlgmr.msra.gmra.mxu1 %v7242_v47  ;;  %2054 = vmatpush2.bf16.msra.mxu0 %v5118_v9  ;;  %v509_v9 = vsub.s32 2, %v5505_v5 }
  0xb6   : > { %2079 = vmatpush1.bf16.msra.mxu1 %v5121_v10  ;;  %2055 = vmatprep.subr.bf16.mxu0 %v5125_v11  ;;  %v7248_v10 = vld [vmem:[#allocation22_spill] sm:$0xff]  ;;  %v5515_v11 = vld [vmem:[%s401_s26] sm:$0x3f]  ;;  %s4180_s26 = sshll.u32 %s6130_s18, 3 }
  0xb7   : > { %2080 = vmatprep.subr.bf16.mxu1 %v5130_v12  ;;  %v7249_v12 = vld [vmem:[#allocation24_spill] sm:$0xff]  ;;  %s2420_s27 = scalar_lea.vmem [#allocation3], %s4180_s26 }
  0xb9   : > { %2056 = vmatpush2.bf16.msra.mxu0 %v5134_v13  ;;  %v505_v13 = vsub.s32 1, %v5505_v5 }
  0xba   : > { %2081 = vmatpush1.bf16.msra.mxu1 %v5139_v14  ;;  %2057 = vmatprep.subr.bf16.mxu0 %v5142_v15  ;;  %v513_v14 = vsub.s32 3, %v5505_v5  ;;  %v5523_v15 = vrot.slane %v5515_v11, %v501_v7 }
  0xbb   : > { %2082 = vmatprep.subr.bf16.mxu1 %v5147_v16  ;;  %v5526_v16 = vrot.slane %v5515_v11, %v509_v9 }
  0xbd   : > { %2058 = vmatpush2.bf16.msra.mxu0 %v5151_v17  ;;  %v5533_v17 = vrot.slane %v5515_v11, %v505_v13 }
  0xbe   : > { %2083 = vmatpush1.bf16.msra.mxu1 %v5154_v18  ;;  %2059 = vmatprep.subr.bf16.mxu0 %v5159_v19  ;;  %v5536_v18 = vrot.slane %v5515_v11, %v513_v14 }
  0xbf   : > { %2084 = vmatprep.subr.bf16.mxu1 %v5164_v20 }
  0xc1   : > { %2060 = vmatpush2.bf16.msra.mxu0 %v5168_v21 }
  0xc2   : > { %2085 = vmatpush1.bf16.msra.mxu1 %v5173_v22  ;;  %2061 = vmatprep.subr.bf16.mxu0 %v5176_v23 }
  0xc3   : > { %2086 = vmatprep.subr.bf16.mxu1 %v5181_v24 }
  0xc5   : > { %2062 = vmatpush2.bf16.msra.mxu0 %v5185_v25 }
  0xc6   : > { %2087 = vmatpush1.bf16.msra.mxu1 %v5188_v26  ;;  %2063 = vmatprep.subr.bf16.mxu0 %v5193_v27 }
  0xc7   : > { %2088 = vmatprep.subr.bf16.mxu1 %v5198_v28 }
  0xc9   : > { %2064 = vmatpush2.bf16.msra.mxu0 %v5202_v29 }
  0xca   : > { %2089 = vmatpush1.bf16.msra.mxu1 %v5207_v30  ;;  %2065 = vmatprep.subr.bf16.mxu0 %v5210_v31 }
  0xcb   : > { %2090 = vmatprep.subr.bf16.mxu1 %v5215_v32 }
  0xcd   : > { %2066 = vmatpush2.bf16.msra.mxu0 %v5219_v33 }
  0xce   : > { %2091 = vmatpush1.bf16.msra.mxu1 %v5222_v35  ;;  %2067 = vmatprep.subr.bf16.mxu0 %v5227_v36 }
  0xcf   : > { %2092 = vmatprep.subr.bf16.mxu1 %v5232_v38 }
  0xd1   : > { %2068 = vmatpush2.bf16.msra.mxu0 %v5236_v0 }
  0xd2   : > { %2093 = vmatpush1.bf16.msra.mxu1 %v5239_v40  ;;  %2119 = vmatprep.subr.bf16.mxu0 %v5249_v44 }
  0xd3   : > { %2094 = vmatprep.subr.bf16.mxu1 %v5244_v42 }
  0xd6   : > { %2095 = vmatpush2.bf16.msra.mxu1 %v5255_v45 }
  0xd7   : > { %2096 = vmatprep.subr.bf16.mxu1 %v5263_v49 }
  0xda   : > { %2097 = vmatpush2.bf16.msra.mxu1 %v5272_v53 }
  0xdb   : > { %2098 = vmatprep.subr.bf16.mxu1 %v5280_v56 }
  0xde   : > { %2099 = vmatpush2.bf16.msra.mxu1 %v5289_v60 }
  0xdf   : > { %2100 = vmatprep.subr.bf16.mxu1 %v5297_v63 }
  0xe2   : > { %2101 = vmatpush2.bf16.msra.mxu1 %v7243_v57 }
  0xe3   : > { %2102 = vmatprep.subr.bf16.mxu1 %v7244_v59 }
  0xe6   : > { %2103 = vmatpush2.bf16.msra.mxu1 %v7245_v1 }
  0xe7   : > { %2104 = vmatprep.subr.bf16.mxu1 %v7246_v3 }
  0xea   : > { %2105 = vmatpush2.bf16.msra.mxu1 %v7247_v6 }
  0xeb   : > { %2106 = vmatprep.subr.bf16.mxu1 %v5345_v54 }
  0xee   : > { %2107 = vmatpush2.bf16.msra.mxu1 %v7248_v10 }
  0xef   : > { %2108 = vmatprep.subr.bf16.mxu1 %v7249_v12 }
  0xf2   : > { %2109 = vmatpush2.bf16.msra.mxu1 %v5369_v4 }
  0xf3   : > { %2237 = vmatprep.subr.bf16.mxu1 %v4998_v34 }
  0xf4   : > { %v827_v19 = vpop.f32.mrf.mxu0 }
  0xf5   : > { %v900_v20 = vpop.f32.mrf.mxu1  ;;  %v828_v21 = vadd.f32 %v827_v19, %v5523_v15 }
  0xf6   : > { %v901_v22 = vadd.f32 %v900_v20, %v5526_v16  ;;  %v829_v23 = vpop.f32.mrf.mxu0 }
  0xf7   : > { %v902_v24 = vpop.f32.mrf.mxu1  ;;  %v830_v25 = vadd.f32 %v829_v23, %v5533_v17 }
  0xf8   : > { %v903_v34 = vadd.f32 %v902_v24, %v5536_v18  ;;  %v831_v26 = vpop.f32.mrf.mxu0 }
  0xf9   : > { %v904_v27 = vpop.f32.mrf.mxu1  ;;  %v4147_v28 = vpack.c.bf16 %v830_v25, %v828_v21  ;;  %v832_v30 = vadd.f32 %v831_v26, %v5523_v15 }
  0xfa   : > { %v4148_v29 = vpack.c.bf16 %v903_v34, %v901_v22  ;;  %v833_v31 = vpop.f32.mrf.mxu0  ;;  %v905_v35 = vadd.f32 %v904_v27, %v5526_v16 }
  0xfb   : > { %v906_v32 = vpop.f32.mrf.mxu1  ;;  %1204 = vst [vmem:[#allocation2] sm:$0xff] %v4147_v28  ;;  %v834_v38 = vadd.f32 %v833_v31, %v5533_v17 }
  0xfc   : > { %1205 = vst [vmem:[#allocation2 + $0x8] sm:$0xff] %v4148_v29  ;;  %v907_v40 = vadd.f32 %v906_v32, %v5536_v18  ;;  %v837_v47 = vpop.f32.mrf.mxu0 }
  0xfd   : > { %v910_v61 = vpop.f32.mrf.mxu1  ;;  %v4150_v9 = vpack.c.bf16 %v834_v38, %v832_v30  ;;  %v838_v19 = vadd.f32 %v837_v47, %v5523_v15 }
  0xfe   : > { %v4151_v14 = vpack.c.bf16 %v907_v40, %v905_v35  ;;  %v911_v20 = vadd.f32 %v910_v61, %v5526_v16  ;;  %v839_v21 = vpop.f32.mrf.mxu0 }
  0xff   : > { %v912_v22 = vpop.f32.mrf.mxu1  ;;  %1207 = vst [vmem:[#allocation2 + $0x18] sm:$0xff] %v4150_v9  ;;  %v840_v23 = vadd.f32 %v839_v21, %v5533_v17 }
 0x100   : > { %1208 = vst [vmem:[#allocation2 + $0x20] sm:$0xff] %v4151_v14  ;;  %v913_v24 = vadd.f32 %v912_v22, %v5536_v18  ;;  %v841_v25 = vpop.f32.mrf.mxu0 }
 0x101   : > { %v914_v34 = vpop.f32.mrf.mxu1  ;;  %v4153_v26 = vpack.c.bf16 %v840_v23, %v838_v19  ;;  %v842_v28 = vadd.f32 %v841_v25, %v5523_v15 }
 0x102   : > { %v4154_v27 = vpack.c.bf16 %v913_v24, %v911_v20  ;;  %v915_v29 = vadd.f32 %v914_v34, %v5526_v16  ;;  %v843_v30 = vpop.f32.mrf.mxu0 }
 0x103   : > { %v916_v31 = vpop.f32.mrf.mxu1  ;;  %1210 = vst [vmem:[#allocation2 + $0x30] sm:$0xff] %v4153_v26  ;;  %v844_v32 = vadd.f32 %v843_v30, %v5533_v17 }
 0x104   : > { %1211 = vst [vmem:[#allocation2 + $0x38] sm:$0xff] %v4154_v27  ;;  %v917_v35 = vadd.f32 %v916_v31, %v5536_v18  ;;  %v847_v38 = vpop.f32.mrf.mxu0 }
 0x105   : > { %v920_v40 = vpop.f32.mrf.mxu1  ;;  %v4156_v47 = vpack.c.bf16 %v844_v32, %v842_v28  ;;  %v848_v9 = vadd.f32 %v847_v38, %v5523_v15  ;;  %v517_v38 = vsub.s32 4, %v5505_v5 }
 0x106   : > { %v4157_v61 = vpack.c.bf16 %v917_v35, %v915_v29  ;;  %v921_v14 = vadd.f32 %v920_v40, %v5526_v16  ;;  %v849_v19 = vpop.f32.mrf.mxu0 }
 0x107   : > { %v922_v20 = vpop.f32.mrf.mxu1  ;;  %1213 = vst [vmem:[#allocation2 + $0x48] sm:$0xff] %v4156_v47  ;;  %v850_v21 = vadd.f32 %v849_v19, %v5533_v17 }
 0x108   : > { %1214 = vst [vmem:[#allocation2 + $0x50] sm:$0xff] %v4157_v61  ;;  %v923_v22 = vadd.f32 %v922_v20, %v5536_v18  ;;  %v851_v23 = vpop.f32.mrf.mxu0 }
 0x109   : > { %v924_v24 = vpop.f32.mrf.mxu1  ;;  %v4159_v25 = vpack.c.bf16 %v850_v21, %v848_v9  ;;  %v852_v26 = vadd.f32 %v851_v23, %v5523_v15 }
 0x10a   : > { %v4160_v34 = vpack.c.bf16 %v923_v22, %v921_v14  ;;  %v925_v27 = vadd.f32 %v924_v24, %v5526_v16  ;;  %v853_v28 = vpop.f32.mrf.mxu0  ;;  %v521_v22 = vsub.s32 5, %v5505_v5 }
 0x10b   : > { %v926_v29 = vpop.f32.mrf.mxu1  ;;  %1216 = vst [vmem:[#allocation2 + $0x60] sm:$0xff] %v4159_v25  ;;  %v854_v30 = vadd.f32 %v853_v28, %v5533_v17  ;;  %v518_v25 = vrot.slane %v5515_v11, %v517_v38 }
 0x10c   : > { %1217 = vst [vmem:[#allocation2 + $0x68] sm:$0xff] %v4160_v34  ;;  %v927_v31 = vadd.f32 %v926_v29, %v5536_v18  ;;  %v857_v32 = vpop.f32.mrf.mxu0 }
 0x10d   : > { %v930_v35 = vpop.f32.mrf.mxu1  ;;  %v4162_v40 = vpack.c.bf16 %v854_v30, %v852_v26  ;;  %v858_v61 = vadd.f32 %v857_v32, %v5523_v15 }
 0x10e   : > { %v4163_v47 = vpack.c.bf16 %v927_v31, %v925_v27  ;;  %v931_v9 = vadd.f32 %v930_v35, %v5526_v16  ;;  %v859_v14 = vpop.f32.mrf.mxu0  ;;  %v522_v35 = vrot.slane %v5515_v11, %v521_v22 }
 0x10f   : > { %v932_v19 = vpop.f32.mrf.mxu1  ;;  %1219 = vst [vmem:[#allocation2 + $0x78] sm:$0xff] %v4162_v40  ;;  %v860_v20 = vadd.f32 %v859_v14, %v5533_v17 }
 0x110   : > { %1220 = vst [vmem:[#allocation2 + $0x80] sm:$0xff] %v4163_v47  ;;  %v933_v21 = vadd.f32 %v932_v19, %v5536_v18  ;;  %v861_v23 = vpop.f32.mrf.mxu0 }
 0x111   : > { %v934_v24 = vpop.f32.mrf.mxu1  ;;  %v4165_v34 = vpack.c.bf16 %v860_v20, %v858_v61  ;;  %v862_v27 = vadd.f32 %v861_v23, %v5523_v15 }
 0x112   : > { %v4166_v26 = vpack.c.bf16 %v933_v21, %v931_v9  ;;  %v935_v28 = vadd.f32 %v934_v24, %v5526_v16  ;;  %v863_v29 = vpop.f32.mrf.mxu0 }
 0x113   : > { %v936_v30 = vpop.f32.mrf.mxu1  ;;  %1222 = vst [vmem:[#allocation2 + $0x90] sm:$0xff] %v4165_v34  ;;  %v864_v31 = vadd.f32 %v863_v29, %v5533_v17 }
 0x114   : > { %1223 = vst [vmem:[#allocation2 + $0x98] sm:$0xff] %v4166_v26  ;;  %v937_v32 = vadd.f32 %v936_v30, %v5536_v18  ;;  %v973_v40 = vpop.f32.mrf.mxu0 }
 0x115   : > { %v4168_v47 = vpack.c.bf16 %v864_v31, %v862_v27  ;;  %v974_v38 = vadd.f32 %v973_v40, %v518_v25 }
 0x116   : > { %v4169_v14 = vpack.c.bf16 %v937_v32, %v935_v28  ;;  %v975_v61 = vpop.f32.mrf.mxu0 }
 0x117   : > { %1225 = vst [vmem:[#allocation2 + $0xa8] sm:$0xff] %v4168_v47  ;;  %v976_v15 = vadd.f32 %v975_v61, %v522_v35 }
 0x118   : > { %1226 = vst [vmem:[#allocation2 + $0xb0] sm:$0xff] %v4169_v14  ;;  %v977_v9 = vpop.f32.mrf.mxu0 }
 0x119   : > { %v4149_v16 = vpack.c.bf16 %v976_v15, %v974_v38  ;;  %v978_v19 = vadd.f32 %v977_v9, %v518_v25 }
 0x11a   : > { %v979_v20 = vpop.f32.mrf.mxu0 }
 0x11b   : > { %1206 = vst [vmem:[#allocation2 + $0x10] sm:$0xff] %v4149_v16  ;;  %v980_v21 = vadd.f32 %v979_v20, %v522_v35 }
 0x11c   : > { %v983_v23 = vpop.f32.mrf.mxu0 }
 0x11d   : > { %v4152_v17 = vpack.c.bf16 %v980_v21, %v978_v19  ;;  %v984_v24 = vadd.f32 %v983_v23, %v518_v25 }
 0x11e   : > { %v985_v18 = vpop.f32.mrf.mxu0 }
 0x11f   : > { %1209 = vst [vmem:[#allocation2 + $0x28] sm:$0xff] %v4152_v17  ;;  %v986_v11 = vadd.f32 %v985_v18, %v522_v35 }
 0x120   : > { %v987_v22 = vpop.f32.mrf.mxu0 }
 0x121   : > { %v4155_v34 = vpack.c.bf16 %v986_v11, %v984_v24  ;;  %v988_v26 = vadd.f32 %v987_v22, %v518_v25 }
 0x122   : > { %v989_v27 = vpop.f32.mrf.mxu0 }
 0x123   : > { %1212 = vst [vmem:[#allocation2 + $0x40] sm:$0xff] %v4155_v34  ;;  %v990_v28 = vadd.f32 %v989_v27, %v522_v35 }
 0x124   : > { %v993_v29 = vpop.f32.mrf.mxu0 }
 0x125   : > { %v4158_v30 = vpack.c.bf16 %v990_v28, %v988_v26  ;;  %v994_v31 = vadd.f32 %v993_v29, %v518_v25 }
 0x126   : > { %v995_v32 = vpop.f32.mrf.mxu0 }
 0x127   : > { %1215 = vst [vmem:[#allocation2 + $0x58] sm:$0xff] %v4158_v30  ;;  %v996_v40 = vadd.f32 %v995_v32, %v522_v35 }
 0x128   : > { %v997_v47 = vpop.f32.mrf.mxu0 }
 0x129   : > { %v4161_v14 = vpack.c.bf16 %v996_v40, %v994_v31  ;;  %v998_v38 = vadd.f32 %v997_v47, %v518_v25 }
 0x12a   : > { %v999_v61 = vpop.f32.mrf.mxu0 }
 0x12b   : > { %1218 = vst [vmem:[#allocation2 + $0x70] sm:$0xff] %v4161_v14  ;;  %v1000_v15 = vadd.f32 %v999_v61, %v522_v35 }
 0x12c   : > { %v1003_v9 = vpop.f32.mrf.mxu0 }
 0x12d   : > { %v4164_v16 = vpack.c.bf16 %v1000_v15, %v998_v38  ;;  %v1004_v19 = vadd.f32 %v1003_v9, %v518_v25 }
 0x12e   : > { %v1005_v20 = vpop.f32.mrf.mxu0 }
 0x12f   : > { %1221 = vst [vmem:[#allocation2 + $0x88] sm:$0xff] %v4164_v16  ;;  %v1006_v21 = vadd.f32 %v1005_v20, %v522_v35 }
 0x130   : > { %v1007_v23 = vpop.f32.mrf.mxu0 }
 0x131   : > { %v4167_v17 = vpack.c.bf16 %v1006_v21, %v1004_v19  ;;  %v1008_v24 = vadd.f32 %v1007_v23, %v518_v25 }
 0x132   : > { %v1009_v18 = vpop.f32.mrf.mxu0 }
 0x133   : > { %1224 = vst [vmem:[#allocation2 + $0xa0] sm:$0xff] %v4167_v17  ;;  %v1010_v11 = vadd.f32 %v1009_v18, %v522_v35 }
 0x135   : > { %v1860_v22 = vpop.f32.mrf.mxu1  ;;  %v4170_v34 = vpack.c.bf16 %v1010_v11, %v1008_v24 }
 0x137   : > { %v1862_v26 = vpop.f32.mrf.mxu1  ;;  %1227 = vst [vmem:[#allocation2 + $0xb8] sm:$0xff] %v4170_v34 }
 0x139   : > { %v1864_v27 = vpop.f32.mrf.mxu1 }
 0x13b   : > { %v1865_v28 = vpop.f32.mrf.mxu1 }
 0x13e   : > { %v1335_v25 = vld [vmem:[%s5580_s29] sm:$0xff]  ;;  %v1336_v14 = vld [vmem:[%s5580_s29 + $0x8] sm:$0xff] }
 0x13f   : > { %v1338_v29 = vunpack.c.l.bf16 %v1335_v25  ;;  %v1339_v35 = vunpack.c.h.bf16 %v1335_v25  ;;  %v1340_v15 = vunpack.c.l.bf16 %v1336_v14  ;;  %v1341_v19 = vunpack.c.h.bf16 %v1336_v14 }
 0x141   : > { %v1949_v30 = vadd.f32 %v1860_v22, %v1338_v29  ;;  %v1950_v31 = vadd.f32 %v1862_v26, %v1339_v35  ;;  %v1325_v22 = vld [vmem:[%s405_s10] sm:$0x3]  ;;  %v1337_v29 = vld [vmem:[%s5580_s29 + $0x10] sm:$0xff]  ;;  %s4181_s29 = smul.u32 24, %s6255_s28 }
 0x142   : > { %v5590_v26 = vrot.slane %v1325_v22, %v501_v7  ;;  %v5594_v25 = vrot.slane %v1325_v22, %v505_v13  ;;  %s6515_s10 = scalar_select %p1228_p5, 4, 3 }
 0x143   : > { %v4055_v32 = vmul.f32 -1.442695, %v1949_v30  ;;  %v4056_v40 = vmul.f32 -1.442695, %v1950_v31  ;;  %s2425_s30 = scalar_lea.vmem [#allocation2], %s4181_s29  ;;  %s4144_s29 = sshll.u32 %s4950_s25, 7 }
 0x144   : > { %s4184_s11 = smul.u32 24, %s6515_s10  ;;  %s4186_s13 = sshll.u32 %s6515_s10, 3 }
 0x145   : > { %4513 = vpow2.f32 %v4055_v32  ;;  %s2820_s14 = scalar_lea.vmem [#allocation3], %s4186_s13 }
 0x146   : > { %4515 = vpow2.f32 %v4056_v40  ;;  %s6976_s10 = scalar_select %p1228_p5, 7, 0 }
 0x148   : > { %s4195_s21 = sshll.u32 %s6976_s10, 3 }
 0x149   : > { %s3420_s13 = scalar_lea.vmem [#allocation3], %s4195_s21 }
 0x152   : > { %v4514_v17 = vpop.eup %4513 }
 0x153   : > { %v4516_v24 = vpop.eup %4515  ;;  %v1957_v18 = vadd.f32 1.0, %v4514_v17 }
 0x154   : > { %v1901_v47 = vpop.f32.mrf.mxu0  ;;  %v1958_v11 = vadd.f32 1.0, %v4516_v24 }
 0x155   : > { %v1963_v16 = vadd.f32 %v1901_v47, %v1340_v15  ;;  %v1342_v47 = vunpack.c.l.bf16 %v1337_v29 }
 0x156   : > { %v1903_v38 = vpop.f32.mrf.mxu0 }
 0x157   : > { %v1964_v20 = vadd.f32 %v1903_v38, %v1341_v19  ;;  %v4057_v21 = vmul.f32 -1.442695, %v1963_v16 }
 0x158   : > { %v1905_v61 = vpop.f32.mrf.mxu0 }
 0x159   : > { %v4058_v23 = vmul.f32 -1.442695, %v1964_v20  ;;  %4517 = vpow2.f32 %v4057_v21 }
 0x15a   : > { %v1906_v9 = vpop.f32.mrf.mxu0 }
 0x15b   : > { %4519 = vpow2.f32 %v4058_v23  ;;  %v1343_v9 = vunpack.c.h.bf16 %v1337_v29 }
 0x15c   : > { %4521 = vrcp.f32 %v1957_v18 }
 0x15d   : > { %4523 = vrcp.f32 %v1958_v11 }
 0x166   : > { %v4518_v34 = vpop.eup %4517 }
 0x167   : > { %v1971_v28 = vadd.f32 1.0, %v4518_v34 }
 0x168   : > { %v4520_v27 = vpop.eup %4519 }
 0x169   : > { %v1972_v35 = vadd.f32 1.0, %v4520_v27  ;;  %v4522_v32 = vpop.eup %4521  ;;  %4525 = vrcp.f32 %v1971_v28 }
 0x16a   : > { %v4524_v7 = vpop.eup %4523 }
 0x16b   : > { %4527 = vrcp.f32 %v1972_v35 }
 0x175   : > { %v1942_v30 = vpop.f32.mrf.mxu1 }
 0x176   : > { %v1988_v31 = vadd.f32 %v5590_v26, %v1942_v30  ;;  %v4526_v19 = vpop.eup %4525 }
 0x177   : > { %v1944_v40 = vpop.f32.mrf.mxu1  ;;  %v1996_v21 = vsub.f32 1.0, %v4526_v19  ;;  %v2000_v17 = vmul.f32 0.0, %v4526_v19  ;;  %v7255_v19 = vld [vmem:[#allocation10_spill] sm:$0xff] }
 0x178   : > { %v1990_v14 = vmul.f32 %v4522_v32, %v1988_v31  ;;  %v1989_v38 = vadd.f32 %v5594_v25, %v1944_v40  ;;  %v4528_v20 = vpop.eup %4527 }
 0x179   : > { %v1946_v61 = vpop.f32.mrf.mxu1  ;;  %v1997_v24 = vsub.f32 1.0, %v4528_v20  ;;  %v2001_v34 = vmul.f32 0.0, %v4528_v20  ;;  %v5641_v20 = vld [vmem:[%s4988_s9 + $0xf0] ss:$24 sps:$4 sm:$0xff]  }
 0x17a   : > { %v1992_v15 = vadd.f32 %v1990_v14, %v1342_v47  ;;  %v1991_v5 = vmul.f32 %v4524_v7, %v1989_v38  ;;  %v7250_v14 = vld [vmem:[#allocation5_spill] sm:$0xff]  ;;  %v7251_v38 = vld [vmem:[#allocation6_spill] sm:$0xff] }
 0x17b   : > { %v1947_v13 = vpop.f32.mrf.mxu1  ;;  %v5621_v7 = vld [vmem:[%s4988_s9 + $0x150] ss:$24 sps:$4 sm:$0xff]   ;;  %v5625_v61 = vld [vmem:[%s4988_s9 + $0x124] ss:$24 sps:$4 sm:$0xff]  }
 0x17c   : > { %4529 = vtanh.f32 %v1992_v15  ;;  %v1993_v16 = vadd.f32 %v1991_v5, %v1343_v9  ;;  %v7252_v15 = vld [vmem:[#allocation7_spill] sm:$0xff]  ;;  %v7253_v9 = vld [vmem:[#allocation8_spill] sm:$0xff] }
 0x17d   : > { %v5631_v5 = vld [vmem:[%s4988_s9 + $0x120] ss:$24 sps:$4 sm:$0xff]   ;;  %v5635_v13 = vld [vmem:[%s4988_s9 + $0xf4] ss:$24 sps:$4 sm:$0xff]  }
 0x17e   : > { %4531 = vtanh.f32 %v1993_v16  ;;  %v7254_v16 = vld [vmem:[#allocation9_spill] sm:$0xff] }
 0x189   : > { %v4530_v23 = vpop.eup %4529 }
 0x18a   : > { %v1998_v18 = vmul.f32 %v4530_v23, %v1996_v21  ;;  %v5645_v21 = vld [vmem:[%s4988_s9 + $0xc4] ss:$24 sps:$4 sm:$0xff]  }
 0x18b   : > { %v4532_v11 = vpop.eup %4531  ;;  %v7256_v23 = vld [vmem:[#allocation12_spill] sm:$0xff] }
 0x18c   : > { %v1999_v22 = vmul.f32 %v4532_v11, %v1997_v24  ;;  %v5599_v27 = vadd.f32 %v2000_v17, %v1998_v18  ;;  %v7257_v17 = vld [vmem:[#allocation14_spill] sm:$0xff]  ;;  %v5651_v24 = vld [vmem:[%s4988_s9 + $0xc0] ss:$24 sps:$4 sm:$0xff]  }
 0x18d   : > { %v5655_v18 = vld [vmem:[%s4988_s9 + $0x94] ss:$24 sps:$4 sm:$0xff]   ;;  %v7258_v11 = vld [vmem:[#allocation16_spill] sm:$0xff] }
 0x18e   : > { %v5601_v28 = vadd.f32 %v2001_v34, %v1999_v22  ;;  %v2006_v29 = vmul.f32 0.01, %v5599_v27  ;;  %vm2004_vm0 = vcmp.ge.f32.partialorder %v5599_v27, 0.0  ;;  %v5612_v31 = vpack.c.bf16 %v5599_v27, %v5599_v27  ;;  %v7259_v22 = vld [vmem:[#allocation18_spill] sm:$0xff] }
 0x18f   : > { %v5661_v34 = vld [vmem:[%s4988_s9 + $0x90] ss:$24 sps:$4 sm:$0xff]  }
 0x190   : > { %vm2005_vm1 = vcmp.ge.f32.partialorder %v5601_v28, 0.0  ;;  %v2007_v30 = vmul.f32 0.01, %v5601_v28  ;;  %v2036_v35 = vpack.c.bf16 %v5601_v28, %v5601_v28  ;;  %v2008_v40 = vsel %vm2004_vm0, %v5599_v27, %v2006_v29  ;;  %v5665_v29 = vld [vmem:[%s4988_s9 + $0x64] ss:$24 sps:$4 sm:$0xff]  }
 0x192   : > { %v2009_v32 = vsel %vm2005_vm1, %v5601_v28, %v2007_v30  ;;  %2069 = vmatprep.mubr.bf16.mxu0 %v2036_v35  ;;  %2110 = vmatprep.mubr.bf16.mxu1 %v2036_v35  ;;  %v7260_v30 = vld [vmem:[#allocation20_spill] sm:$0xff] }
 0x193   : > { %v4173_v47 = vpack.c.bf16 %v2009_v32, %v2008_v40  ;;  %2070 = vmatmul.mubr.bf16.vlgmr.msra.gmra.mxu0 %v5612_v31  ;;  %2111 = vmatmul.mubr.bf16.vlgmr.msra.gmra.mxu1 %v5612_v31  ;;  %v5671_v32 = vld [vmem:[%s4988_s9 + $0x60] ss:$24 sps:$4 sm:$0xff]   ;;  %v5675_v40 = vld [vmem:[%s4988_s9 + $0x34] ss:$24 sps:$4 sm:$0xff]  }
 0x194   : > { %2120 = vmatpush1.bf16.msra.mxu0 %v7250_v14  ;;  %2151 = vmatprep.mubr.bf16.mxu0 %v2036_v35  ;;  %v7261_v35 = vld [vmem:[#allocation21_spill] sm:$0xff] }
 0x195   : > { %2021 = vst [vmem:[%s2020_s12] sm:$0xff] %v4173_v47  ;;  %2121 = vmatprep.subr.bf16.mxu0 %v7251_v38  ;;  %2238 = vmatpush1.bf16.msra.mxu1 %v5621_v7  ;;  %v7262_v47 = vld [vmem:[#allocation23_spill] sm:$0xff]  ;;  %v7263_v14 = vld [vmem:[#allocation25_spill] sm:$0xff]  ;;  %s2625_s12 = scalar_lea.vmem [#allocation2], %s4184_s11  ;;  %s4193_s11 = smul.u32 24, %s6976_s10 }
 0x196   : > { %2239 = vmatprep.subr.bf16.mxu1 %v5625_v61  ;;  %v5681_v38 = vld [vmem:[%s4988_s9 + $0x30] ss:$24 sps:$4 sm:$0xff]  }
 0x198   : > { %2122 = vmatpush1.bf16.msra.mxu0 %v7252_v15  ;;  %v5685_v15 = vld [vmem:[%s4988_s9 + $0x4] ss:$24 sps:$4 sm:$0xff]  }
 0x199   : > { %2123 = vmatprep.subr.bf16.mxu0 %v7253_v9  ;;  %2240 = vmatpush1.bf16.msra.mxu1 %v5631_v5  ;;  %v7264_v9 = vld [vmem:[#allocation26_spill] sm:$0xff] }
 0x19a   : > { %2241 = vmatprep.subr.bf16.mxu1 %v5635_v13 }
 0x19c   : > { %2124 = vmatpush1.bf16.msra.mxu0 %v7254_v16  ;;  %v7265_v16 = vld [vmem:[#allocation27_spill] sm:$0xff] }
 0x19d   : > { %2125 = vmatprep.subr.bf16.mxu0 %v7255_v19  ;;  %2242 = vmatpush1.bf16.msra.mxu1 %v5641_v20  ;;  %v5691_v19 = vld [vmem:[%s4988_s9] ss:$24 sps:$4 sm:$0xff]  }
 0x19e   : > { %2243 = vmatprep.subr.bf16.mxu1 %v5645_v21 }
 0x1a0   : > { %2126 = vmatpush1.bf16.msra.mxu0 %v7256_v23  ;;  %v5695_v23 = vld [vmem:[%s4988_s9 + $0x2d4] ss:$24 sps:$4 sm:$0xff]  }
 0x1a1   : > { %2127 = vmatprep.subr.bf16.mxu0 %v7257_v17  ;;  %2244 = vmatpush1.bf16.msra.mxu1 %v5651_v24  ;;  %v7266_v17 = vld [vmem:[#allocation28_spill] sm:$0xff] }
 0x1a2   : > { %2245 = vmatprep.subr.bf16.mxu1 %v5655_v18 }
 0x1a4   : > { %2128 = vmatpush1.bf16.msra.mxu0 %v7258_v11  ;;  %v5701_v11 = vld [vmem:[%s4988_s9 + $0x2d0] ss:$24 sps:$4 sm:$0xff]  }
 0x1a5   : > { %2129 = vmatprep.subr.bf16.mxu0 %v7259_v22  ;;  %2246 = vmatpush1.bf16.msra.mxu1 %v5661_v34  ;;  %7267 = vst [vmem:[#allocation11_spill] sm:$0xff] %v5701_v11  ;;  %v5705_v22 = vld [vmem:[%s4988_s9 + $0x2a4] ss:$24 sps:$4 sm:$0xff]  }
 0x1a6   : > { %2247 = vmatprep.subr.bf16.mxu1 %v5665_v29 }
 0x1a8   : > { %2130 = vmatpush1.bf16.msra.mxu0 %v7260_v30  ;;  %v5711_v30 = vld [vmem:[%s4988_s9 + $0x2a0] ss:$24 sps:$4 sm:$0xff]  }
 0x1a9   : > { %2131 = vmatprep.subr.bf16.mxu0 %v7261_v35  ;;  %2248 = vmatpush1.bf16.msra.mxu1 %v5671_v32  ;;  %7268 = vst [vmem:[#allocation13_spill] sm:$0xff] %v5711_v30  ;;  %v5715_v35 = vld [vmem:[%s4988_s9 + $0x274] ss:$24 sps:$4 sm:$0xff]  }
 0x1aa   : > { %2249 = vmatprep.subr.bf16.mxu1 %v5675_v40 }
 0x1ac   : > { %2132 = vmatpush1.bf16.msra.mxu0 %v7262_v47  ;;  %v5811_v47 = vld [vmem:[%s4988_s9 + $0x68] ss:$24 sps:$4 sm:$0xff]  }
 0x1ad   : > { %2133 = vmatprep.subr.bf16.mxu0 %v7263_v14  ;;  %2250 = vmatpush1.bf16.msra.mxu1 %v5681_v38  ;;  %7288 = vst [vmem:[#allocation26_spill] sm:$0xff] %v5811_v47  ;;  %v5815_v14 = vld [vmem:[%s4988_s9 + $0x3c] ss:$24 sps:$4 sm:$0xff]  }
 0x1ae   : > { %2251 = vmatprep.subr.bf16.mxu1 %v5685_v15  ;;  %7289 = vst [vmem:[#allocation27_spill] sm:$0xff] %v5815_v14 }
 0x1b0   : > { %2134 = vmatpush1.bf16.msra.mxu0 %v7264_v9  ;;  %v5819_v9 = vld [vmem:[%s4988_s9 + $0x38] ss:$24 sps:$4 sm:$0xff]  }
 0x1b1   : > { %2135 = vmatprep.subr.bf16.mxu0 %v7265_v16  ;;  %2252 = vmatpush1.bf16.msra.mxu1 %v5691_v19  ;;  %7290 = vst [vmem:[#allocation28_spill] sm:$0xff] %v5819_v9  ;;  %v5823_v16 = vld [vmem:[%s4988_s9 + $0xc] ss:$24 sps:$4 sm:$0xff]  }
 0x1b2   : > { %2253 = vmatprep.subr.bf16.mxu1 %v5695_v23  ;;  %7291 = vst [vmem:[#allocation29_spill] sm:$0xff] %v5823_v16 }
 0x1b4   : > { %2136 = vmatpush2.bf16.msra.mxu0 %v7266_v17  ;;  %v5827_v17 = vld [vmem:[%s4988_s9 + $0x8] ss:$24 sps:$4 sm:$0xff]  }
 0x1b5   : > { %2137 = vmatprep.subr.bf16.mxu0 %v5386_v62  ;;  %2254 = vmatpush2.bf16.msra.mxu1 %v5701_v11  ;;  %v5721_v62 = vld [vmem:[%s4988_s9 + $0x270] ss:$24 sps:$4 sm:$0xff]   ;;  %7292 = vst [vmem:[#allocation30_spill] sm:$0xff] %v5827_v17 }
 0x1b6   : > { %2255 = vmatprep.subr.bf16.mxu1 %v5705_v22  ;;  %7269 = vst [vmem:[#allocation15_spill] sm:$0xff] %v5721_v62 }
 0x1b8   : > { %2138 = vmatpush2.bf16.msra.mxu0 %v5392_v2  ;;  %v5725_v2 = vld [vmem:[%s4988_s9 + $0x244] ss:$24 sps:$4 sm:$0xff]  }
 0x1b9   : > { %2139 = vmatprep.subr.bf16.mxu0 %v5397_v8  ;;  %2256 = vmatpush2.bf16.msra.mxu1 %v5711_v30  ;;  %7270 = vst [vmem:[#allocation17_spill] sm:$0xff] %v5725_v2  ;;  %v5731_v8 = vld [vmem:[%s4988_s9 + $0x240] ss:$24 sps:$4 sm:$0xff]  }
 0x1ba   : > { %2257 = vmatprep.subr.bf16.mxu1 %v5715_v35  ;;  %7271 = vst [vmem:[#allocation19_spill] sm:$0xff] %v5731_v8 }
 0x1bc   : > { %2140 = vmatpush2.bf16.msra.mxu0 %v5402_v58  ;;  %v5735_v58 = vld [vmem:[%s4988_s9 + $0x214] ss:$24 sps:$4 sm:$0xff]  }
 0x1bd   : > { %2141 = vmatprep.subr.bf16.mxu0 %v5407_v51  ;;  %2258 = vmatpush2.bf16.msra.mxu1 %v5721_v62  ;;  %7272 = vst [vmem:[#allocation22_spill] sm:$0xff] %v5735_v58  ;;  %v5741_v51 = vld [vmem:[%s4988_s9 + $0x210] ss:$24 sps:$4 sm:$0xff]  }
 0x1be   : > { %2259 = vmatprep.subr.bf16.mxu1 %v5725_v2  ;;  %7273 = vst [vmem:[#allocation24_spill] sm:$0xff] %v5741_v51 }
 0x1c0   : > { %2142 = vmatpush2.bf16.msra.mxu0 %v5412_v37  ;;  %v5745_v37 = vld [vmem:[%s4988_s9 + $0x1e4] ss:$24 sps:$4 sm:$0xff]  }
 0x1c1   : > { %2143 = vmatprep.subr.bf16.mxu0 %v5417_v39  ;;  %2260 = vmatpush2.bf16.msra.mxu1 %v5731_v8  ;;  %7274 = vst [vmem:[#allocation5_spill] sm:$0xff] %v5745_v37  ;;  %v5751_v39 = vld [vmem:[%s4988_s9 + $0x1e0] ss:$24 sps:$4 sm:$0xff]  }
 0x1c2   : > { %2261 = vmatprep.subr.bf16.mxu1 %v5735_v58  ;;  %7275 = vst [vmem:[#allocation6_spill] sm:$0xff] %v5751_v39 }
 0x1c4   : > { %2144 = vmatpush2.bf16.msra.mxu0 %v5422_v41  ;;  %v5755_v41 = vld [vmem:[%s4988_s9 + $0x1b4] ss:$24 sps:$4 sm:$0xff]  }
 0x1c5   : > { %2145 = vmatprep.subr.bf16.mxu0 %v5427_v43  ;;  %2262 = vmatpush2.bf16.msra.mxu1 %v5741_v51  ;;  %7276 = vst [vmem:[#allocation7_spill] sm:$0xff] %v5755_v41  ;;  %v5764_v43 = vld [vmem:[%s4988_s9 + $0x15c] ss:$24 sps:$4 sm:$0xff]  }
 0x1c6   : > { %2263 = vmatprep.subr.bf16.mxu1 %v5745_v37  ;;  %7277 = vst [vmem:[#allocation8_spill] sm:$0xff] %v5764_v43 }
 0x1c8   : > { %2146 = vmatpush2.bf16.msra.mxu0 %v5432_v46  ;;  %v5771_v46 = vld [vmem:[%s4988_s9 + $0x158] ss:$24 sps:$4 sm:$0xff]  }
 0x1c9   : > { %2147 = vmatprep.subr.bf16.mxu0 %v5437_v48  ;;  %2264 = vmatpush2.bf16.msra.mxu1 %v5751_v39  ;;  %7278 = vst [vmem:[#allocation9_spill] sm:$0xff] %v5771_v46  ;;  %v5791_v48 = vld [vmem:[%s4988_s9 + $0xcc] ss:$24 sps:$4 sm:$0xff]  }
 0x1ca   : > { %2265 = vmatprep.subr.bf16.mxu1 %v5755_v41  ;;  %7283 = vst [vmem:[#allocation18_spill] sm:$0xff] %v5791_v48 }
 0x1cc   : > { %2148 = vmatpush2.bf16.msra.mxu0 %v5442_v50  ;;  %v5795_v50 = vld [vmem:[%s4988_s9 + $0xc8] ss:$24 sps:$4 sm:$0xff]  }
 0x1cd   : > { %2149 = vmatprep.subr.bf16.mxu0 %v5447_v52  ;;  %2266 = vmatpush2.bf16.msra.mxu1 %v5219_v33  ;;  %v5775_v33 = vld [vmem:[%s4988_s9 + $0x12c] ss:$24 sps:$4 sm:$0xff]   ;;  %7284 = vst [vmem:[#allocation20_spill] sm:$0xff] %v5795_v50  ;;  %v5799_v52 = vld [vmem:[%s4988_s9 + $0x9c] ss:$24 sps:$4 sm:$0xff]  }
 0x1ce   : > { %2267 = vmatprep.subr.bf16.mxu1 %v5227_v36  ;;  %7279 = vst [vmem:[#allocation10_spill] sm:$0xff] %v5775_v33  ;;  %v5779_v36 = vld [vmem:[%s4988_s9 + $0x128] ss:$24 sps:$4 sm:$0xff]   ;;  %7285 = vst [vmem:[#allocation21_spill] sm:$0xff] %v5799_v52 }
 0x1cf   : > { %7280 = vst [vmem:[#allocation12_spill] sm:$0xff] %v5779_v36 }
 0x1d0   : > { %2150 = vmatpush2.bf16.msra.mxu0 %v5452_v55  ;;  %v5803_v55 = vld [vmem:[%s4988_s9 + $0x98] ss:$24 sps:$4 sm:$0xff]  }
 0x1d1   : > { %2278 = vmatprep.subr.bf16.mxu0 %v5764_v43  ;;  %2268 = vmatpush2.bf16.msra.mxu1 %v5236_v0  ;;  %v5783_v0 = vld [vmem:[%s4988_s9 + $0xfc] ss:$24 sps:$4 sm:$0xff]   ;;  %7286 = vst [vmem:[#allocation23_spill] sm:$0xff] %v5803_v55 }
 0x1d2   : > { %2319 = vmatprep.subr.bf16.mxu1 %v5249_v44  ;;  %7281 = vst [vmem:[#allocation14_spill] sm:$0xff] %v5783_v0  ;;  %v5787_v44 = vld [vmem:[%s4988_s9 + $0xf8] ss:$24 sps:$4 sm:$0xff]  }
 0x1d3   : > { %2152 = vmatmul.mubr.bf16.vlgmr.msra.gmra.mxu0 %v5612_v31  ;;  %7282 = vst [vmem:[#allocation16_spill] sm:$0xff] %v5787_v44  ;;  %v5807_v31 = vld [vmem:[%s4988_s9 + $0x6c] ss:$24 sps:$4 sm:$0xff]  }
 0x1d4   : > { %2279 = vmatpush1.bf16.msra.mxu0 %v5771_v46  ;;  %7287 = vst [vmem:[#allocation25_spill] sm:$0xff] %v5807_v31 }
 0x1d5   : > { %2280 = vmatprep.subr.bf16.mxu0 %v5775_v33 }
 0x1d8   : > { %2281 = vmatpush1.bf16.msra.mxu0 %v5779_v36 }
 0x1d9   : > { %2282 = vmatprep.subr.bf16.mxu0 %v5783_v0 }
 0x1dc   : > { %2283 = vmatpush1.bf16.msra.mxu0 %v5787_v44 }
 0x1dd   : > { %2284 = vmatprep.subr.bf16.mxu0 %v5791_v48 }
 0x1e0   : > { %2285 = vmatpush1.bf16.msra.mxu0 %v5795_v50 }
 0x1e1   : > { %2286 = vmatprep.subr.bf16.mxu0 %v5799_v52 }
 0x1e4   : > { %2287 = vmatpush1.bf16.msra.mxu0 %v5803_v55 }
 0x1e5   : > { %2288 = vmatprep.subr.bf16.mxu0 %v5807_v31 }
 0x1e8   : > { %2289 = vmatpush1.bf16.msra.mxu0 %v5811_v47 }
 0x1e9   : > { %2290 = vmatprep.subr.bf16.mxu0 %v5815_v14 }
 0x1ec   : > { %2291 = vmatpush1.bf16.msra.mxu0 %v5819_v9 }
 0x1ed   : > { %2292 = vmatprep.subr.bf16.mxu0 %v5823_v16 }
 0x1f0   : > { %2293 = vmatpush1.bf16.msra.mxu0 %v5827_v17 }
 0x1f1   : > { %2294 = vmatprep.subr.bf16.mxu0 %v5244_v42  ;;  %v5847_v42 = vld [vmem:[%s4988_s9 + $0x154] ss:$24 sps:$4 sm:$0xff]  }
 0x1f2   : > { %7293 = vst [vmem:[#allocation31_spill] sm:$0xff] %v5847_v42 }
 0x1f4   : > { %2295 = vmatpush2.bf16.msra.mxu0 %v5255_v45 }
 0x1f5   : > { %2296 = vmatprep.subr.bf16.mxu0 %v5263_v49 }
 0x1f8   : > { %2297 = vmatpush2.bf16.msra.mxu0 %v5272_v53 }
 0x1f9   : > { %2298 = vmatprep.subr.bf16.mxu0 %v5280_v56 }
 0x1fc   : > { %2299 = vmatpush2.bf16.msra.mxu0 %v5289_v60 }
 0x1fd   : > { %2300 = vmatprep.subr.bf16.mxu0 %v5297_v63 }
 0x200   : > { %2301 = vmatpush2.bf16.msra.mxu0 %v7243_v57 }
 0x201   : > { %2302 = vmatprep.subr.bf16.mxu0 %v7244_v59 }
 0x204   : > { %2303 = vmatpush2.bf16.msra.mxu0 %v7245_v1 }
 0x205   : > { %2304 = vmatprep.subr.bf16.mxu0 %v7246_v3 }
 0x208   : > { %2305 = vmatpush2.bf16.msra.mxu0 %v7247_v6 }
 0x209   : > { %2306 = vmatprep.subr.bf16.mxu0 %v5345_v54  ;;  %v2026_v54 = vld [vmem:[%s2025_s15] sm:$0xff] }
 0x20a   : > { %v2030_v3 = vunpack.c.h.bf16 %v2026_v54 }
 0x20c   : > { %2307 = vmatpush2.bf16.msra.mxu0 %v7248_v10 }
 0x20d   : > { %2308 = vmatprep.subr.bf16.mxu0 %v7249_v12 }
 0x210   : > { %2309 = vmatpush2.bf16.msra.mxu0 %v5369_v4  ;;  %v2029_v4 = vunpack.c.l.bf16 %v2026_v54 }
 0x211   : > { %2437 = vmatprep.subr.bf16.mxu0 %v5847_v42  ;;  %v2027_v42 = vld [vmem:[%s2025_s15 + $0x8] sm:$0xff] }
 0x253   : > { %v2071_v45 = vpop.f32.mrf.mxu0  ;;  %v2112_v49 = vpop.f32.mrf.mxu1 }
 0x254   : > { %v2160_v1 = vadd.f32 %v2071_v45, %v2029_v4  ;;  %v2028_v4 = vld [vmem:[%s2025_s15 + $0x10] sm:$0xff]  ;;  %s6793_s15 = scalar_select %p1228_p5, 5, 2 }
 0x255   : > { %v2073_v53 = vpop.f32.mrf.mxu0  ;;  %v2114_v56 = vpop.f32.mrf.mxu1 }
 0x256   : > { %v2161_v6 = vadd.f32 %v2073_v53, %v2030_v3  ;;  %v4063_v10 = vmul.f32 -1.442695, %v2160_v1  ;;  %s4187_s16 = smul.u32 24, %s6793_s15 }
 0x257   : > { %v2075_v60 = vpop.f32.mrf.mxu0  ;;  %v2116_v63 = vpop.f32.mrf.mxu1 }
 0x258   : > { %v4064_v12 = vmul.f32 -1.442695, %v2161_v6  ;;  %4533 = vpow2.f32 %v4063_v10  ;;  %v2031_v60 = vunpack.c.l.bf16 %v2027_v42  ;;  %v2033_v6 = vunpack.c.l.bf16 %v2028_v4 }
 0x259   : > { %v2076_v57 = vpop.f32.mrf.mxu0  ;;  %v2117_v59 = vpop.f32.mrf.mxu1 }
 0x25a   : > { %4535 = vpow2.f32 %v4064_v12  ;;  %v2174_v63 = vadd.f32 %v2112_v49, %v2031_v60  ;;  %v2032_v57 = vunpack.c.h.bf16 %v2027_v42 }
 0x25c   : > { %v2175_v59 = vadd.f32 %v2114_v56, %v2032_v57  ;;  %v4065_v17 = vmul.f32 -1.442695, %v2174_v63 }
 0x25e   : > { %v4066_v16 = vmul.f32 -1.442695, %v2175_v59  ;;  %4537 = vpow2.f32 %v4065_v17 }
 0x260   : > { %4539 = vpow2.f32 %v4066_v16 }
 0x265   : > { %v4534_v9 = vpop.eup %4533 }
 0x266   : > { %v2168_v47 = vadd.f32 1.0, %v4534_v9 }
 0x267   : > { %v4536_v14 = vpop.eup %4535 }
 0x268   : > { %v2169_v31 = vadd.f32 1.0, %v4536_v14  ;;  %4541 = vrcp.f32 %v2168_v47 }
 0x26a   : > { %4543 = vrcp.f32 %v2169_v31  ;;  %v2034_v31 = vunpack.c.h.bf16 %v2028_v4 }
 0x26b   : > { %v4538_v45 = vpop.eup %4537 }
 0x26c   : > { %v2182_v54 = vadd.f32 1.0, %v4538_v45 }
 0x26d   : > { %v4540_v53 = vpop.eup %4539 }
 0x26e   : > { %v2183_v3 = vadd.f32 1.0, %v4540_v53  ;;  %4545 = vrcp.f32 %v2182_v54 }
 0x270   : > { %4547 = vrcp.f32 %v2183_v3 }
 0x275   : > { %v4542_v42 = vpop.eup %4541 }
 0x277   : > { %v4544_v9 = vpop.eup %4543 }
 0x27b   : > { %v4546_v63 = vpop.eup %4545 }
 0x27c   : > { %v2196_v59 = vsub.f32 1.0, %v4546_v63  ;;  %v2200_v53 = vmul.f32 %v4546_v63, %v5599_v27  ;;  %v5903_v63 = vld [vmem:[%s4988_s9 + $0xd4] ss:$24 sps:$4 sm:$0xff]  }
 0x27d   : > { %v4548_v57 = vpop.eup %4547 }
 0x27e   : > { %v2197_v54 = vsub.f32 1.0, %v4548_v57  ;;  %v2201_v3 = vmul.f32 %v4548_v57, %v5601_v28  ;;  %v5909_v57 = vld [vmem:[%s4988_s9 + $0xd0] ss:$24 sps:$4 sm:$0xff]  }
 0x293   : > { %v2153_v1 = vpop.f32.mrf.mxu0 }
 0x294   : > { %v2188_v49 = vadd.f32 %v2153_v1, %v5590_v26 }
 0x295   : > { %v2155_v56 = vpop.f32.mrf.mxu0 }
 0x296   : > { %v2190_v10 = vmul.f32 %v4542_v42, %v2188_v49  ;;  %v2189_v17 = vadd.f32 %v2155_v56, %v5594_v25 }
 0x297   : > { %v2157_v16 = vpop.f32.mrf.mxu0 }
 0x298   : > { %v2192_v47 = vadd.f32 %v2190_v10, %v2033_v6  ;;  %v2191_v14 = vmul.f32 %v4544_v9, %v2189_v17 }
 0x299   : > { %v2158_v12 = vpop.f32.mrf.mxu0 }
 0x29a   : > { %4549 = vtanh.f32 %v2192_v47  ;;  %v2193_v60 = vadd.f32 %v2191_v14, %v2034_v31  ;;  %v5879_v47 = vld [vmem:[%s4988_s9 + $0x160] ss:$24 sps:$4 sm:$0xff]   ;;  %v5883_v31 = vld [vmem:[%s4988_s9 + $0x134] ss:$24 sps:$4 sm:$0xff]   ;;  %v5889_v14 = vld [vmem:[%s4988_s9 + $0x130] ss:$24 sps:$4 sm:$0xff]  }
 0x29b   : > { %v5893_v12 = vld [vmem:[%s4988_s9 + $0x104] ss:$24 sps:$4 sm:$0xff]  }
 0x29c   : > { %4551 = vtanh.f32 %v2193_v60  ;;  %v5899_v60 = vld [vmem:[%s4988_s9 + $0x100] ss:$24 sps:$4 sm:$0xff]  }
 0x2a7   : > { %v4550_v45 = vpop.eup %4549 }
 0x2a8   : > { %v2198_v1 = vmul.f32 %v4550_v45, %v2196_v59  ;;  %v5913_v59 = vld [vmem:[%s4988_s9 + $0xa4] ss:$24 sps:$4 sm:$0xff]   ;;  %v5919_v45 = vld [vmem:[%s4988_s9 + $0xa0] ss:$24 sps:$4 sm:$0xff]  }
 0x2a9   : > { %v4552_v49 = vpop.eup %4551 }
 0x2aa   : > { %v2199_v42 = vmul.f32 %v4552_v49, %v2197_v54  ;;  %v5859_v56 = vadd.f32 %v2200_v53, %v2198_v1  ;;  %v5923_v53 = vld [vmem:[%s4988_s9 + $0x74] ss:$24 sps:$4 sm:$0xff]   ;;  %v5929_v54 = vld [vmem:[%s4988_s9 + $0x70] ss:$24 sps:$4 sm:$0xff]   ;;  %v5933_v1 = vld [vmem:[%s4988_s9 + $0x44] ss:$24 sps:$4 sm:$0xff]  }
 0x2ab   : > { %v5939_v49 = vld [vmem:[%s4988_s9 + $0x40] ss:$24 sps:$4 sm:$0xff]  }
 0x2ac   : > { %v5861_v4 = vadd.f32 %v2201_v3, %v2199_v42  ;;  %v2206_v6 = vmul.f32 0.01, %v5859_v56  ;;  %vm2204_vm2 = vcmp.ge.f32.partialorder %v5859_v56, 0.0  ;;  %v5872_v28 = vpack.c.bf16 %v5859_v56, %v5859_v56  ;;  %v5943_v42 = vld [vmem:[%s4988_s9 + $0x14] ss:$24 sps:$4 sm:$0xff]  }
 0x2ad   : > { %v5949_v3 = vld [vmem:[%s4988_s9 + $0x10] ss:$24 sps:$4 sm:$0xff]  }
 0x2ae   : > { %vm2205_vm3 = vcmp.ge.f32.partialorder %v5861_v4, 0.0  ;;  %v2207_v27 = vmul.f32 0.01, %v5861_v4  ;;  %v2236_v10 = vpack.c.bf16 %v5861_v4, %v5861_v4  ;;  %v2208_v9 = vsel %vm2204_vm2, %v5859_v56, %v2206_v6  ;;  %v5953_v6 = vld [vmem:[%s4988_s9 + $0x2e4] ss:$24 sps:$4 sm:$0xff]  }
 0x2b0   : > { %v2209_v17 = vsel %vm2205_vm3, %v5861_v4, %v2207_v27  ;;  %2269 = vmatprep.mubr.bf16.mxu1 %v2236_v10  ;;  %2310 = vmatprep.mubr.bf16.mxu0 %v2236_v10  ;;  %v5959_v27 = vld [vmem:[%s4988_s9 + $0x2e0] ss:$24 sps:$4 sm:$0xff]  }
 0x2b1   : > { %v4176_v16 = vpack.c.bf16 %v2209_v17, %v2208_v9  ;;  %2270 = vmatmul.mubr.bf16.vlgmr.msra.gmra.mxu1 %v5872_v28  ;;  %2311 = vmatmul.mubr.bf16.vlgmr.msra.gmra.mxu0 %v5872_v28  ;;  %v5969_v17 = vld [vmem:[%s4988_s9 + $0x2b0] ss:$24 sps:$4 sm:$0xff]   ;;  %v5973_v9 = vld [vmem:[%s4988_s9 + $0x284] ss:$24 sps:$4 sm:$0xff]  }
 0x2b2   : > { %2320 = vmatpush1.bf16.msra.mxu1 %v5879_v47  ;;  %2351 = vmatprep.mubr.bf16.mxu1 %v2236_v10  ;;  %v5963_v10 = vld [vmem:[%s4988_s9 + $0x2b4] ss:$24 sps:$4 sm:$0xff]   ;;  %7294 = vst [vmem:[#allocation32_spill] sm:$0xff] %v5973_v9 }
 0x2b3   : > { %2221 = vst [vmem:[%s2220_s17] sm:$0xff] %v4176_v16  ;;  %2321 = vmatprep.subr.bf16.mxu1 %v5883_v31  ;;  %2438 = vmatpush1.bf16.msra.mxu0 %v5621_v7  ;;  %v5979_v16 = vld [vmem:[%s4988_s9 + $0x280] ss:$24 sps:$4 sm:$0xff]   ;;  %s2825_s17 = scalar_lea.vmem [#allocation2], %s4187_s16 }
 0x2b4   : > { %2439 = vmatprep.subr.bf16.mxu0 %v5625_v61 }
 0x2b6   : > { %2322 = vmatpush1.bf16.msra.mxu1 %v5889_v14 }
 0x2b7   : > { %2323 = vmatprep.subr.bf16.mxu1 %v5893_v12  ;;  %2440 = vmatpush1.bf16.msra.mxu0 %v5631_v5 }
 0x2b8   : > { %2441 = vmatprep.subr.bf16.mxu0 %v5635_v13 }
 0x2ba   : > { %2324 = vmatpush1.bf16.msra.mxu1 %v5899_v60 }
 0x2bb   : > { %2325 = vmatprep.subr.bf16.mxu1 %v5903_v63  ;;  %2442 = vmatpush1.bf16.msra.mxu0 %v5641_v20 }
 0x2bc   : > { %2443 = vmatprep.subr.bf16.mxu0 %v5645_v21 }
 0x2be   : > { %2326 = vmatpush1.bf16.msra.mxu1 %v5909_v57 }
 0x2bf   : > { %2327 = vmatprep.subr.bf16.mxu1 %v5913_v59  ;;  %2444 = vmatpush1.bf16.msra.mxu0 %v5651_v24 }
 0x2c0   : > { %2445 = vmatprep.subr.bf16.mxu0 %v5655_v18 }
 0x2c2   : > { %2328 = vmatpush1.bf16.msra.mxu1 %v5919_v45 }
 0x2c3   : > { %2329 = vmatprep.subr.bf16.mxu1 %v5923_v53  ;;  %2446 = vmatpush1.bf16.msra.mxu0 %v5661_v34 }
 0x2c4   : > { %2447 = vmatprep.subr.bf16.mxu0 %v5665_v29 }
 0x2c6   : > { %2330 = vmatpush1.bf16.msra.mxu1 %v5929_v54 }
 0x2c7   : > { %2331 = vmatprep.subr.bf16.mxu1 %v5933_v1  ;;  %2448 = vmatpush1.bf16.msra.mxu0 %v5671_v32 }
 0x2c8   : > { %2449 = vmatprep.subr.bf16.mxu0 %v5675_v40 }
 0x2ca   : > { %2332 = vmatpush1.bf16.msra.mxu1 %v5939_v49 }
 0x2cb   : > { %2333 = vmatprep.subr.bf16.mxu1 %v5943_v42  ;;  %2450 = vmatpush1.bf16.msra.mxu0 %v5681_v38 }
 0x2cc   : > { %2451 = vmatprep.subr.bf16.mxu0 %v5685_v15 }
 0x2ce   : > { %2334 = vmatpush1.bf16.msra.mxu1 %v5949_v3 }
 0x2cf   : > { %2335 = vmatprep.subr.bf16.mxu1 %v5953_v6  ;;  %2452 = vmatpush1.bf16.msra.mxu0 %v5691_v19 }
 0x2d0   : > { %2453 = vmatprep.subr.bf16.mxu0 %v5695_v23 }
 0x2d2   : > { %2336 = vmatpush2.bf16.msra.mxu1 %v5959_v27 }
 0x2d3   : > { %2337 = vmatprep.subr.bf16.mxu1 %v5963_v10  ;;  %2454 = vmatpush2.bf16.msra.mxu0 %v5701_v11  ;;  %v5983_v11 = vld [vmem:[%s4988_s9 + $0x254] ss:$24 sps:$4 sm:$0xff]  }
 0x2d4   : > { %2455 = vmatprep.subr.bf16.mxu0 %v5705_v22  ;;  %7295 = vst [vmem:[#allocation33_spill] sm:$0xff] %v5983_v11 }
 0x2d6   : > { %2338 = vmatpush2.bf16.msra.mxu1 %v5969_v17 }
 0x2d7   : > { %2339 = vmatprep.subr.bf16.mxu1 %v5973_v9  ;;  %2456 = vmatpush2.bf16.msra.mxu0 %v5711_v30  ;;  %v5989_v9 = vld [vmem:[%s4988_s9 + $0x250] ss:$24 sps:$4 sm:$0xff]   ;;  %v5993_v30 = vld [vmem:[%s4988_s9 + $0x224] ss:$24 sps:$4 sm:$0xff]  }
 0x2d8   : > { %2457 = vmatprep.subr.bf16.mxu0 %v5715_v35  ;;  %7296 = vst [vmem:[#allocation34_spill] sm:$0xff] %v5989_v9  ;;  %7297 = vst [vmem:[#allocation35_spill] sm:$0xff] %v5993_v30 }
 0x2da   : > { %2340 = vmatpush2.bf16.msra.mxu1 %v5979_v16 }
 0x2db   : > { %2341 = vmatprep.subr.bf16.mxu1 %v5983_v11  ;;  %2458 = vmatpush2.bf16.msra.mxu0 %v5721_v62  ;;  %v5999_v11 = vld [vmem:[%s4988_s9 + $0x220] ss:$24 sps:$4 sm:$0xff]  }
 0x2dc   : > { %2459 = vmatprep.subr.bf16.mxu0 %v5725_v2  ;;  %7298 = vst [vmem:[#allocation36_spill] sm:$0xff] %v5999_v11  ;;  %v6003_v2 = vld [vmem:[%s4988_s9 + $0x1f4] ss:$24 sps:$4 sm:$0xff]  }
 0x2dd   : > { %7299 = vst [vmem:[#allocation37_spill] sm:$0xff] %v6003_v2 }
 0x2de   : > { %2342 = vmatpush2.bf16.msra.mxu1 %v5989_v9 }
 0x2df   : > { %2343 = vmatprep.subr.bf16.mxu1 %v5993_v30  ;;  %2460 = vmatpush2.bf16.msra.mxu0 %v5731_v8  ;;  %v6009_v30 = vld [vmem:[%s4988_s9 + $0x1f0] ss:$24 sps:$4 sm:$0xff]  }
 0x2e0   : > { %2461 = vmatprep.subr.bf16.mxu0 %v5735_v58  ;;  %7300 = vst [vmem:[#allocation38_spill] sm:$0xff] %v6009_v30  ;;  %v6013_v58 = vld [vmem:[%s4988_s9 + $0x1c4] ss:$24 sps:$4 sm:$0xff]  }
 0x2e1   : > { %7301 = vst [vmem:[#allocation39_spill] sm:$0xff] %v6013_v58 }
 0x2e2   : > { %2344 = vmatpush2.bf16.msra.mxu1 %v5999_v11 }
 0x2e3   : > { %2345 = vmatprep.subr.bf16.mxu1 %v6003_v2  ;;  %2462 = vmatpush2.bf16.msra.mxu0 %v5741_v51  ;;  %v6019_v2 = vld [vmem:[%s4988_s9 + $0x1c0] ss:$24 sps:$4 sm:$0xff]   ;;  %v6023_v51 = vld [vmem:[%s4988_s9 + $0x194] ss:$24 sps:$4 sm:$0xff]  }
 0x2e4   : > { %2463 = vmatprep.subr.bf16.mxu0 %v5745_v37  ;;  %7302 = vst [vmem:[#allocation40_spill] sm:$0xff] %v6019_v2  ;;  %7303 = vst [vmem:[#allocation41_spill] sm:$0xff] %v6023_v51  ;;  %v6027_v37 = vld [vmem:[%s4988_s9 + $0x1b0] ss:$24 sps:$4 sm:$0xff]  }
 0x2e5   : > { %7304 = vst [vmem:[#allocation42_spill] sm:$0xff] %v6027_v37 }
 0x2e6   : > { %2346 = vmatpush2.bf16.msra.mxu1 %v6009_v30  ;;  %v6031_v30 = vld [vmem:[%s4988_s9 + $0x184] ss:$24 sps:$4 sm:$0xff]  }
 0x2e7   : > { %2347 = vmatprep.subr.bf16.mxu1 %v6013_v58  ;;  %2464 = vmatpush2.bf16.msra.mxu0 %v5751_v39  ;;  %7305 = vst [vmem:[#allocation43_spill] sm:$0xff] %v6031_v30  ;;  %v6035_v58 = vld [vmem:[%s4988_s9 + $0x190] ss:$24 sps:$4 sm:$0xff]  }
 0x2e8   : > { %2465 = vmatprep.subr.bf16.mxu0 %v5755_v41  ;;  %7306 = vst [vmem:[#allocation44_spill] sm:$0xff] %v6035_v58  ;;  %v6040_v41 = vld [vmem:[%s4988_s9 + $0x180] ss:$24 sps:$4 sm:$0xff]  }
 0x2e9   : > { %7307 = vst [vmem:[#allocation45_spill] sm:$0xff] %v6040_v41 }
 0x2ea   : > { %2348 = vmatpush2.bf16.msra.mxu1 %v6019_v2  ;;  %v6044_v2 = vld [vmem:[%s4988_s9 + $0x164] ss:$24 sps:$4 sm:$0xff]  }
 0x2eb   : > { %2349 = vmatprep.subr.bf16.mxu1 %v6023_v51  ;;  %2466 = vmatpush2.bf16.msra.mxu0 %v6027_v37  ;;  %7308 = vst [vmem:[#allocation46_spill] sm:$0xff] %v6044_v2  ;;  %v2227_v37 = vld [vmem:[%s2225_s20 + $0x8] sm:$0xff] }
 0x2ec   : > { %2467 = vmatprep.subr.bf16.mxu0 %v6031_v30 }
 0x2ee   : > { %2350 = vmatpush2.bf16.msra.mxu1 %v6035_v58 }
 0x2ef   : > { %2478 = vmatprep.subr.bf16.mxu1 %v5764_v43  ;;  %2468 = vmatpush2.bf16.msra.mxu0 %v6040_v41 }
 0x2f0   : > { %2519 = vmatprep.subr.bf16.mxu0 %v6044_v2 }
 0x2f1   : > { %2352 = vmatmul.mubr.bf16.vlgmr.msra.gmra.mxu1 %v5872_v28  ;;  %v7309_v28 = vld [vmem:[#allocation25_spill] sm:$0xff] }
 0x2f2   : > { %2479 = vmatpush1.bf16.msra.mxu1 %v5771_v46 }
 0x2f3   : > { %2480 = vmatprep.subr.bf16.mxu1 %v5775_v33  ;;  %v7310_v33 = vld [vmem:[#allocation26_spill] sm:$0xff] }
 0x2f6   : > { %2481 = vmatpush1.bf16.msra.mxu1 %v5779_v36  ;;  %v7311_v36 = vld [vmem:[#allocation27_spill] sm:$0xff] }
 0x2f7   : > { %2482 = vmatprep.subr.bf16.mxu1 %v5783_v0  ;;  %v7312_v0 = vld [vmem:[#allocation28_spill] sm:$0xff] }
 0x2fa   : > { %2483 = vmatpush1.bf16.msra.mxu1 %v5787_v44  ;;  %v7313_v44 = vld [vmem:[#allocation29_spill] sm:$0xff] }
 0x2fb   : > { %2484 = vmatprep.subr.bf16.mxu1 %v5791_v48  ;;  %v7314_v48 = vld [vmem:[#allocation30_spill] sm:$0xff] }
 0x2fe   : > { %2485 = vmatpush1.bf16.msra.mxu1 %v5795_v50  ;;  %v6064_v50 = vld [vmem:[%s4988_s9 + $0x2dc] ss:$24 sps:$4 sm:$0xff]  }
 0x2ff   : > { %2486 = vmatprep.subr.bf16.mxu1 %v5799_v52  ;;  %7315 = vst [vmem:[#allocation47_spill] sm:$0xff] %v6064_v50 }
 0x302   : > { %2487 = vmatpush1.bf16.msra.mxu1 %v5803_v55  ;;  %v6068_v55 = vld [vmem:[%s4988_s9 + $0x2d8] ss:$24 sps:$4 sm:$0xff]  }
 0x303   : > { %2488 = vmatprep.subr.bf16.mxu1 %v7309_v28  ;;  %7316 = vst [vmem:[#allocation48_spill] sm:$0xff] %v6068_v55 }
 0x306   : > { %2489 = vmatpush1.bf16.msra.mxu1 %v7310_v33  ;;  %v6072_v33 = vld [vmem:[%s4988_s9 + $0x2ac] ss:$24 sps:$4 sm:$0xff]  }
 0x307   : > { %2490 = vmatprep.subr.bf16.mxu1 %v7311_v36  ;;  %7317 = vst [vmem:[#allocation49_spill] sm:$0xff] %v6072_v33 }
 0x30a   : > { %2491 = vmatpush1.bf16.msra.mxu1 %v7312_v0  ;;  %v6076_v0 = vld [vmem:[%s4988_s9 + $0x2a8] ss:$24 sps:$4 sm:$0xff]  }
 0x30b   : > { %2492 = vmatprep.subr.bf16.mxu1 %v7313_v44  ;;  %7318 = vst [vmem:[#allocation50_spill] sm:$0xff] %v6076_v0  ;;  %v6104_v44 = vld [vmem:[%s4988_s9 + $0x1ec] ss:$24 sps:$4 sm:$0xff]  }
 0x30c   : > { %7325 = vst [vmem:[#allocation57_spill] sm:$0xff] %v6104_v44 }
 0x30e   : > { %2493 = vmatpush1.bf16.msra.mxu1 %v7314_v48  ;;  %v6080_v48 = vld [vmem:[%s4988_s9 + $0x27c] ss:$24 sps:$4 sm:$0xff]  }
 0x30f   : > { %2494 = vmatprep.subr.bf16.mxu1 %v6064_v50  ;;  %7319 = vst [vmem:[#allocation51_spill] sm:$0xff] %v6080_v48  ;;  %v6084_v50 = vld [vmem:[%s4988_s9 + $0x278] ss:$24 sps:$4 sm:$0xff]  }
 0x310   : > { %7320 = vst [vmem:[#allocation52_spill] sm:$0xff] %v6084_v50 }
 0x312   : > { %2495 = vmatpush2.bf16.msra.mxu1 %v6068_v55  ;;  %v6088_v55 = vld [vmem:[%s4988_s9 + $0x24c] ss:$24 sps:$4 sm:$0xff]  }
 0x313   : > { %2496 = vmatprep.subr.bf16.mxu1 %v6072_v33  ;;  %7321 = vst [vmem:[#allocation53_spill] sm:$0xff] %v6088_v55  ;;  %v6092_v33 = vld [vmem:[%s4988_s9 + $0x248] ss:$24 sps:$4 sm:$0xff]  }
 0x314   : > { %7322 = vst [vmem:[#allocation54_spill] sm:$0xff] %v6092_v33 }
 0x316   : > { %2497 = vmatpush2.bf16.msra.mxu1 %v6076_v0  ;;  %v6096_v0 = vld [vmem:[%s4988_s9 + $0x21c] ss:$24 sps:$4 sm:$0xff]  }
 0x317   : > { %2498 = vmatprep.subr.bf16.mxu1 %v6080_v48  ;;  %7323 = vst [vmem:[#allocation55_spill] sm:$0xff] %v6096_v0  ;;  %v6100_v48 = vld [vmem:[%s4988_s9 + $0x218] ss:$24 sps:$4 sm:$0xff]  }
 0x318   : > { %7324 = vst [vmem:[#allocation56_spill] sm:$0xff] %v6100_v48 }
 0x31a   : > { %2499 = vmatpush2.bf16.msra.mxu1 %v6084_v50  ;;  %v6108_v50 = vld [vmem:[%s4988_s9 + $0x1e8] ss:$24 sps:$4 sm:$0xff]  }
 0x31b   : > { %2500 = vmatprep.subr.bf16.mxu1 %v6088_v55  ;;  %7326 = vst [vmem:[#allocation58_spill] sm:$0xff] %v6108_v50  ;;  %v6112_v55 = vld [vmem:[%s4988_s9 + $0x1bc] ss:$24 sps:$4 sm:$0xff]  }
 0x31c   : > { %7327 = vst [vmem:[#allocation59_spill] sm:$0xff] %v6112_v55 }
 0x31e   : > { %2501 = vmatpush2.bf16.msra.mxu1 %v6092_v33  ;;  %v6116_v33 = vld [vmem:[%s4988_s9 + $0x1b8] ss:$24 sps:$4 sm:$0xff]  }
 0x31f   : > { %2502 = vmatprep.subr.bf16.mxu1 %v6096_v0  ;;  %7328 = vst [vmem:[#allocation60_spill] sm:$0xff] %v6116_v33  ;;  %v6120_v0 = vld [vmem:[%s4988_s9 + $0x18c] ss:$24 sps:$4 sm:$0xff]  }
 0x320   : > { %7329 = vst [vmem:[#allocation61_spill] sm:$0xff] %v6120_v0 }
 0x322   : > { %2503 = vmatpush2.bf16.msra.mxu1 %v6100_v48  ;;  %v6124_v48 = vld [vmem:[%s4988_s9 + $0x188] ss:$24 sps:$4 sm:$0xff]  }
 0x323   : > { %2504 = vmatprep.subr.bf16.mxu1 %v6104_v44  ;;  %7330 = vst [vmem:[#allocation62_spill] sm:$0xff] %v6124_v48  ;;  %v7331_v44 = vld [vmem:[#allocation31_spill] sm:$0xff] }
 0x326   : > { %2505 = vmatpush2.bf16.msra.mxu1 %v6108_v50 }
 0x327   : > { %2506 = vmatprep.subr.bf16.mxu1 %v6112_v55 }
 0x32a   : > { %2507 = vmatpush2.bf16.msra.mxu1 %v6116_v33 }
 0x32b   : > { %2508 = vmatprep.subr.bf16.mxu1 %v6120_v0  ;;  %v2226_v0 = vld [vmem:[%s2225_s20] sm:$0xff] }
 0x32c   : > { %v2229_v33 = vunpack.c.l.bf16 %v2226_v0 }
 0x32e   : > { %2509 = vmatpush2.bf16.msra.mxu1 %v6124_v48  ;;  %v2230_v48 = vunpack.c.h.bf16 %v2226_v0  ;;  %v2228_v0 = vld [vmem:[%s2225_s20 + $0x10] sm:$0xff]  ;;  %s4190_s20 = smul.u32 24, %s6917_s19 }
 0x32f   : > { %2637 = vmatprep.subr.bf16.mxu1 %v7331_v44 }
 0x330   : > { %s3025_s26 = scalar_lea.vmem [#allocation2], %s4190_s20 }
 0x371   : > { %v2271_v50 = vpop.f32.mrf.mxu1  ;;  %v2312_v36 = vpop.f32.mrf.mxu0 }
 0x372   : > { %v2360_v43 = vadd.f32 %v2271_v50, %v2229_v33  ;;  %v2233_v50 = vunpack.c.l.bf16 %v2228_v0 }
 0x373   : > { %v2273_v28 = vpop.f32.mrf.mxu1  ;;  %v2314_v52 = vpop.f32.mrf.mxu0 }
 0x374   : > { %v2361_v58 = vadd.f32 %v2273_v28, %v2230_v48  ;;  %v4071_v44 = vmul.f32 -1.442695, %v2360_v43 }
 0x375   : > { %v2275_v55 = vpop.f32.mrf.mxu1  ;;  %v2316_v46 = vpop.f32.mrf.mxu0 }
 0x376   : > { %v4072_v30 = vmul.f32 -1.442695, %v2361_v58  ;;  %4553 = vpow2.f32 %v4071_v44  ;;  %v2231_v55 = vunpack.c.l.bf16 %v2227_v37 }
 0x377   : > { %v2276_v2 = vpop.f32.mrf.mxu1  ;;  %v2317_v41 = vpop.f32.mrf.mxu0 }
 0x378   : > { %4555 = vpow2.f32 %v4072_v30  ;;  %v2374_v46 = vadd.f32 %v2312_v36, %v2231_v55  ;;  %v2232_v2 = vunpack.c.h.bf16 %v2227_v37 }
 0x37a   : > { %v2375_v41 = vadd.f32 %v2314_v52, %v2232_v2  ;;  %v4073_v51 = vmul.f32 -1.442695, %v2374_v46 }
 0x37c   : > { %v4074_v39 = vmul.f32 -1.442695, %v2375_v41  ;;  %4557 = vpow2.f32 %v4073_v51 }
 0x37e   : > { %4559 = vpow2.f32 %v4074_v39 }
 0x383   : > { %v4554_v11 = vpop.eup %4553 }
 0x384   : > { %v2368_v9 = vadd.f32 1.0, %v4554_v11 }
 0x385   : > { %v4556_v8 = vpop.eup %4555 }
 0x386   : > { %v2369_v62 = vadd.f32 1.0, %v4556_v8  ;;  %4561 = vrcp.f32 %v2368_v9 }
 0x388   : > { %4563 = vrcp.f32 %v2369_v62  ;;  %v2234_v62 = vunpack.c.h.bf16 %v2228_v0 }
 0x389   : > { %v4558_v33 = vpop.eup %4557 }
 0x38a   : > { %v2382_v58 = vadd.f32 1.0, %v4558_v33 }
 0x38b   : > { %v4560_v43 = vpop.eup %4559 }
 0x38c   : > { %v2383_v30 = vadd.f32 1.0, %v4560_v43  ;;  %4565 = vrcp.f32 %v2382_v58 }
 0x38e   : > { %4567 = vrcp.f32 %v2383_v30 }
 0x393   : > { %v4562_v37 = vpop.eup %4561 }
 0x395   : > { %v4564_v11 = vpop.eup %4563 }
 0x399   : > { %v4566_v46 = vpop.eup %4565 }
 0x39a   : > { %v2396_v41 = vsub.f32 1.0, %v4566_v46  ;;  %v2400_v43 = vmul.f32 %v4566_v46, %v5859_v56  ;;  %v7355_v46 = vld [vmem:[#allocation8_spill] sm:$0xff] }
 0x39b   : > { %v4568_v2 = vpop.eup %4567 }
 0x39c   : > { %v2397_v58 = vsub.f32 1.0, %v4568_v2  ;;  %v2401_v30 = vmul.f32 %v4568_v2, %v5861_v4  ;;  %v7356_v2 = vld [vmem:[#allocation45_spill] sm:$0xff] }
 0x3b1   : > { %v2353_v44 = vpop.f32.mrf.mxu1 }
 0x3b2   : > { %v2388_v36 = vadd.f32 %v2353_v44, %v5590_v26 }
 0x3b3   : > { %v2355_v48 = vpop.f32.mrf.mxu1 }
 0x3b4   : > { %v2390_v52 = vmul.f32 %v4562_v37, %v2388_v36  ;;  %v2389_v51 = vadd.f32 %v2355_v48, %v5594_v25 }
 0x3b5   : > { %v2357_v39 = vpop.f32.mrf.mxu1 }
 0x3b6   : > { %v2392_v8 = vadd.f32 %v2390_v52, %v2233_v50  ;;  %v2391_v9 = vmul.f32 %v4564_v11, %v2389_v51 }
 0x3b7   : > { %v2358_v28 = vpop.f32.mrf.mxu1 }
 0x3b8   : > { %4569 = vtanh.f32 %v2392_v8  ;;  %v2393_v55 = vadd.f32 %v2391_v9, %v2234_v62  ;;  %v7350_v8 = vld [vmem:[#allocation40_spill] sm:$0xff]  ;;  %v7351_v62 = vld [vmem:[#allocation41_spill] sm:$0xff]  ;;  %v7352_v9 = vld [vmem:[#allocation42_spill] sm:$0xff] }
 0x3b9   : > { %v7353_v28 = vld [vmem:[#allocation43_spill] sm:$0xff] }
 0x3ba   : > { %4571 = vtanh.f32 %v2393_v55  ;;  %v7354_v55 = vld [vmem:[#allocation44_spill] sm:$0xff] }
 0x3c5   : > { %v4570_v33 = vpop.eup %4569 }
 0x3c6   : > { %v2398_v44 = vmul.f32 %v4570_v33, %v2396_v41  ;;  %v7357_v41 = vld [vmem:[#allocation46_spill] sm:$0xff]  ;;  %v7358_v33 = vld [vmem:[#allocation9_spill] sm:$0xff] }
 0x3c7   : > { %v4572_v36 = vpop.eup %4571 }
 0x3c8   : > { %v2399_v37 = vmul.f32 %v4572_v36, %v2397_v58  ;;  %v6137_v48 = vadd.f32 %v2400_v43, %v2398_v44  ;;  %v7359_v43 = vld [vmem:[#allocation10_spill] sm:$0xff]  ;;  %v7360_v58 = vld [vmem:[#allocation12_spill] sm:$0xff] }
 0x3c9   : > { %v7361_v44 = vld [vmem:[#allocation14_spill] sm:$0xff]  ;;  %v7362_v36 = vld [vmem:[#allocation16_spill] sm:$0xff] }
 0x3ca   : > { %v6139_v0 = vadd.f32 %v2401_v30, %v2399_v37  ;;  %v2406_v50 = vmul.f32 0.01, %v6137_v48  ;;  %vm2404_vm4 = vcmp.ge.f32.partialorder %v6137_v48, 0.0  ;;  %v6150_v51 = vpack.c.bf16 %v6137_v48, %v6137_v48  ;;  %v7363_v37 = vld [vmem:[#allocation18_spill] sm:$0xff]  ;;  %v7364_v30 = vld [vmem:[#allocation20_spill] sm:$0xff] }
 0x3cc   : > { %vm2405_vm5 = vcmp.ge.f32.partialorder %v6139_v0, 0.0  ;;  %v2407_v52 = vmul.f32 0.01, %v6139_v0  ;;  %v2436_v56 = vpack.c.bf16 %v6139_v0, %v6139_v0  ;;  %v2408_v11 = vsel %vm2404_vm4, %v6137_v48, %v2406_v50  ;;  %v7365_v50 = vld [vmem:[#allocation21_spill] sm:$0xff] }
 0x3ce   : > { %v2409_v4 = vsel %vm2405_vm5, %v6139_v0, %v2407_v52  ;;  %2469 = vmatprep.mubr.bf16.mxu0 %v2436_v56  ;;  %2510 = vmatprep.mubr.bf16.mxu1 %v2436_v56  ;;  %v7366_v52 = vld [vmem:[#allocation23_spill] sm:$0xff] }
 0x3cf   : > { %v4179_v39 = vpack.c.bf16 %v2409_v4, %v2408_v11  ;;  %2470 = vmatmul.mubr.bf16.vlgmr.msra.gmra.mxu0 %v6150_v51  ;;  %2511 = vmatmul.mubr.bf16.vlgmr.msra.gmra.mxu1 %v6150_v51  ;;  %v7369_v4 = vld [vmem:[#allocation27_spill] sm:$0xff]  ;;  %v7370_v11 = vld [vmem:[#allocation28_spill] sm:$0xff] }
 0x3d0   : > { %2520 = vmatpush1.bf16.msra.mxu0 %v5879_v47  ;;  %2551 = vmatprep.mubr.bf16.mxu0 %v2436_v56  ;;  %v7367_v56 = vld [vmem:[#allocation25_spill] sm:$0xff] }
 0x3d1   : > { %2421 = vst [vmem:[%s2420_s27] sm:$0xff] %v4179_v39  ;;  %2521 = vmatprep.subr.bf16.mxu0 %v5883_v31  ;;  %2638 = vmatpush1.bf16.msra.mxu1 %v5621_v7  ;;  %v7332_v7 = vld [vmem:[#allocation11_spill] sm:$0xff]  ;;  %v7371_v39 = vld [vmem:[#allocation29_spill] sm:$0xff]  ;;  %s4192_s27 = sshll.u32 %s6917_s19, 3 }
 0x3d2   : > { %2639 = vmatprep.subr.bf16.mxu1 %v5625_v61  ;;  %v7333_v61 = vld [vmem:[#allocation32_spill] sm:$0xff]  ;;  %s3220_s28 = scalar_lea.vmem [#allocation3], %s4192_s27 }
 0x3d4   : > { %2522 = vmatpush1.bf16.msra.mxu0 %v5889_v14 }
 0x3d5   : > { %2523 = vmatprep.subr.bf16.mxu0 %v5893_v12  ;;  %2640 = vmatpush1.bf16.msra.mxu1 %v5631_v5  ;;  %v7334_v5 = vld [vmem:[#allocation13_spill] sm:$0xff] }
 0x3d6   : > { %2641 = vmatprep.subr.bf16.mxu1 %v5635_v13  ;;  %v7335_v13 = vld [vmem:[#allocation33_spill] sm:$0xff] }
 0x3d8   : > { %2524 = vmatpush1.bf16.msra.mxu0 %v5899_v60 }
 0x3d9   : > { %2525 = vmatprep.subr.bf16.mxu0 %v5903_v63  ;;  %2642 = vmatpush1.bf16.msra.mxu1 %v5641_v20  ;;  %v7336_v20 = vld [vmem:[#allocation15_spill] sm:$0xff] }
 0x3da   : > { %2643 = vmatprep.subr.bf16.mxu1 %v5645_v21  ;;  %v7337_v21 = vld [vmem:[#allocation17_spill] sm:$0xff] }
 0x3dc   : > { %2526 = vmatpush1.bf16.msra.mxu0 %v5909_v57 }
 0x3dd   : > { %2527 = vmatprep.subr.bf16.mxu0 %v5913_v59  ;;  %2644 = vmatpush1.bf16.msra.mxu1 %v5651_v24  ;;  %v7338_v24 = vld [vmem:[#allocation34_spill] sm:$0xff] }
 0x3de   : > { %2645 = vmatprep.subr.bf16.mxu1 %v5655_v18  ;;  %v7339_v18 = vld [vmem:[#allocation35_spill] sm:$0xff] }
 0x3e0   : > { %2528 = vmatpush1.bf16.msra.mxu0 %v5919_v45 }
 0x3e1   : > { %2529 = vmatprep.subr.bf16.mxu0 %v5923_v53  ;;  %2646 = vmatpush1.bf16.msra.mxu1 %v5661_v34  ;;  %v7340_v34 = vld [vmem:[#allocation19_spill] sm:$0xff] }
 0x3e2   : > { %2647 = vmatprep.subr.bf16.mxu1 %v5665_v29  ;;  %v7341_v29 = vld [vmem:[#allocation22_spill] sm:$0xff] }
 0x3e4   : > { %2530 = vmatpush1.bf16.msra.mxu0 %v5929_v54 }
 0x3e5   : > { %2531 = vmatprep.subr.bf16.mxu0 %v5933_v1  ;;  %2648 = vmatpush1.bf16.msra.mxu1 %v5671_v32  ;;  %v7342_v32 = vld [vmem:[#allocation36_spill] sm:$0xff] }
 0x3e6   : > { %2649 = vmatprep.subr.bf16.mxu1 %v5675_v40  ;;  %v7343_v40 = vld [vmem:[#allocation37_spill] sm:$0xff] }
 0x3e8   : > { %2532 = vmatpush1.bf16.msra.mxu0 %v5939_v49 }
 0x3e9   : > { %2533 = vmatprep.subr.bf16.mxu0 %v5943_v42  ;;  %2650 = vmatpush1.bf16.msra.mxu1 %v5681_v38  ;;  %v7344_v38 = vld [vmem:[#allocation24_spill] sm:$0xff] }
 0x3ea   : > { %2651 = vmatprep.subr.bf16.mxu1 %v5685_v15  ;;  %v7345_v15 = vld [vmem:[#allocation5_spill] sm:$0xff] }
 0x3ec   : > { %2534 = vmatpush1.bf16.msra.mxu0 %v5949_v3 }
 0x3ed   : > { %2535 = vmatprep.subr.bf16.mxu0 %v5953_v6  ;;  %2652 = vmatpush1.bf16.msra.mxu1 %v5691_v19  ;;  %v7346_v19 = vld [vmem:[#allocation38_spill] sm:$0xff] }
 0x3ee   : > { %2653 = vmatprep.subr.bf16.mxu1 %v5695_v23  ;;  %v7347_v23 = vld [vmem:[#allocation39_spill] sm:$0xff] }
 0x3f0   : > { %2536 = vmatpush2.bf16.msra.mxu0 %v5959_v27 }
 0x3f1   : > { %2537 = vmatprep.subr.bf16.mxu0 %v5963_v10  ;;  %2654 = vmatpush2.bf16.msra.mxu1 %v7332_v7  ;;  %v7372_v7 = vld [vmem:[#allocation30_spill] sm:$0xff] }
 0x3f2   : > { %2655 = vmatprep.subr.bf16.mxu1 %v5705_v22  ;;  %v7348_v22 = vld [vmem:[#allocation6_spill] sm:$0xff] }
 0x3f4   : > { %2538 = vmatpush2.bf16.msra.mxu0 %v5969_v17 }
 0x3f5   : > { %2539 = vmatprep.subr.bf16.mxu0 %v7333_v61  ;;  %2656 = vmatpush2.bf16.msra.mxu1 %v7334_v5  ;;  %v7373_v5 = vld [vmem:[#allocation47_spill] sm:$0xff] }
 0x3f6   : > { %2657 = vmatprep.subr.bf16.mxu1 %v5715_v35  ;;  %v7349_v35 = vld [vmem:[#allocation7_spill] sm:$0xff] }
 0x3f8   : > { %2540 = vmatpush2.bf16.msra.mxu0 %v5979_v16 }
 0x3f9   : > { %2541 = vmatprep.subr.bf16.mxu0 %v7335_v13  ;;  %2658 = vmatpush2.bf16.msra.mxu1 %v7336_v20  ;;  %v7374_v20 = vld [vmem:[#allocation48_spill] sm:$0xff] }
 0x3fa   : > { %2659 = vmatprep.subr.bf16.mxu1 %v7337_v21  ;;  %v7375_v21 = vld [vmem:[#allocation49_spill] sm:$0xff] }
 0x3fc   : > { %2542 = vmatpush2.bf16.msra.mxu0 %v7338_v24 }
 0x3fd   : > { %2543 = vmatprep.subr.bf16.mxu0 %v7339_v18  ;;  %2660 = vmatpush2.bf16.msra.mxu1 %v7340_v34  ;;  %v7376_v34 = vld [vmem:[#allocation50_spill] sm:$0xff] }
 0x3fe   : > { %2661 = vmatprep.subr.bf16.mxu1 %v7341_v29  ;;  %v7377_v29 = vld [vmem:[#allocation51_spill] sm:$0xff] }
 0x400   : > { %2544 = vmatpush2.bf16.msra.mxu0 %v7342_v32 }
 0x401   : > { %2545 = vmatprep.subr.bf16.mxu0 %v7343_v40  ;;  %2662 = vmatpush2.bf16.msra.mxu1 %v7344_v38  ;;  %v7378_v38 = vld [vmem:[#allocation52_spill] sm:$0xff] }
 0x402   : > { %2663 = vmatprep.subr.bf16.mxu1 %v7345_v15  ;;  %v7379_v15 = vld [vmem:[#allocation53_spill] sm:$0xff] }
 0x404   : > { %2546 = vmatpush2.bf16.msra.mxu0 %v7346_v19 }
 0x405   : > { %2547 = vmatprep.subr.bf16.mxu0 %v7347_v23  ;;  %2664 = vmatpush2.bf16.msra.mxu1 %v7348_v22  ;;  %v7380_v22 = vld [vmem:[#allocation54_spill] sm:$0xff] }
 0x406   : > { %2665 = vmatprep.subr.bf16.mxu1 %v7349_v35  ;;  %v7381_v35 = vld [vmem:[#allocation55_spill] sm:$0xff] }
 0x408   : > { %2548 = vmatpush2.bf16.msra.mxu0 %v7350_v8 }
 0x409   : > { %2549 = vmatprep.subr.bf16.mxu0 %v7351_v62  ;;  %2666 = vmatpush2.bf16.msra.mxu1 %v7352_v9 }
 0x40a   : > { %2667 = vmatprep.subr.bf16.mxu1 %v7353_v28 }
 0x40c   : > { %2550 = vmatpush2.bf16.msra.mxu0 %v7354_v55 }
 0x40d   : > { %2678 = vmatprep.subr.bf16.mxu0 %v7355_v46  ;;  %2668 = vmatpush2.bf16.msra.mxu1 %v7356_v2  ;;  %v7382_v46 = vld [vmem:[#allocation56_spill] sm:$0xff] }
 0x40e   : > { %2719 = vmatprep.subr.bf16.mxu1 %v7357_v41 }
 0x40f   : > { %2552 = vmatmul.mubr.bf16.vlgmr.msra.gmra.mxu0 %v6150_v51  ;;  %v7368_v51 = vld [vmem:[#allocation26_spill] sm:$0xff] }
 0x410   : > { %2679 = vmatpush1.bf16.msra.mxu0 %v7358_v33  ;;  %v7383_v33 = vld [vmem:[#allocation57_spill] sm:$0xff] }
 0x411   : > { %2680 = vmatprep.subr.bf16.mxu0 %v7359_v43  ;;  %v7384_v43 = vld [vmem:[#allocation58_spill] sm:$0xff] }
 0x414   : > { %2681 = vmatpush1.bf16.msra.mxu0 %v7360_v58  ;;  %v7385_v58 = vld [vmem:[#allocation59_spill] sm:$0xff] }
 0x415   : > { %2682 = vmatprep.subr.bf16.mxu0 %v7361_v44  ;;  %v7386_v44 = vld [vmem:[#allocation60_spill] sm:$0xff] }
 0x418   : > { %2683 = vmatpush1.bf16.msra.mxu0 %v7362_v36  ;;  %v7387_v36 = vld [vmem:[#allocation61_spill] sm:$0xff] }
 0x419   : > { %2684 = vmatprep.subr.bf16.mxu0 %v7363_v37  ;;  %v7388_v37 = vld [vmem:[#allocation62_spill] sm:$0xff] }
 0x41c   : > { %2685 = vmatpush1.bf16.msra.mxu0 %v7364_v30  ;;  %v7389_v30 = vld [vmem:[#allocation31_spill] sm:$0xff] }
 0x41d   : > { %2686 = vmatprep.subr.bf16.mxu0 %v7365_v50 }
 0x420   : > { %2687 = vmatpush1.bf16.msra.mxu0 %v7366_v52 }
 0x421   : > { %2688 = vmatprep.subr.bf16.mxu0 %v7367_v56 }
 0x424   : > { %2689 = vmatpush1.bf16.msra.mxu0 %v7368_v51 }
 0x425   : > { %2690 = vmatprep.subr.bf16.mxu0 %v7369_v4 }
 0x428   : > { %2691 = vmatpush1.bf16.msra.mxu0 %v7370_v11 }
 0x429   : > { %2692 = vmatprep.subr.bf16.mxu0 %v7371_v39 }
 0x42c   : > { %2693 = vmatpush1.bf16.msra.mxu0 %v7372_v7 }
 0x42d   : > { %2694 = vmatprep.subr.bf16.mxu0 %v7373_v5 }
 0x430   : > { %2695 = vmatpush2.bf16.msra.mxu0 %v7374_v20 }
 0x431   : > { %2696 = vmatprep.subr.bf16.mxu0 %v7375_v21 }
 0x434   : > { %2697 = vmatpush2.bf16.msra.mxu0 %v7376_v34 }
 0x435   : > { %2698 = vmatprep.subr.bf16.mxu0 %v7377_v29 }
 0x438   : > { %2699 = vmatpush2.bf16.msra.mxu0 %v7378_v38 }
 0x439   : > { %2700 = vmatprep.subr.bf16.mxu0 %v7379_v15 }
 0x43c   : > { %2701 = vmatpush2.bf16.msra.mxu0 %v7380_v22 }
 0x43d   : > { %2702 = vmatprep.subr.bf16.mxu0 %v7381_v35 }
 0x440   : > { %2703 = vmatpush2.bf16.msra.mxu0 %v7382_v46  ;;  %v2427_v46 = vld [vmem:[%s2425_s30 + $0x8] sm:$0xff] }
 0x441   : > { %2704 = vmatprep.subr.bf16.mxu0 %v7383_v33 }
 0x444   : > { %2705 = vmatpush2.bf16.msra.mxu0 %v7384_v43 }
 0x445   : > { %2706 = vmatprep.subr.bf16.mxu0 %v7385_v58 }
 0x448   : > { %2707 = vmatpush2.bf16.msra.mxu0 %v7386_v44  ;;  %v2426_v44 = vld [vmem:[%s2425_s30] sm:$0xff] }
 0x449   : > { %2708 = vmatprep.subr.bf16.mxu0 %v7387_v36  ;;  %v2429_v36 = vunpack.c.l.bf16 %v2426_v44 }
 0x44c   : > { %2709 = vmatpush2.bf16.msra.mxu0 %v7388_v37  ;;  %v2430_v37 = vunpack.c.h.bf16 %v2426_v44 }
 0x44d   : > { %2837 = vmatprep.subr.bf16.mxu0 %v7389_v30 }
 0x48f   : > { %v2471_v50 = vpop.f32.mrf.mxu0  ;;  %v2512_v52 = vpop.f32.mrf.mxu1 }
 0x490   : > { %v2560_v58 = vadd.f32 %v2471_v50, %v2429_v36  ;;  %v2428_v36 = vld [vmem:[%s2425_s30 + $0x10] sm:$0xff] }
 0x491   : > { %v2473_v56 = vpop.f32.mrf.mxu0  ;;  %v2514_v51 = vpop.f32.mrf.mxu1 }
 0x492   : > { %v2561_v43 = vadd.f32 %v2473_v56, %v2430_v37  ;;  %v4079_v30 = vmul.f32 -1.442695, %v2560_v58  ;;  %v2433_v56 = vunpack.c.l.bf16 %v2428_v36 }
 0x493   : > { %v2475_v4 = vpop.f32.mrf.mxu0  ;;  %v2516_v11 = vpop.f32.mrf.mxu1 }
 0x494   : > { %v4080_v33 = vmul.f32 -1.442695, %v2561_v43  ;;  %4573 = vpow2.f32 %v4079_v30  ;;  %v2431_v4 = vunpack.c.l.bf16 %v2427_v46 }
 0x495   : > { %v2476_v39 = vpop.f32.mrf.mxu0  ;;  %v2517_v7 = vpop.f32.mrf.mxu1 }
 0x496   : > { %4575 = vpow2.f32 %v4080_v33  ;;  %v2574_v11 = vadd.f32 %v2512_v52, %v2431_v4  ;;  %v2432_v39 = vunpack.c.h.bf16 %v2427_v46 }
 0x498   : > { %v2575_v7 = vadd.f32 %v2514_v51, %v2432_v39  ;;  %v4081_v35 = vmul.f32 -1.442695, %v2574_v11 }
 0x49a   : > { %v4082_v22 = vmul.f32 -1.442695, %v2575_v7  ;;  %4577 = vpow2.f32 %v4081_v35 }
 0x49c   : > { %4579 = vpow2.f32 %v4082_v22 }
 0x4a1   : > { %v4574_v15 = vpop.eup %4573 }
 0x4a2   : > { %v2568_v29 = vadd.f32 1.0, %v4574_v15 }
 0x4a3   : > { %v4576_v38 = vpop.eup %4575 }
 0x4a4   : > { %v2569_v34 = vadd.f32 1.0, %v4576_v38  ;;  %4581 = vrcp.f32 %v2568_v29 }
 0x4a6   : > { %4583 = vrcp.f32 %v2569_v34  ;;  %v2434_v34 = vunpack.c.h.bf16 %v2428_v36 }
 0x4a7   : > { %v4578_v44 = vpop.eup %4577 }
 0x4a8   : > { %v2582_v43 = vadd.f32 1.0, %v4578_v44 }
 0x4a9   : > { %v4580_v58 = vpop.eup %4579 }
 0x4aa   : > { %v2583_v33 = vadd.f32 1.0, %v4580_v58  ;;  %4585 = vrcp.f32 %v2582_v43 }
 0x4ac   : > { %4587 = vrcp.f32 %v2583_v33 }
 0x4b1   : > { %v4582_v46 = vpop.eup %4581 }
 0x4b3   : > { %v4584_v15 = vpop.eup %4583 }
 0x4b7   : > { %v4586_v11 = vpop.eup %4585 }
 0x4b8   : > { %v2596_v7 = vsub.f32 1.0, %v4586_v11  ;;  %v2600_v58 = vmul.f32 %v4586_v11, %v6137_v48  ;;  %v6478_v11 = vld [vmem:[%s4988_s9 + $0x3c] ss:$24 sps:$4 sm:$0xff]  }
 0x4b9   : > { %v4588_v39 = vpop.eup %4587  ;;  %7412 = vst [vmem:[#allocation44_spill] sm:$0xff] %v6478_v11 }
 0x4ba   : > { %v2597_v43 = vsub.f32 1.0, %v4588_v39  ;;  %v2601_v33 = vmul.f32 %v4588_v39, %v6139_v0  ;;  %v6482_v39 = vld [vmem:[%s4988_s9 + $0x38] ss:$24 sps:$4 sm:$0xff]  }
 0x4bb   : > { %7413 = vst [vmem:[#allocation8_spill] sm:$0xff] %v6482_v39 }
 0x4cf   : > { %v2553_v37 = vpop.f32.mrf.mxu0 }
 0x4d0   : > { %v2588_v50 = vadd.f32 %v2553_v37, %v5590_v26 }
 0x4d1   : > { %v2555_v52 = vpop.f32.mrf.mxu0 }
 0x4d2   : > { %v2590_v51 = vmul.f32 %v4582_v46, %v2588_v50  ;;  %v2589_v35 = vadd.f32 %v2555_v52, %v5594_v25 }
 0x4d3   : > { %v2557_v22 = vpop.f32.mrf.mxu0 }
 0x4d4   : > { %v2592_v29 = vadd.f32 %v2590_v51, %v2433_v56  ;;  %v2591_v38 = vmul.f32 %v4584_v15, %v2589_v35 }
 0x4d5   : > { %v2558_v30 = vpop.f32.mrf.mxu0 }
 0x4d6   : > { %4589 = vtanh.f32 %v2592_v29  ;;  %v2593_v4 = vadd.f32 %v2591_v38, %v2434_v34  ;;  %v6284_v29 = vld [vmem:[%s4988_s9 + $0x150] ss:$24 sps:$4 sm:$0xff]   ;;  %v6288_v34 = vld [vmem:[%s4988_s9 + $0x124] ss:$24 sps:$4 sm:$0xff]   ;;  %v6298_v38 = vld [vmem:[%s4988_s9 + $0xf4] ss:$24 sps:$4 sm:$0xff]  }
 0x4d7   : > { %v6470_v30 = vld [vmem:[%s4988_s9 + $0x6c] ss:$24 sps:$4 sm:$0xff]  }
 0x4d8   : > { %4591 = vtanh.f32 %v2593_v4  ;;  %7410 = vst [vmem:[#allocation42_spill] sm:$0xff] %v6470_v30  ;;  %v6474_v4 = vld [vmem:[%s4988_s9 + $0x68] ss:$24 sps:$4 sm:$0xff]  }
 0x4d9   : > { %7411 = vst [vmem:[#allocation43_spill] sm:$0xff] %v6474_v4 }
 0x4e3   : > { %v4590_v44 = vpop.eup %4589 }
 0x4e4   : > { %v2598_v37 = vmul.f32 %v4590_v44, %v2596_v7  ;;  %v6486_v7 = vld [vmem:[%s4988_s9 + $0xc] ss:$24 sps:$4 sm:$0xff]   ;;  %v6490_v44 = vld [vmem:[%s4988_s9 + $0x8] ss:$24 sps:$4 sm:$0xff]  }
 0x4e5   : > { %v4592_v50 = vpop.eup %4591  ;;  %7414 = vst [vmem:[#allocation45_spill] sm:$0xff] %v6486_v7  ;;  %7415 = vst [vmem:[#allocation46_spill] sm:$0xff] %v6490_v44 }
 0x4e6   : > { %v2599_v46 = vmul.f32 %v4592_v50, %v2597_v43  ;;  %v6262_v52 = vadd.f32 %v2600_v58, %v2598_v37  ;;  %v7416_v58 = vld [vmem:[#allocation50_spill] sm:$0xff]  ;;  %v7417_v43 = vld [vmem:[#allocation51_spill] sm:$0xff]  ;;  %v7418_v37 = vld [vmem:[#allocation52_spill] sm:$0xff] }
 0x4e7   : > { %v7419_v50 = vld [vmem:[#allocation53_spill] sm:$0xff] }
 0x4e8   : > { %v6264_v36 = vadd.f32 %v2601_v33, %v2599_v46  ;;  %v2606_v56 = vmul.f32 0.01, %v6262_v52  ;;  %vm2604_vm6 = vcmp.ge.f32.partialorder %v6262_v52, 0.0  ;;  %v6275_v0 = vpack.c.bf16 %v6262_v52, %v6262_v52  ;;  %v7420_v46 = vld [vmem:[#allocation54_spill] sm:$0xff]  ;;  %v7421_v33 = vld [vmem:[#allocation55_spill] sm:$0xff] }
 0x4ea   : > { %vm2605_vm7 = vcmp.ge.f32.partialorder %v6264_v36, 0.0  ;;  %v2607_v48 = vmul.f32 0.01, %v6264_v36  ;;  %v2636_v51 = vpack.c.bf16 %v6264_v36, %v6264_v36  ;;  %v2608_v15 = vsel %vm2604_vm6, %v6262_v52, %v2606_v56  ;;  %v7422_v56 = vld [vmem:[#allocation56_spill] sm:$0xff] }
 0x4ec   : > { %v2609_v35 = vsel %vm2605_vm7, %v6264_v36, %v2607_v48  ;;  %2669 = vmatprep.mubr.bf16.mxu1 %v2636_v51  ;;  %2710 = vmatprep.mubr.bf16.mxu0 %v2636_v51  ;;  %v7424_v48 = vld [vmem:[#allocation58_spill] sm:$0xff] }
 0x4ed   : > { %v4182_v22 = vpack.c.bf16 %v2609_v35, %v2608_v15  ;;  %2670 = vmatmul.mubr.bf16.vlgmr.msra.gmra.mxu1 %v6275_v0  ;;  %2711 = vmatmul.mubr.bf16.vlgmr.msra.gmra.mxu0 %v6275_v0  ;;  %v6510_v35 = vld [vmem:[%s4988_s9 + $0x154] ss:$24 sps:$4 sm:$0xff]  }
 0x4ee   : > { %2720 = vmatpush1.bf16.msra.mxu1 %v5879_v47  ;;  %2751 = vmatprep.mubr.bf16.mxu1 %v2636_v51  ;;  %v6294_v47 = vld [vmem:[%s4988_s9 + $0x120] ss:$24 sps:$4 sm:$0xff]   ;;  %7429 = vst [vmem:[#allocation9_spill] sm:$0xff] %v6510_v35 }
 0x4ef   : > { %2621 = vst [vmem:[%s2620_s8] sm:$0xff] %v4182_v22  ;;  %2721 = vmatprep.subr.bf16.mxu1 %v5883_v31  ;;  %2838 = vmatpush1.bf16.msra.mxu0 %v6284_v29  ;;  %v6304_v31 = vld [vmem:[%s4988_s9 + $0xf0] ss:$24 sps:$4 sm:$0xff]   ;;  %v7427_v51 = vld [vmem:[#allocation61_spill] sm:$0xff]  ;;  %s410_s8 = scalar_lea.vmem %s7012_s5, %s4144_s29 }
 0x4f0   : > { %2839 = vmatprep.subr.bf16.mxu0 %v6288_v34 }
 0x4f2   : > { %2722 = vmatpush1.bf16.msra.mxu1 %v5889_v14  ;;  %v6308_v14 = vld [vmem:[%s4988_s9 + $0xc4] ss:$24 sps:$4 sm:$0xff]  }
 0x4f3   : > { %2723 = vmatprep.subr.bf16.mxu1 %v5893_v12  ;;  %2840 = vmatpush1.bf16.msra.mxu0 %v6294_v47  ;;  %v6314_v12 = vld [vmem:[%s4988_s9 + $0xc0] ss:$24 sps:$4 sm:$0xff]  }
 0x4f4   : > { %2841 = vmatprep.subr.bf16.mxu0 %v6298_v38 }
 0x4f6   : > { %2724 = vmatpush1.bf16.msra.mxu1 %v5899_v60  ;;  %v6318_v60 = vld [vmem:[%s4988_s9 + $0x94] ss:$24 sps:$4 sm:$0xff]  }
 0x4f7   : > { %2725 = vmatprep.subr.bf16.mxu1 %v5903_v63  ;;  %2842 = vmatpush1.bf16.msra.mxu0 %v6304_v31  ;;  %v6324_v63 = vld [vmem:[%s4988_s9 + $0x90] ss:$24 sps:$4 sm:$0xff]  }
 0x4f8   : > { %2843 = vmatprep.subr.bf16.mxu0 %v6308_v14 }
 0x4fa   : > { %2726 = vmatpush1.bf16.msra.mxu1 %v5909_v57  ;;  %v6328_v57 = vld [vmem:[%s4988_s9 + $0x64] ss:$24 sps:$4 sm:$0xff]  }
 0x4fb   : > { %2727 = vmatprep.subr.bf16.mxu1 %v5913_v59  ;;  %2844 = vmatpush1.bf16.msra.mxu0 %v6314_v12  ;;  %v6334_v59 = vld [vmem:[%s4988_s9 + $0x60] ss:$24 sps:$4 sm:$0xff]  }
 0x4fc   : > { %2845 = vmatprep.subr.bf16.mxu0 %v6318_v60 }
 0x4fe   : > { %2728 = vmatpush1.bf16.msra.mxu1 %v5919_v45  ;;  %v6338_v45 = vld [vmem:[%s4988_s9 + $0x34] ss:$24 sps:$4 sm:$0xff]  }
 0x4ff   : > { %2729 = vmatprep.subr.bf16.mxu1 %v5923_v53  ;;  %2846 = vmatpush1.bf16.msra.mxu0 %v6324_v63  ;;  %v6344_v53 = vld [vmem:[%s4988_s9 + $0x30] ss:$24 sps:$4 sm:$0xff]  }
 0x500   : > { %2847 = vmatprep.subr.bf16.mxu0 %v6328_v57 }
 0x502   : > { %2730 = vmatpush1.bf16.msra.mxu1 %v5929_v54  ;;  %v6348_v54 = vld [vmem:[%s4988_s9 + $0x4] ss:$24 sps:$4 sm:$0xff]  }
 0x503   : > { %2731 = vmatprep.subr.bf16.mxu1 %v5933_v1  ;;  %2848 = vmatpush1.bf16.msra.mxu0 %v6334_v59  ;;  %v6354_v1 = vld [vmem:[%s4988_s9] ss:$24 sps:$4 sm:$0xff]  }
 0x504   : > { %2849 = vmatprep.subr.bf16.mxu0 %v6338_v45 }
 0x506   : > { %2732 = vmatpush1.bf16.msra.mxu1 %v5939_v49  ;;  %v6358_v49 = vld [vmem:[%s4988_s9 + $0x2d4] ss:$24 sps:$4 sm:$0xff]  }
 0x507   : > { %2733 = vmatprep.subr.bf16.mxu1 %v5943_v42  ;;  %2850 = vmatpush1.bf16.msra.mxu0 %v6344_v53  ;;  %v6364_v42 = vld [vmem:[%s4988_s9 + $0x2d0] ss:$24 sps:$4 sm:$0xff]  }
 0x508   : > { %2851 = vmatprep.subr.bf16.mxu0 %v6348_v54  ;;  %7390 = vst [vmem:[#allocation11_spill] sm:$0xff] %v6364_v42 }
 0x50a   : > { %2734 = vmatpush1.bf16.msra.mxu1 %v5949_v3  ;;  %v6368_v3 = vld [vmem:[%s4988_s9 + $0x2a4] ss:$24 sps:$4 sm:$0xff]  }
 0x50b   : > { %2735 = vmatprep.subr.bf16.mxu1 %v5953_v6  ;;  %2852 = vmatpush1.bf16.msra.mxu0 %v6354_v1  ;;  %v6374_v6 = vld [vmem:[%s4988_s9 + $0x2a0] ss:$24 sps:$4 sm:$0xff]  }
 0x50c   : > { %2853 = vmatprep.subr.bf16.mxu0 %v6358_v49  ;;  %7391 = vst [vmem:[#allocation32_spill] sm:$0xff] %v6374_v6 }
 0x50e   : > { %2736 = vmatpush2.bf16.msra.mxu1 %v5959_v27  ;;  %v6378_v27 = vld [vmem:[%s4988_s9 + $0x274] ss:$24 sps:$4 sm:$0xff]  }
 0x50f   : > { %2737 = vmatprep.subr.bf16.mxu1 %v5963_v10  ;;  %2854 = vmatpush2.bf16.msra.mxu0 %v6364_v42  ;;  %v6384_v10 = vld [vmem:[%s4988_s9 + $0x270] ss:$24 sps:$4 sm:$0xff]  }
 0x510   : > { %2855 = vmatprep.subr.bf16.mxu0 %v6368_v3  ;;  %7392 = vst [vmem:[#allocation13_spill] sm:$0xff] %v6384_v10 }
 0x512   : > { %2738 = vmatpush2.bf16.msra.mxu1 %v5969_v17  ;;  %v6388_v17 = vld [vmem:[%s4988_s9 + $0x244] ss:$24 sps:$4 sm:$0xff]  }
 0x513   : > { %2739 = vmatprep.subr.bf16.mxu1 %v7333_v61  ;;  %2856 = vmatpush2.bf16.msra.mxu0 %v6374_v6  ;;  %7393 = vst [vmem:[#allocation33_spill] sm:$0xff] %v6388_v17  ;;  %v6394_v61 = vld [vmem:[%s4988_s9 + $0x240] ss:$24 sps:$4 sm:$0xff]  }
 0x514   : > { %2857 = vmatprep.subr.bf16.mxu0 %v6378_v27  ;;  %7394 = vst [vmem:[#allocation15_spill] sm:$0xff] %v6394_v61 }
 0x516   : > { %2740 = vmatpush2.bf16.msra.mxu1 %v5979_v16  ;;  %v6398_v16 = vld [vmem:[%s4988_s9 + $0x214] ss:$24 sps:$4 sm:$0xff]  }
 0x517   : > { %2741 = vmatprep.subr.bf16.mxu1 %v7335_v13  ;;  %2858 = vmatpush2.bf16.msra.mxu0 %v6384_v10  ;;  %7395 = vst [vmem:[#allocation17_spill] sm:$0xff] %v6398_v16  ;;  %v6404_v13 = vld [vmem:[%s4988_s9 + $0x210] ss:$24 sps:$4 sm:$0xff]  }
 0x518   : > { %2859 = vmatprep.subr.bf16.mxu0 %v6388_v17  ;;  %7396 = vst [vmem:[#allocation34_spill] sm:$0xff] %v6404_v13 }
 0x51a   : > { %2742 = vmatpush2.bf16.msra.mxu1 %v7338_v24  ;;  %v6408_v24 = vld [vmem:[%s4988_s9 + $0x1e4] ss:$24 sps:$4 sm:$0xff]  }
 0x51b   : > { %2743 = vmatprep.subr.bf16.mxu1 %v7339_v18  ;;  %2860 = vmatpush2.bf16.msra.mxu0 %v6394_v61  ;;  %7397 = vst [vmem:[#allocation35_spill] sm:$0xff] %v6408_v24  ;;  %v6414_v18 = vld [vmem:[%s4988_s9 + $0x1e0] ss:$24 sps:$4 sm:$0xff]  }
 0x51c   : > { %2861 = vmatprep.subr.bf16.mxu0 %v6398_v16  ;;  %7398 = vst [vmem:[#allocation19_spill] sm:$0xff] %v6414_v18 }
 0x51e   : > { %2744 = vmatpush2.bf16.msra.mxu1 %v7342_v32  ;;  %v6418_v32 = vld [vmem:[%s4988_s9 + $0x1b4] ss:$24 sps:$4 sm:$0xff]  }
 0x51f   : > { %2745 = vmatprep.subr.bf16.mxu1 %v7343_v40  ;;  %2862 = vmatpush2.bf16.msra.mxu0 %v6404_v13  ;;  %7399 = vst [vmem:[#allocation22_spill] sm:$0xff] %v6418_v32  ;;  %v6427_v40 = vld [vmem:[%s4988_s9 + $0x15c] ss:$24 sps:$4 sm:$0xff]  }
 0x520   : > { %2863 = vmatprep.subr.bf16.mxu0 %v6408_v24  ;;  %7400 = vst [vmem:[#allocation36_spill] sm:$0xff] %v6427_v40 }
 0x522   : > { %2746 = vmatpush2.bf16.msra.mxu1 %v7346_v19  ;;  %v6434_v19 = vld [vmem:[%s4988_s9 + $0x158] ss:$24 sps:$4 sm:$0xff]  }
 0x523   : > { %2747 = vmatprep.subr.bf16.mxu1 %v7347_v23  ;;  %2864 = vmatpush2.bf16.msra.mxu0 %v6414_v18  ;;  %7401 = vst [vmem:[#allocation37_spill] sm:$0xff] %v6434_v19  ;;  %v6438_v23 = vld [vmem:[%s4988_s9 + $0x12c] ss:$24 sps:$4 sm:$0xff]  }
 0x524   : > { %2865 = vmatprep.subr.bf16.mxu0 %v6418_v32  ;;  %7402 = vst [vmem:[#allocation24_spill] sm:$0xff] %v6438_v23 }
 0x526   : > { %2748 = vmatpush2.bf16.msra.mxu1 %v7350_v8  ;;  %v6442_v8 = vld [vmem:[%s4988_s9 + $0x128] ss:$24 sps:$4 sm:$0xff]  }
 0x527   : > { %2749 = vmatprep.subr.bf16.mxu1 %v7351_v62  ;;  %2866 = vmatpush2.bf16.msra.mxu0 %v7352_v9  ;;  %7403 = vst [vmem:[#allocation5_spill] sm:$0xff] %v6442_v8  ;;  %v6446_v62 = vld [vmem:[%s4988_s9 + $0xfc] ss:$24 sps:$4 sm:$0xff]   ;;  %v6450_v9 = vld [vmem:[%s4988_s9 + $0xf8] ss:$24 sps:$4 sm:$0xff]  }
 0x528   : > { %2867 = vmatprep.subr.bf16.mxu0 %v7353_v28  ;;  %7404 = vst [vmem:[#allocation38_spill] sm:$0xff] %v6446_v62  ;;  %7405 = vst [vmem:[#allocation39_spill] sm:$0xff] %v6450_v9  ;;  %v6454_v28 = vld [vmem:[%s4988_s9 + $0xcc] ss:$24 sps:$4 sm:$0xff]  }
 0x529   : > { %7406 = vst [vmem:[#allocation6_spill] sm:$0xff] %v6454_v28 }
 0x52a   : > { %2750 = vmatpush2.bf16.msra.mxu1 %v7354_v55  ;;  %v6458_v55 = vld [vmem:[%s4988_s9 + $0xc8] ss:$24 sps:$4 sm:$0xff]  }
 0x52b   : > { %2878 = vmatprep.subr.bf16.mxu1 %v6427_v40  ;;  %2868 = vmatpush2.bf16.msra.mxu0 %v7356_v2  ;;  %7407 = vst [vmem:[#allocation7_spill] sm:$0xff] %v6458_v55  ;;  %v6462_v2 = vld [vmem:[%s4988_s9 + $0x9c] ss:$24 sps:$4 sm:$0xff]  }
 0x52c   : > { %2919 = vmatprep.subr.bf16.mxu0 %v7357_v41  ;;  %7408 = vst [vmem:[#allocation40_spill] sm:$0xff] %v6462_v2  ;;  %v6466_v41 = vld [vmem:[%s4988_s9 + $0x98] ss:$24 sps:$4 sm:$0xff]  }
 0x52d   : > { %2752 = vmatmul.mubr.bf16.vlgmr.msra.gmra.mxu1 %v6275_v0  ;;  %7409 = vst [vmem:[#allocation41_spill] sm:$0xff] %v6466_v41  ;;  %v7428_v0 = vld [vmem:[#allocation62_spill] sm:$0xff] }
 0x52e   : > { %2879 = vmatpush1.bf16.msra.mxu1 %v6434_v19 }
 0x52f   : > { %2880 = vmatprep.subr.bf16.mxu1 %v6438_v23 }
 0x532   : > { %2881 = vmatpush1.bf16.msra.mxu1 %v6442_v8 }
 0x533   : > { %2882 = vmatprep.subr.bf16.mxu1 %v6446_v62 }
 0x536   : > { %2883 = vmatpush1.bf16.msra.mxu1 %v6450_v9 }
 0x537   : > { %2884 = vmatprep.subr.bf16.mxu1 %v6454_v28 }
 0x53a   : > { %2885 = vmatpush1.bf16.msra.mxu1 %v6458_v55 }
 0x53b   : > { %2886 = vmatprep.subr.bf16.mxu1 %v6462_v2 }
 0x53e   : > { %2887 = vmatpush1.bf16.msra.mxu1 %v6466_v41 }
 0x53f   : > { %2888 = vmatprep.subr.bf16.mxu1 %v6470_v30 }
 0x542   : > { %2889 = vmatpush1.bf16.msra.mxu1 %v6474_v4 }
 0x543   : > { %2890 = vmatprep.subr.bf16.mxu1 %v6478_v11 }
 0x546   : > { %2891 = vmatpush1.bf16.msra.mxu1 %v6482_v39 }
 0x547   : > { %2892 = vmatprep.subr.bf16.mxu1 %v6486_v7 }
 0x54a   : > { %2893 = vmatpush1.bf16.msra.mxu1 %v6490_v44 }
 0x54b   : > { %2894 = vmatprep.subr.bf16.mxu1 %v7373_v5  ;;  %v7423_v5 = vld [vmem:[#allocation57_spill] sm:$0xff] }
 0x54e   : > { %2895 = vmatpush2.bf16.msra.mxu1 %v7374_v20  ;;  %v7425_v20 = vld [vmem:[#allocation59_spill] sm:$0xff] }
 0x54f   : > { %2896 = vmatprep.subr.bf16.mxu1 %v7375_v21  ;;  %v7426_v21 = vld [vmem:[#allocation60_spill] sm:$0xff] }
 0x552   : > { %2897 = vmatpush2.bf16.msra.mxu1 %v7416_v58 }
 0x553   : > { %2898 = vmatprep.subr.bf16.mxu1 %v7417_v43 }
 0x556   : > { %2899 = vmatpush2.bf16.msra.mxu1 %v7418_v37 }
 0x557   : > { %2900 = vmatprep.subr.bf16.mxu1 %v7419_v50 }
 0x55a   : > { %2901 = vmatpush2.bf16.msra.mxu1 %v7420_v46 }
 0x55b   : > { %2902 = vmatprep.subr.bf16.mxu1 %v7421_v33 }
 0x55e   : > { %2903 = vmatpush2.bf16.msra.mxu1 %v7422_v56  ;;  %v2626_v56 = vld [vmem:[%s2625_s12] sm:$0xff] }
 0x55f   : > { %2904 = vmatprep.subr.bf16.mxu1 %v7423_v5  ;;  %v2629_v5 = vunpack.c.l.bf16 %v2626_v56 }
 0x562   : > { %2905 = vmatpush2.bf16.msra.mxu1 %v7424_v48 }
 0x563   : > { %2906 = vmatprep.subr.bf16.mxu1 %v7425_v20  ;;  %v2630_v20 = vunpack.c.h.bf16 %v2626_v56 }
 0x566   : > { %2907 = vmatpush2.bf16.msra.mxu1 %v7426_v21 }
 0x567   : > { %2908 = vmatprep.subr.bf16.mxu1 %v7427_v51 }
 0x56a   : > { %2909 = vmatpush2.bf16.msra.mxu1 %v7428_v0 }
 0x56b   : > { %3037 = vmatprep.subr.bf16.mxu1 %v6510_v35  ;;  %v2627_v35 = vld [vmem:[%s2625_s12 + $0x8] sm:$0xff] }
 0x5ad   : > { %v2671_v15 = vpop.f32.mrf.mxu1  ;;  %v2712_v22 = vpop.f32.mrf.mxu0 }
 0x5ae   : > { %v2760_v48 = vadd.f32 %v2671_v15, %v2629_v5  ;;  %v2628_v5 = vld [vmem:[%s2625_s12 + $0x10] sm:$0xff]  ;;  %s3225_s12 = scalar_lea.vmem [#allocation2], %s4193_s11 }
 0x5af   : > { %v2673_v58 = vpop.f32.mrf.mxu1  ;;  %v2714_v43 = vpop.f32.mrf.mxu0 }
 0x5b0   : > { %v2761_v21 = vadd.f32 %v2673_v58, %v2630_v20  ;;  %v4087_v51 = vmul.f32 -1.442695, %v2760_v48 }
 0x5b1   : > { %v2675_v37 = vpop.f32.mrf.mxu1  ;;  %v2716_v50 = vpop.f32.mrf.mxu0 }
 0x5b2   : > { %v4088_v0 = vmul.f32 -1.442695, %v2761_v21  ;;  %4593 = vpow2.f32 %v4087_v51  ;;  %v2631_v37 = vunpack.c.l.bf16 %v2627_v35  ;;  %v2633_v21 = vunpack.c.l.bf16 %v2628_v5 }
 0x5b3   : > { %v2676_v46 = vpop.f32.mrf.mxu1  ;;  %v2717_v33 = vpop.f32.mrf.mxu0 }
 0x5b4   : > { %4595 = vpow2.f32 %v4088_v0  ;;  %v2774_v50 = vadd.f32 %v2712_v22, %v2631_v37  ;;  %v2632_v46 = vunpack.c.h.bf16 %v2627_v35 }
 0x5b6   : > { %v2775_v33 = vadd.f32 %v2714_v43, %v2632_v46  ;;  %v4089_v44 = vmul.f32 -1.442695, %v2774_v50 }
 0x5b8   : > { %v4090_v7 = vmul.f32 -1.442695, %v2775_v33  ;;  %4597 = vpow2.f32 %v4089_v44 }
 0x5ba   : > { %4599 = vpow2.f32 %v4090_v7 }
 0x5bf   : > { %v4594_v39 = vpop.eup %4593 }
 0x5c0   : > { %v2768_v4 = vadd.f32 1.0, %v4594_v39 }
 0x5c1   : > { %v4596_v11 = vpop.eup %4595 }
 0x5c2   : > { %v2769_v30 = vadd.f32 1.0, %v4596_v11  ;;  %4601 = vrcp.f32 %v2768_v4 }
 0x5c4   : > { %4603 = vrcp.f32 %v2769_v30  ;;  %v2634_v30 = vunpack.c.h.bf16 %v2628_v5 }
 0x5c5   : > { %v4598_v15 = vpop.eup %4597 }
 0x5c6   : > { %v2782_v56 = vadd.f32 1.0, %v4598_v15 }
 0x5c7   : > { %v4600_v58 = vpop.eup %4599 }
 0x5c8   : > { %v2783_v20 = vadd.f32 1.0, %v4600_v58  ;;  %4605 = vrcp.f32 %v2782_v56 }
 0x5ca   : > { %4607 = vrcp.f32 %v2783_v20 }
 0x5cf   : > { %v4602_v35 = vpop.eup %4601 }
 0x5d1   : > { %v4604_v39 = vpop.eup %4603 }
 0x5d5   : > { %v4606_v50 = vpop.eup %4605 }
 0x5d6   : > { %v2796_v33 = vsub.f32 1.0, %v4606_v50  ;;  %v2800_v58 = vmul.f32 %v4606_v50, %v6262_v52  ;;  %v6566_v50 = vld [vmem:[%s4988_s9 + $0xd4] ss:$24 sps:$4 sm:$0xff]  }
 0x5d7   : > { %v4608_v46 = vpop.eup %4607 }
 0x5d8   : > { %v2797_v56 = vsub.f32 1.0, %v4608_v46  ;;  %v2801_v20 = vmul.f32 %v4608_v46, %v6264_v36  ;;  %v6572_v46 = vld [vmem:[%s4988_s9 + $0xd0] ss:$24 sps:$4 sm:$0xff]  }
 0x5ed   : > { %v2753_v48 = vpop.f32.mrf.mxu1 }
 0x5ee   : > { %v2788_v22 = vadd.f32 %v2753_v48, %v5590_v26 }
 0x5ef   : > { %v2755_v43 = vpop.f32.mrf.mxu1 }
 0x5f0   : > { %v2790_v51 = vmul.f32 %v4602_v35, %v2788_v22  ;;  %v2789_v44 = vadd.f32 %v2755_v43, %v5594_v25 }
 0x5f1   : > { %v2757_v7 = vpop.f32.mrf.mxu1 }
 0x5f2   : > { %v2792_v4 = vadd.f32 %v2790_v51, %v2633_v21  ;;  %v2791_v11 = vmul.f32 %v4604_v39, %v2789_v44 }
 0x5f3   : > { %v2758_v0 = vpop.f32.mrf.mxu1 }
 0x5f4   : > { %4609 = vtanh.f32 %v2792_v4  ;;  %v2793_v37 = vadd.f32 %v2791_v11, %v2634_v30  ;;  %v6542_v4 = vld [vmem:[%s4988_s9 + $0x160] ss:$24 sps:$4 sm:$0xff]   ;;  %v6546_v30 = vld [vmem:[%s4988_s9 + $0x134] ss:$24 sps:$4 sm:$0xff]   ;;  %v6552_v11 = vld [vmem:[%s4988_s9 + $0x130] ss:$24 sps:$4 sm:$0xff]  }
 0x5f5   : > { %v6556_v0 = vld [vmem:[%s4988_s9 + $0x104] ss:$24 sps:$4 sm:$0xff]  }
 0x5f6   : > { %4611 = vtanh.f32 %v2793_v37  ;;  %v6562_v37 = vld [vmem:[%s4988_s9 + $0x100] ss:$24 sps:$4 sm:$0xff]  }
 0x601   : > { %v4610_v15 = vpop.eup %4609 }
 0x602   : > { %v2798_v48 = vmul.f32 %v4610_v15, %v2796_v33  ;;  %v6576_v33 = vld [vmem:[%s4988_s9 + $0xa4] ss:$24 sps:$4 sm:$0xff]   ;;  %v6582_v15 = vld [vmem:[%s4988_s9 + $0xa0] ss:$24 sps:$4 sm:$0xff]  }
 0x603   : > { %v4612_v22 = vpop.eup %4611 }
 0x604   : > { %v2799_v35 = vmul.f32 %v4612_v22, %v2797_v56  ;;  %v6522_v43 = vadd.f32 %v2800_v58, %v2798_v48  ;;  %v6586_v58 = vld [vmem:[%s4988_s9 + $0x74] ss:$24 sps:$4 sm:$0xff]   ;;  %v6592_v56 = vld [vmem:[%s4988_s9 + $0x70] ss:$24 sps:$4 sm:$0xff]   ;;  %v6596_v48 = vld [vmem:[%s4988_s9 + $0x44] ss:$24 sps:$4 sm:$0xff]  }
 0x605   : > { %v6602_v22 = vld [vmem:[%s4988_s9 + $0x40] ss:$24 sps:$4 sm:$0xff]  }
 0x606   : > { %v6524_v5 = vadd.f32 %v2801_v20, %v2799_v35  ;;  %v2806_v21 = vmul.f32 0.01, %v6522_v43  ;;  %vm2804_vm8 = vcmp.ge.f32.partialorder %v6522_v43, 0.0  ;;  %v6535_v36 = vpack.c.bf16 %v6522_v43, %v6522_v43  ;;  %v6606_v35 = vld [vmem:[%s4988_s9 + $0x14] ss:$24 sps:$4 sm:$0xff]  }
 0x607   : > { %v6612_v20 = vld [vmem:[%s4988_s9 + $0x10] ss:$24 sps:$4 sm:$0xff]  }
 0x608   : > { %vm2805_vm9 = vcmp.ge.f32.partialorder %v6524_v5, 0.0  ;;  %v2807_v52 = vmul.f32 0.01, %v6524_v5  ;;  %v2836_v51 = vpack.c.bf16 %v6524_v5, %v6524_v5  ;;  %v2808_v39 = vsel %vm2804_vm8, %v6522_v43, %v2806_v21  ;;  %v6616_v21 = vld [vmem:[%s4988_s9 + $0x2e4] ss:$24 sps:$4 sm:$0xff]  }
 0x60a   : > { %v2809_v44 = vsel %vm2805_vm9, %v6524_v5, %v2807_v52  ;;  %2869 = vmatprep.mubr.bf16.mxu0 %v2836_v51  ;;  %2910 = vmatprep.mubr.bf16.mxu1 %v2836_v51  ;;  %v6622_v52 = vld [vmem:[%s4988_s9 + $0x2e0] ss:$24 sps:$4 sm:$0xff]  }
 0x60b   : > { %v4185_v7 = vpack.c.bf16 %v2809_v44, %v2808_v39  ;;  %2870 = vmatmul.mubr.bf16.vlgmr.msra.gmra.mxu0 %v6535_v36  ;;  %2911 = vmatmul.mubr.bf16.vlgmr.msra.gmra.mxu1 %v6535_v36  ;;  %v6632_v44 = vld [vmem:[%s4988_s9 + $0x2b0] ss:$24 sps:$4 sm:$0xff]   ;;  %v6636_v39 = vld [vmem:[%s4988_s9 + $0x284] ss:$24 sps:$4 sm:$0xff]  }
 0x60c   : > { %2920 = vmatpush1.bf16.msra.mxu0 %v6542_v4  ;;  %2951 = vmatprep.mubr.bf16.mxu0 %v2836_v51  ;;  %v6626_v51 = vld [vmem:[%s4988_s9 + $0x2b4] ss:$24 sps:$4 sm:$0xff]   ;;  %7430 = vst [vmem:[#allocation10_spill] sm:$0xff] %v6636_v39 }
 0x60d   : > { %2821 = vst [vmem:[%s2820_s14] sm:$0xff] %v4185_v7  ;;  %2921 = vmatprep.subr.bf16.mxu0 %v6546_v30  ;;  %3038 = vmatpush1.bf16.msra.mxu1 %v6284_v29  ;;  %v6642_v7 = vld [vmem:[%s4988_s9 + $0x280] ss:$24 sps:$4 sm:$0xff]   ;;  %s4145_s14 = sshll.u32 %s4950_s25, 6 }
 0x60e   : > { %3039 = vmatprep.subr.bf16.mxu1 %v6288_v34 }
 0x610   : > { %2922 = vmatpush1.bf16.msra.mxu0 %v6552_v11 }
 0x611   : > { %2923 = vmatprep.subr.bf16.mxu0 %v6556_v0  ;;  %3040 = vmatpush1.bf16.msra.mxu1 %v6294_v47 }
 0x612   : > { %3041 = vmatprep.subr.bf16.mxu1 %v6298_v38 }
 0x614   : > { %2924 = vmatpush1.bf16.msra.mxu0 %v6562_v37 }
 0x615   : > { %2925 = vmatprep.subr.bf16.mxu0 %v6566_v50  ;;  %3042 = vmatpush1.bf16.msra.mxu1 %v6304_v31 }
 0x616   : > { %3043 = vmatprep.subr.bf16.mxu1 %v6308_v14 }
 0x618   : > { %2926 = vmatpush1.bf16.msra.mxu0 %v6572_v46 }
 0x619   : > { %2927 = vmatprep.subr.bf16.mxu0 %v6576_v33  ;;  %3044 = vmatpush1.bf16.msra.mxu1 %v6314_v12 }
 0x61a   : > { %3045 = vmatprep.subr.bf16.mxu1 %v6318_v60 }
 0x61c   : > { %2928 = vmatpush1.bf16.msra.mxu0 %v6582_v15 }
 0x61d   : > { %2929 = vmatprep.subr.bf16.mxu0 %v6586_v58  ;;  %3046 = vmatpush1.bf16.msra.mxu1 %v6324_v63 }
 0x61e   : > { %3047 = vmatprep.subr.bf16.mxu1 %v6328_v57 }
 0x620   : > { %2930 = vmatpush1.bf16.msra.mxu0 %v6592_v56 }
 0x621   : > { %2931 = vmatprep.subr.bf16.mxu0 %v6596_v48  ;;  %3048 = vmatpush1.bf16.msra.mxu1 %v6334_v59 }
 0x622   : > { %3049 = vmatprep.subr.bf16.mxu1 %v6338_v45 }
 0x624   : > { %2932 = vmatpush1.bf16.msra.mxu0 %v6602_v22 }
 0x625   : > { %2933 = vmatprep.subr.bf16.mxu0 %v6606_v35  ;;  %3050 = vmatpush1.bf16.msra.mxu1 %v6344_v53 }
 0x626   : > { %3051 = vmatprep.subr.bf16.mxu1 %v6348_v54 }
 0x628   : > { %2934 = vmatpush1.bf16.msra.mxu0 %v6612_v20 }
 0x629   : > { %2935 = vmatprep.subr.bf16.mxu0 %v6616_v21  ;;  %3052 = vmatpush1.bf16.msra.mxu1 %v6354_v1 }
 0x62a   : > { %3053 = vmatprep.subr.bf16.mxu1 %v6358_v49 }
 0x62c   : > { %2936 = vmatpush2.bf16.msra.mxu0 %v6622_v52 }
 0x62d   : > { %2937 = vmatprep.subr.bf16.mxu0 %v6626_v51  ;;  %3054 = vmatpush2.bf16.msra.mxu1 %v6364_v42  ;;  %v6646_v42 = vld [vmem:[%s4988_s9 + $0x254] ss:$24 sps:$4 sm:$0xff]  }
 0x62e   : > { %3055 = vmatprep.subr.bf16.mxu1 %v6368_v3  ;;  %7431 = vst [vmem:[#allocation12_spill] sm:$0xff] %v6646_v42 }
 0x630   : > { %2938 = vmatpush2.bf16.msra.mxu0 %v6632_v44 }
 0x631   : > { %2939 = vmatprep.subr.bf16.mxu0 %v6636_v39  ;;  %3056 = vmatpush2.bf16.msra.mxu1 %v6374_v6  ;;  %v6652_v39 = vld [vmem:[%s4988_s9 + $0x250] ss:$24 sps:$4 sm:$0xff]   ;;  %v6656_v6 = vld [vmem:[%s4988_s9 + $0x224] ss:$24 sps:$4 sm:$0xff]  }
 0x632   : > { %3057 = vmatprep.subr.bf16.mxu1 %v6378_v27  ;;  %7432 = vst [vmem:[#allocation14_spill] sm:$0xff] %v6652_v39  ;;  %7433 = vst [vmem:[#allocation16_spill] sm:$0xff] %v6656_v6 }
 0x634   : > { %2940 = vmatpush2.bf16.msra.mxu0 %v6642_v7 }
 0x635   : > { %2941 = vmatprep.subr.bf16.mxu0 %v6646_v42  ;;  %3058 = vmatpush2.bf16.msra.mxu1 %v6384_v10  ;;  %v6662_v42 = vld [vmem:[%s4988_s9 + $0x220] ss:$24 sps:$4 sm:$0xff]  }
 0x636   : > { %3059 = vmatprep.subr.bf16.mxu1 %v6388_v17  ;;  %7434 = vst [vmem:[#allocation18_spill] sm:$0xff] %v6662_v42  ;;  %v6666_v17 = vld [vmem:[%s4988_s9 + $0x1f4] ss:$24 sps:$4 sm:$0xff]  }
 0x637   : > { %7435 = vst [vmem:[#allocation20_spill] sm:$0xff] %v6666_v17 }
 0x638   : > { %2942 = vmatpush2.bf16.msra.mxu0 %v6652_v39 }
 0x639   : > { %2943 = vmatprep.subr.bf16.mxu0 %v6656_v6  ;;  %3060 = vmatpush2.bf16.msra.mxu1 %v6394_v61  ;;  %v6672_v6 = vld [vmem:[%s4988_s9 + $0x1f0] ss:$24 sps:$4 sm:$0xff]  }
 0x63a   : > { %3061 = vmatprep.subr.bf16.mxu1 %v6398_v16  ;;  %7436 = vst [vmem:[#allocation21_spill] sm:$0xff] %v6672_v6  ;;  %v6676_v16 = vld [vmem:[%s4988_s9 + $0x1c4] ss:$24 sps:$4 sm:$0xff]  }
 0x63b   : > { %7437 = vst [vmem:[#allocation23_spill] sm:$0xff] %v6676_v16 }
 0x63c   : > { %2944 = vmatpush2.bf16.msra.mxu0 %v6662_v42 }
 0x63d   : > { %2945 = vmatprep.subr.bf16.mxu0 %v6666_v17  ;;  %3062 = vmatpush2.bf16.msra.mxu1 %v6404_v13  ;;  %v6682_v17 = vld [vmem:[%s4988_s9 + $0x1c0] ss:$24 sps:$4 sm:$0xff]   ;;  %v6686_v13 = vld [vmem:[%s4988_s9 + $0x194] ss:$24 sps:$4 sm:$0xff]  }
 0x63e   : > { %3063 = vmatprep.subr.bf16.mxu1 %v6408_v24  ;;  %7438 = vst [vmem:[#allocation25_spill] sm:$0xff] %v6682_v17  ;;  %7439 = vst [vmem:[#allocation26_spill] sm:$0xff] %v6686_v13  ;;  %v6690_v24 = vld [vmem:[%s4988_s9 + $0x1b0] ss:$24 sps:$4 sm:$0xff]  }
 0x63f   : > { %7440 = vst [vmem:[#allocation27_spill] sm:$0xff] %v6690_v24 }
 0x640   : > { %2946 = vmatpush2.bf16.msra.mxu0 %v6672_v6  ;;  %v6694_v6 = vld [vmem:[%s4988_s9 + $0x184] ss:$24 sps:$4 sm:$0xff]  }
 0x641   : > { %2947 = vmatprep.subr.bf16.mxu0 %v6676_v16  ;;  %3064 = vmatpush2.bf16.msra.mxu1 %v6414_v18  ;;  %7441 = vst [vmem:[#allocation28_spill] sm:$0xff] %v6694_v6  ;;  %v6698_v16 = vld [vmem:[%s4988_s9 + $0x190] ss:$24 sps:$4 sm:$0xff]  }
 0x642   : > { %3065 = vmatprep.subr.bf16.mxu1 %v6418_v32  ;;  %7442 = vst [vmem:[#allocation29_spill] sm:$0xff] %v6698_v16  ;;  %v6703_v32 = vld [vmem:[%s4988_s9 + $0x180] ss:$24 sps:$4 sm:$0xff]  }
 0x643   : > { %7443 = vst [vmem:[#allocation30_spill] sm:$0xff] %v6703_v32 }
 0x644   : > { %2948 = vmatpush2.bf16.msra.mxu0 %v6682_v17  ;;  %v6707_v17 = vld [vmem:[%s4988_s9 + $0x164] ss:$24 sps:$4 sm:$0xff]  }
 0x645   : > { %2949 = vmatprep.subr.bf16.mxu0 %v6686_v13  ;;  %3066 = vmatpush2.bf16.msra.mxu1 %v6690_v24  ;;  %7444 = vst [vmem:[#allocation47_spill] sm:$0xff] %v6707_v17  ;;  %v2827_v24 = vld [vmem:[%s2825_s17 + $0x8] sm:$0xff] }
 0x646   : > { %3067 = vmatprep.subr.bf16.mxu1 %v6694_v6 }
 0x648   : > { %2950 = vmatpush2.bf16.msra.mxu0 %v6698_v16 }
 0x649   : > { %3078 = vmatprep.subr.bf16.mxu0 %v6427_v40  ;;  %3068 = vmatpush2.bf16.msra.mxu1 %v6703_v32 }
 0x64a   : > { %3119 = vmatprep.subr.bf16.mxu1 %v6707_v17 }
 0x64b   : > { %2952 = vmatmul.mubr.bf16.vlgmr.msra.gmra.mxu0 %v6535_v36  ;;  %v7445_v36 = vld [vmem:[#allocation42_spill] sm:$0xff] }
 0x64c   : > { %3079 = vmatpush1.bf16.msra.mxu0 %v6434_v19 }
 0x64d   : > { %3080 = vmatprep.subr.bf16.mxu0 %v6438_v23  ;;  %v7446_v23 = vld [vmem:[#allocation43_spill] sm:$0xff] }
 0x650   : > { %3081 = vmatpush1.bf16.msra.mxu0 %v6442_v8  ;;  %v7447_v8 = vld [vmem:[#allocation44_spill] sm:$0xff] }
 0x651   : > { %3082 = vmatprep.subr.bf16.mxu0 %v6446_v62  ;;  %v7448_v62 = vld [vmem:[#allocation8_spill] sm:$0xff] }
 0x654   : > { %3083 = vmatpush1.bf16.msra.mxu0 %v6450_v9  ;;  %v7449_v9 = vld [vmem:[#allocation45_spill] sm:$0xff] }
 0x655   : > { %3084 = vmatprep.subr.bf16.mxu0 %v6454_v28  ;;  %v7450_v28 = vld [vmem:[#allocation46_spill] sm:$0xff] }
 0x658   : > { %3085 = vmatpush1.bf16.msra.mxu0 %v6458_v55  ;;  %v6727_v55 = vld [vmem:[%s4988_s9 + $0x2dc] ss:$24 sps:$4 sm:$0xff]  }
 0x659   : > { %3086 = vmatprep.subr.bf16.mxu0 %v6462_v2  ;;  %7451 = vst [vmem:[#allocation48_spill] sm:$0xff] %v6727_v55 }
 0x65c   : > { %3087 = vmatpush1.bf16.msra.mxu0 %v6466_v41  ;;  %v6731_v41 = vld [vmem:[%s4988_s9 + $0x2d8] ss:$24 sps:$4 sm:$0xff]  }
 0x65d   : > { %3088 = vmatprep.subr.bf16.mxu0 %v7445_v36  ;;  %7452 = vst [vmem:[#allocation49_spill] sm:$0xff] %v6731_v41 }
 0x660   : > { %3089 = vmatpush1.bf16.msra.mxu0 %v7446_v23  ;;  %v6735_v23 = vld [vmem:[%s4988_s9 + $0x2ac] ss:$24 sps:$4 sm:$0xff]  }
 0x661   : > { %3090 = vmatprep.subr.bf16.mxu0 %v7447_v8  ;;  %7453 = vst [vmem:[#allocation31_spill] sm:$0xff] %v6735_v23 }
 0x664   : > { %3091 = vmatpush1.bf16.msra.mxu0 %v7448_v62  ;;  %v6739_v62 = vld [vmem:[%s4988_s9 + $0x2a8] ss:$24 sps:$4 sm:$0xff]  }
 0x665   : > { %3092 = vmatprep.subr.bf16.mxu0 %v7449_v9  ;;  %7454 = vst [vmem:[#allocation50_spill] sm:$0xff] %v6739_v62  ;;  %v6767_v9 = vld [vmem:[%s4988_s9 + $0x1ec] ss:$24 sps:$4 sm:$0xff]  }
 0x666   : > { %7461 = vst [vmem:[#allocation57_spill] sm:$0xff] %v6767_v9 }
 0x668   : > { %3093 = vmatpush1.bf16.msra.mxu0 %v7450_v28  ;;  %v6743_v28 = vld [vmem:[%s4988_s9 + $0x27c] ss:$24 sps:$4 sm:$0xff]  }
 0x669   : > { %3094 = vmatprep.subr.bf16.mxu0 %v6727_v55  ;;  %7455 = vst [vmem:[#allocation51_spill] sm:$0xff] %v6743_v28  ;;  %v6747_v55 = vld [vmem:[%s4988_s9 + $0x278] ss:$24 sps:$4 sm:$0xff]  }
 0x66a   : > { %7456 = vst [vmem:[#allocation52_spill] sm:$0xff] %v6747_v55 }
 0x66c   : > { %3095 = vmatpush2.bf16.msra.mxu0 %v6731_v41  ;;  %v6751_v41 = vld [vmem:[%s4988_s9 + $0x24c] ss:$24 sps:$4 sm:$0xff]  }
 0x66d   : > { %3096 = vmatprep.subr.bf16.mxu0 %v6735_v23  ;;  %7457 = vst [vmem:[#allocation53_spill] sm:$0xff] %v6751_v41  ;;  %v6755_v23 = vld [vmem:[%s4988_s9 + $0x248] ss:$24 sps:$4 sm:$0xff]  }
 0x66e   : > { %7458 = vst [vmem:[#allocation54_spill] sm:$0xff] %v6755_v23 }
 0x670   : > { %3097 = vmatpush2.bf16.msra.mxu0 %v6739_v62  ;;  %v6759_v62 = vld [vmem:[%s4988_s9 + $0x21c] ss:$24 sps:$4 sm:$0xff]  }
 0x671   : > { %3098 = vmatprep.subr.bf16.mxu0 %v6743_v28  ;;  %7459 = vst [vmem:[#allocation55_spill] sm:$0xff] %v6759_v62  ;;  %v6763_v28 = vld [vmem:[%s4988_s9 + $0x218] ss:$24 sps:$4 sm:$0xff]  }
 0x672   : > { %7460 = vst [vmem:[#allocation56_spill] sm:$0xff] %v6763_v28 }
 0x674   : > { %3099 = vmatpush2.bf16.msra.mxu0 %v6747_v55  ;;  %v6771_v55 = vld [vmem:[%s4988_s9 + $0x1e8] ss:$24 sps:$4 sm:$0xff]  }
 0x675   : > { %3100 = vmatprep.subr.bf16.mxu0 %v6751_v41  ;;  %7462 = vst [vmem:[#allocation58_spill] sm:$0xff] %v6771_v55  ;;  %v6775_v41 = vld [vmem:[%s4988_s9 + $0x1bc] ss:$24 sps:$4 sm:$0xff]  }
 0x676   : > { %7463 = vst [vmem:[#allocation59_spill] sm:$0xff] %v6775_v41 }
 0x678   : > { %3101 = vmatpush2.bf16.msra.mxu0 %v6755_v23  ;;  %v6779_v23 = vld [vmem:[%s4988_s9 + $0x1b8] ss:$24 sps:$4 sm:$0xff]  }
 0x679   : > { %3102 = vmatprep.subr.bf16.mxu0 %v6759_v62  ;;  %7464 = vst [vmem:[#allocation60_spill] sm:$0xff] %v6779_v23  ;;  %v6783_v62 = vld [vmem:[%s4988_s9 + $0x18c] ss:$24 sps:$4 sm:$0xff]  }
 0x67a   : > { %7465 = vst [vmem:[#allocation61_spill] sm:$0xff] %v6783_v62 }
 0x67c   : > { %3103 = vmatpush2.bf16.msra.mxu0 %v6763_v28  ;;  %v6787_v28 = vld [vmem:[%s4988_s9 + $0x188] ss:$24 sps:$4 sm:$0xff]   ;;  %s4189_s9 = sshll.u32 %s6793_s15, 3 }
 0x67d   : > { %3104 = vmatprep.subr.bf16.mxu0 %v6767_v9  ;;  %7466 = vst [vmem:[#allocation62_spill] sm:$0xff] %v6787_v28  ;;  %v7467_v9 = vld [vmem:[#allocation9_spill] sm:$0xff]  ;;  %s3020_s18 = scalar_lea.vmem [#allocation3], %s4189_s9 }
 0x680   : > { %3105 = vmatpush2.bf16.msra.mxu0 %v6771_v55 }
 0x681   : > { %3106 = vmatprep.subr.bf16.mxu0 %v6775_v41 }
 0x684   : > { %3107 = vmatpush2.bf16.msra.mxu0 %v6779_v23 }
 0x685   : > { %3108 = vmatprep.subr.bf16.mxu0 %v6783_v62  ;;  %v2826_v62 = vld [vmem:[%s2825_s17] sm:$0xff] }
 0x686   : > { %v2829_v23 = vunpack.c.l.bf16 %v2826_v62 }
 0x688   : > { %3109 = vmatpush2.bf16.msra.mxu0 %v6787_v28  ;;  %v2830_v28 = vunpack.c.h.bf16 %v2826_v62  ;;  %v2828_v62 = vld [vmem:[%s2825_s17 + $0x10] sm:$0xff]  ;;  %s6988_s17 = scalar_lea.vmem %s7013_s6, %s4145_s14 }
 0x689   : > { %3237 = vmatprep.subr.bf16.mxu0 %v7467_v9 }
 0x6cb   : > { %v2871_v55 = vpop.f32.mrf.mxu0  ;;  %v2912_v8 = vpop.f32.mrf.mxu1 }
 0x6cc   : > { %v2960_v40 = vadd.f32 %v2871_v55, %v2829_v23 }
 0x6cd   : > { %v2873_v36 = vpop.f32.mrf.mxu0  ;;  %v2914_v2 = vpop.f32.mrf.mxu1 }
 0x6ce   : > { %v2961_v16 = vadd.f32 %v2873_v36, %v2830_v28  ;;  %v4095_v9 = vmul.f32 -1.442695, %v2960_v40 }
 0x6cf   : > { %v2875_v41 = vpop.f32.mrf.mxu0  ;;  %v2916_v19 = vpop.f32.mrf.mxu1 }
 0x6d0   : > { %v4096_v6 = vmul.f32 -1.442695, %v2961_v16  ;;  %4613 = vpow2.f32 %v4095_v9  ;;  %v2831_v41 = vunpack.c.l.bf16 %v2827_v24 }
 0x6d1   : > { %v2876_v17 = vpop.f32.mrf.mxu0  ;;  %v2917_v32 = vpop.f32.mrf.mxu1 }
 0x6d2   : > { %4615 = vpow2.f32 %v4096_v6  ;;  %v2974_v19 = vadd.f32 %v2912_v8, %v2831_v41  ;;  %v2832_v17 = vunpack.c.h.bf16 %v2827_v24 }
 0x6d4   : > { %v2975_v32 = vadd.f32 %v2914_v2, %v2832_v17  ;;  %v4097_v13 = vmul.f32 -1.442695, %v2974_v19  ;;  %v2833_v2 = vunpack.c.l.bf16 %v2828_v62 }
 0x6d6   : > { %v4098_v18 = vmul.f32 -1.442695, %v2975_v32  ;;  %4617 = vpow2.f32 %v4097_v13 }
 0x6d8   : > { %4619 = vpow2.f32 %v4098_v18 }
 0x6dd   : > { %v4614_v42 = vpop.eup %4613 }
 0x6de   : > { %v2968_v39 = vadd.f32 1.0, %v4614_v42 }
 0x6df   : > { %v4616_v61 = vpop.eup %4615 }
 0x6e0   : > { %v2969_v10 = vadd.f32 1.0, %v4616_v61  ;;  %4621 = vrcp.f32 %v2968_v39 }
 0x6e2   : > { %4623 = vrcp.f32 %v2969_v10  ;;  %v2834_v10 = vunpack.c.h.bf16 %v2828_v62 }
 0x6e3   : > { %v4618_v23 = vpop.eup %4617 }
 0x6e4   : > { %v2982_v16 = vadd.f32 1.0, %v4618_v23 }
 0x6e5   : > { %v4620_v40 = vpop.eup %4619 }
 0x6e6   : > { %v2983_v6 = vadd.f32 1.0, %v4620_v40  ;;  %4625 = vrcp.f32 %v2982_v16 }
 0x6e8   : > { %4627 = vrcp.f32 %v2983_v6 }
 0x6ed   : > { %v4622_v24 = vpop.eup %4621 }
 0x6ef   : > { %v4624_v42 = vpop.eup %4623 }
 0x6f3   : > { %v4626_v19 = vpop.eup %4625 }
 0x6f4   : > { %v2996_v32 = vsub.f32 1.0, %v4626_v19  ;;  %v3000_v40 = vmul.f32 %v4626_v19, %v6522_v43  ;;  %v7491_v19 = vld [vmem:[#allocation36_spill] sm:$0xff] }
 0x6f5   : > { %v4628_v17 = vpop.eup %4627 }
 0x6f6   : > { %v2997_v16 = vsub.f32 1.0, %v4628_v17  ;;  %v3001_v6 = vmul.f32 %v4628_v17, %v6524_v5  ;;  %v7492_v17 = vld [vmem:[#allocation30_spill] sm:$0xff] }
 0x70b   : > { %v2953_v28 = vpop.f32.mrf.mxu0 }
 0x70c   : > { %v2988_v8 = vadd.f32 %v2953_v28, %v5590_v26 }
 0x70d   : > { %v2955_v55 = vpop.f32.mrf.mxu0 }
 0x70e   : > { %v2990_v36 = vmul.f32 %v4622_v24, %v2988_v8  ;;  %v2989_v13 = vadd.f32 %v2955_v55, %v5594_v25 }
 0x70f   : > { %v2957_v18 = vpop.f32.mrf.mxu0 }
 0x710   : > { %v2992_v61 = vadd.f32 %v2990_v36, %v2833_v2  ;;  %v2991_v39 = vmul.f32 %v4624_v42, %v2989_v13 }
 0x711   : > { %v2958_v9 = vpop.f32.mrf.mxu0 }
 0x712   : > { %4629 = vtanh.f32 %v2992_v61  ;;  %v2993_v41 = vadd.f32 %v2991_v39, %v2834_v10  ;;  %v7486_v61 = vld [vmem:[#allocation25_spill] sm:$0xff]  ;;  %v7487_v10 = vld [vmem:[#allocation26_spill] sm:$0xff]  ;;  %v7488_v39 = vld [vmem:[#allocation27_spill] sm:$0xff] }
 0x713   : > { %v7489_v9 = vld [vmem:[#allocation28_spill] sm:$0xff] }
 0x714   : > { %4631 = vtanh.f32 %v2993_v41  ;;  %v7490_v41 = vld [vmem:[#allocation29_spill] sm:$0xff] }
 0x71f   : > { %v4630_v23 = vpop.eup %4629 }
 0x720   : > { %v2998_v28 = vmul.f32 %v4630_v23, %v2996_v32  ;;  %v7493_v32 = vld [vmem:[#allocation47_spill] sm:$0xff]  ;;  %v7494_v23 = vld [vmem:[#allocation37_spill] sm:$0xff] }
 0x721   : > { %v4632_v8 = vpop.eup %4631 }
 0x722   : > { %v2999_v24 = vmul.f32 %v4632_v8, %v2997_v16  ;;  %v6800_v55 = vadd.f32 %v3000_v40, %v2998_v28  ;;  %v7495_v40 = vld [vmem:[#allocation24_spill] sm:$0xff]  ;;  %v7496_v16 = vld [vmem:[#allocation5_spill] sm:$0xff]  ;;  %v7497_v28 = vld [vmem:[#allocation38_spill] sm:$0xff] }
 0x723   : > { %v7498_v8 = vld [vmem:[#allocation39_spill] sm:$0xff] }
 0x724   : > { %v6802_v62 = vadd.f32 %v3001_v6, %v2999_v24  ;;  %v3006_v2 = vmul.f32 0.01, %v6800_v55  ;;  %vm3004_vm10 = vcmp.ge.f32.partialorder %v6800_v55, 0.0  ;;  %v6813_v13 = vpack.c.bf16 %v6800_v55, %v6800_v55  ;;  %v7499_v24 = vld [vmem:[#allocation6_spill] sm:$0xff]  ;;  %v7500_v6 = vld [vmem:[#allocation7_spill] sm:$0xff] }
 0x726   : > { %vm3005_vm11 = vcmp.ge.f32.partialorder %v6802_v62, 0.0  ;;  %v3007_v36 = vmul.f32 0.01, %v6802_v62  ;;  %v3036_v43 = vpack.c.bf16 %v6802_v62, %v6802_v62  ;;  %v3008_v42 = vsel %vm3004_vm10, %v6800_v55, %v3006_v2  ;;  %v7501_v2 = vld [vmem:[#allocation40_spill] sm:$0xff] }
 0x728   : > { %v3009_v5 = vsel %vm3005_vm11, %v6802_v62, %v3007_v36  ;;  %3069 = vmatprep.mubr.bf16.mxu1 %v3036_v43  ;;  %3110 = vmatprep.mubr.bf16.mxu0 %v3036_v43  ;;  %v7502_v36 = vld [vmem:[#allocation41_spill] sm:$0xff] }
 0x729   : > { %v4188_v18 = vpack.c.bf16 %v3009_v5, %v3008_v42  ;;  %3070 = vmatmul.mubr.bf16.vlgmr.msra.gmra.mxu1 %v6813_v13  ;;  %3111 = vmatmul.mubr.bf16.vlgmr.msra.gmra.mxu0 %v6813_v13  ;;  %v7505_v5 = vld [vmem:[#allocation44_spill] sm:$0xff] }
 0x72a   : > { %3120 = vmatpush1.bf16.msra.mxu1 %v6542_v4  ;;  %3151 = vmatprep.mubr.bf16.mxu1 %v3036_v43  ;;  %v7503_v43 = vld [vmem:[#allocation42_spill] sm:$0xff]  ;;  %v7506_v42 = vld [vmem:[#allocation8_spill] sm:$0xff] }
 0x72b   : > { %3021 = vst [vmem:[%s3020_s18] sm:$0xff] %v4188_v18  ;;  %3121 = vmatprep.subr.bf16.mxu1 %v6546_v30  ;;  %3238 = vmatpush1.bf16.msra.mxu0 %v6284_v29  ;;  %v7468_v29 = vld [vmem:[#allocation11_spill] sm:$0xff]  ;;  %v7507_v18 = vld [vmem:[#allocation45_spill] sm:$0xff] }
 0x72c   : > { %3239 = vmatprep.subr.bf16.mxu0 %v6288_v34  ;;  %v7469_v34 = vld [vmem:[#allocation10_spill] sm:$0xff] }
 0x72e   : > { %3122 = vmatpush1.bf16.msra.mxu1 %v6552_v11 }
 0x72f   : > { %3123 = vmatprep.subr.bf16.mxu1 %v6556_v0  ;;  %3240 = vmatpush1.bf16.msra.mxu0 %v6294_v47  ;;  %v7470_v47 = vld [vmem:[#allocation32_spill] sm:$0xff] }
 0x730   : > { %3241 = vmatprep.subr.bf16.mxu0 %v6298_v38  ;;  %v7471_v38 = vld [vmem:[#allocation12_spill] sm:$0xff] }
 0x732   : > { %3124 = vmatpush1.bf16.msra.mxu1 %v6562_v37 }
 0x733   : > { %3125 = vmatprep.subr.bf16.mxu1 %v6566_v50  ;;  %3242 = vmatpush1.bf16.msra.mxu0 %v6304_v31  ;;  %v7472_v31 = vld [vmem:[#allocation13_spill] sm:$0xff] }
 0x734   : > { %3243 = vmatprep.subr.bf16.mxu0 %v6308_v14  ;;  %v7473_v14 = vld [vmem:[#allocation33_spill] sm:$0xff] }
 0x736   : > { %3126 = vmatpush1.bf16.msra.mxu1 %v6572_v46 }
 0x737   : > { %3127 = vmatprep.subr.bf16.mxu1 %v6576_v33  ;;  %3244 = vmatpush1.bf16.msra.mxu0 %v6314_v12  ;;  %v7474_v12 = vld [vmem:[#allocation14_spill] sm:$0xff] }
 0x738   : > { %3245 = vmatprep.subr.bf16.mxu0 %v6318_v60  ;;  %v7475_v60 = vld [vmem:[#allocation16_spill] sm:$0xff] }
 0x73a   : > { %3128 = vmatpush1.bf16.msra.mxu1 %v6582_v15 }
 0x73b   : > { %3129 = vmatprep.subr.bf16.mxu1 %v6586_v58  ;;  %3246 = vmatpush1.bf16.msra.mxu0 %v6324_v63  ;;  %v7476_v63 = vld [vmem:[#allocation15_spill] sm:$0xff] }
 0x73c   : > { %3247 = vmatprep.subr.bf16.mxu0 %v6328_v57  ;;  %v7477_v57 = vld [vmem:[#allocation17_spill] sm:$0xff] }
 0x73e   : > { %3130 = vmatpush1.bf16.msra.mxu1 %v6592_v56 }
 0x73f   : > { %3131 = vmatprep.subr.bf16.mxu1 %v6596_v48  ;;  %3248 = vmatpush1.bf16.msra.mxu0 %v6334_v59  ;;  %v7478_v59 = vld [vmem:[#allocation18_spill] sm:$0xff] }
 0x740   : > { %3249 = vmatprep.subr.bf16.mxu0 %v6338_v45  ;;  %v7479_v45 = vld [vmem:[#allocation20_spill] sm:$0xff] }
 0x742   : > { %3132 = vmatpush1.bf16.msra.mxu1 %v6602_v22 }
 0x743   : > { %3133 = vmatprep.subr.bf16.mxu1 %v6606_v35  ;;  %3250 = vmatpush1.bf16.msra.mxu0 %v6344_v53  ;;  %v7480_v53 = vld [vmem:[#allocation34_spill] sm:$0xff] }
 0x744   : > { %3251 = vmatprep.subr.bf16.mxu0 %v6348_v54  ;;  %v7481_v54 = vld [vmem:[#allocation35_spill] sm:$0xff] }
 0x746   : > { %3134 = vmatpush1.bf16.msra.mxu1 %v6612_v20 }
 0x747   : > { %3135 = vmatprep.subr.bf16.mxu1 %v6616_v21  ;;  %3252 = vmatpush1.bf16.msra.mxu0 %v6354_v1  ;;  %v7482_v1 = vld [vmem:[#allocation21_spill] sm:$0xff] }
 0x748   : > { %3253 = vmatprep.subr.bf16.mxu0 %v6358_v49  ;;  %v7483_v49 = vld [vmem:[#allocation23_spill] sm:$0xff] }
 0x74a   : > { %3136 = vmatpush2.bf16.msra.mxu1 %v6622_v52 }
 0x74b   : > { %3137 = vmatprep.subr.bf16.mxu1 %v6626_v51  ;;  %3254 = vmatpush2.bf16.msra.mxu0 %v7468_v29  ;;  %v7508_v29 = vld [vmem:[#allocation46_spill] sm:$0xff] }
 0x74c   : > { %3255 = vmatprep.subr.bf16.mxu0 %v6368_v3  ;;  %v7484_v3 = vld [vmem:[#allocation19_spill] sm:$0xff] }
 0x74e   : > { %3138 = vmatpush2.bf16.msra.mxu1 %v6632_v44 }
 0x74f   : > { %3139 = vmatprep.subr.bf16.mxu1 %v7469_v34  ;;  %3256 = vmatpush2.bf16.msra.mxu0 %v7470_v47  ;;  %v7509_v47 = vld [vmem:[#allocation48_spill] sm:$0xff] }
 0x750   : > { %3257 = vmatprep.subr.bf16.mxu0 %v6378_v27  ;;  %v7485_v27 = vld [vmem:[#allocation22_spill] sm:$0xff] }
 0x752   : > { %3140 = vmatpush2.bf16.msra.mxu1 %v6642_v7 }
 0x753   : > { %3141 = vmatprep.subr.bf16.mxu1 %v7471_v38  ;;  %3258 = vmatpush2.bf16.msra.mxu0 %v7472_v31  ;;  %v7510_v31 = vld [vmem:[#allocation49_spill] sm:$0xff] }
 0x754   : > { %3259 = vmatprep.subr.bf16.mxu0 %v7473_v14  ;;  %v7511_v14 = vld [vmem:[#allocation31_spill] sm:$0xff] }
 0x756   : > { %3142 = vmatpush2.bf16.msra.mxu1 %v7474_v12 }
 0x757   : > { %3143 = vmatprep.subr.bf16.mxu1 %v7475_v60  ;;  %3260 = vmatpush2.bf16.msra.mxu0 %v7476_v63  ;;  %v7512_v63 = vld [vmem:[#allocation50_spill] sm:$0xff] }
 0x758   : > { %3261 = vmatprep.subr.bf16.mxu0 %v7477_v57  ;;  %v7513_v57 = vld [vmem:[#allocation51_spill] sm:$0xff] }
 0x75a   : > { %3144 = vmatpush2.bf16.msra.mxu1 %v7478_v59 }
 0x75b   : > { %3145 = vmatprep.subr.bf16.mxu1 %v7479_v45  ;;  %3262 = vmatpush2.bf16.msra.mxu0 %v7480_v53  ;;  %v7514_v53 = vld [vmem:[#allocation52_spill] sm:$0xff] }
 0x75c   : > { %3263 = vmatprep.subr.bf16.mxu0 %v7481_v54  ;;  %v7515_v54 = vld [vmem:[#allocation53_spill] sm:$0xff] }
 0x75e   : > { %3146 = vmatpush2.bf16.msra.mxu1 %v7482_v1 }
 0x75f   : > { %3147 = vmatprep.subr.bf16.mxu1 %v7483_v49  ;;  %3264 = vmatpush2.bf16.msra.mxu0 %v7484_v3  ;;  %v7516_v3 = vld [vmem:[#allocation54_spill] sm:$0xff] }
 0x760   : > { %3265 = vmatprep.subr.bf16.mxu0 %v7485_v27  ;;  %v7517_v27 = vld [vmem:[#allocation55_spill] sm:$0xff] }
 0x762   : > { %3148 = vmatpush2.bf16.msra.mxu1 %v7486_v61 }
 0x763   : > { %3149 = vmatprep.subr.bf16.mxu1 %v7487_v10  ;;  %3266 = vmatpush2.bf16.msra.mxu0 %v7488_v39  ;;  %v7518_v39 = vld [vmem:[#allocation56_spill] sm:$0xff] }
 0x764   : > { %3267 = vmatprep.subr.bf16.mxu0 %v7489_v9  ;;  %v7519_v9 = vld [vmem:[#allocation57_spill] sm:$0xff] }
 0x766   : > { %3150 = vmatpush2.bf16.msra.mxu1 %v7490_v41 }
 0x767   : > { %3278 = vmatprep.subr.bf16.mxu1 %v7491_v19  ;;  %3268 = vmatpush2.bf16.msra.mxu0 %v7492_v17  ;;  %v7520_v19 = vld [vmem:[#allocation58_spill] sm:$0xff]  ;;  %v7521_v17 = vld [vmem:[#allocation59_spill] sm:$0xff] }
 0x768   : > { %3319 = vmatprep.subr.bf16.mxu0 %v7493_v32  ;;  %v7522_v32 = vld [vmem:[#allocation60_spill] sm:$0xff] }
 0x769   : > { %3152 = vmatmul.mubr.bf16.vlgmr.msra.gmra.mxu1 %v6813_v13  ;;  %v7504_v13 = vld [vmem:[#allocation43_spill] sm:$0xff] }
 0x76a   : > { %3279 = vmatpush1.bf16.msra.mxu1 %v7494_v23  ;;  %v7523_v23 = vld [vmem:[#allocation61_spill] sm:$0xff] }
 0x76b   : > { %3280 = vmatprep.subr.bf16.mxu1 %v7495_v40  ;;  %v7524_v40 = vld [vmem:[#allocation62_spill] sm:$0xff] }
 0x76e   : > { %3281 = vmatpush1.bf16.msra.mxu1 %v7496_v16 }
 0x76f   : > { %3282 = vmatprep.subr.bf16.mxu1 %v7497_v28 }
 0x772   : > { %3283 = vmatpush1.bf16.msra.mxu1 %v7498_v8 }
 0x773   : > { %3284 = vmatprep.subr.bf16.mxu1 %v7499_v24 }
 0x776   : > { %3285 = vmatpush1.bf16.msra.mxu1 %v7500_v6 }
 0x777   : > { %3286 = vmatprep.subr.bf16.mxu1 %v7501_v2 }
 0x77a   : > { %3287 = vmatpush1.bf16.msra.mxu1 %v7502_v36 }
 0x77b   : > { %3288 = vmatprep.subr.bf16.mxu1 %v7503_v43 }
 0x77e   : > { %3289 = vmatpush1.bf16.msra.mxu1 %v7504_v13  ;;  %v3026_v13 = vld [vmem:[%s3025_s26] sm:$0xff] }
 0x77f   : > { %3290 = vmatprep.subr.bf16.mxu1 %v7505_v5  ;;  %v3029_v5 = vunpack.c.l.bf16 %v3026_v13 }
 0x782   : > { %3291 = vmatpush1.bf16.msra.mxu1 %v7506_v42 }
 0x783   : > { %3292 = vmatprep.subr.bf16.mxu1 %v7507_v18  ;;  %v3030_v18 = vunpack.c.h.bf16 %v3026_v13 }
 0x786   : > { %3293 = vmatpush1.bf16.msra.mxu1 %v7508_v29 }
 0x787   : > { %3294 = vmatprep.subr.bf16.mxu1 %v7509_v47 }
 0x78a   : > { %3295 = vmatpush2.bf16.msra.mxu1 %v7510_v31 }
 0x78b   : > { %3296 = vmatprep.subr.bf16.mxu1 %v7511_v14  ;;  %v3027_v14 = vld [vmem:[%s3025_s26 + $0x8] sm:$0xff] }
 0x78e   : > { %3297 = vmatpush2.bf16.msra.mxu1 %v7512_v63  ;;  %v3031_v63 = vunpack.c.l.bf16 %v3027_v14 }
 0x78f   : > { %3298 = vmatprep.subr.bf16.mxu1 %v7513_v57 }
 0x792   : > { %3299 = vmatpush2.bf16.msra.mxu1 %v7514_v53  ;;  %v3032_v53 = vunpack.c.h.bf16 %v3027_v14 }
 0x793   : > { %3300 = vmatprep.subr.bf16.mxu1 %v7515_v54 }
 0x796   : > { %3301 = vmatpush2.bf16.msra.mxu1 %v7516_v3 }
 0x797   : > { %3302 = vmatprep.subr.bf16.mxu1 %v7517_v27 }
 0x79a   : > { %3303 = vmatpush2.bf16.msra.mxu1 %v7518_v39 }
 0x79b   : > { %3304 = vmatprep.subr.bf16.mxu1 %v7519_v9 }
 0x79e   : > { %3305 = vmatpush2.bf16.msra.mxu1 %v7520_v19 }
 0x79f   : > { %3306 = vmatprep.subr.bf16.mxu1 %v7521_v17 }
 0x7a2   : > { %3307 = vmatpush2.bf16.msra.mxu1 %v7522_v32 }
 0x7a3   : > { %3308 = vmatprep.subr.bf16.mxu1 %v7523_v23 }
 0x7a6   : > { %3309 = vmatpush2.bf16.msra.mxu1 %v7524_v40 }
 0x7e9   : > { %v3071_v16 = vpop.f32.mrf.mxu1  ;;  %v3112_v28 = vpop.f32.mrf.mxu0 }
 0x7ea   : > { %v3160_v42 = vadd.f32 %v3071_v16, %v3029_v5  ;;  %v3174_v57 = vadd.f32 %v3112_v28, %v3031_v63  ;;  %v3028_v16 = vld [vmem:[%s3025_s26 + $0x10] sm:$0xff] }
 0x7eb   : > { %v3073_v8 = vpop.f32.mrf.mxu1  ;;  %v3114_v24 = vpop.f32.mrf.mxu0 }
 0x7ec   : > { %v3161_v29 = vadd.f32 %v3073_v8, %v3030_v18  ;;  %v4103_v47 = vmul.f32 -1.442695, %v3160_v42  ;;  %v3175_v54 = vadd.f32 %v3114_v24, %v3032_v53  ;;  %v4105_v3 = vmul.f32 -1.442695, %v3174_v57 }
 0x7ed   : > { %v3075_v6 = vpop.f32.mrf.mxu1  ;;  %v3116_v2 = vpop.f32.mrf.mxu0 }
 0x7ee   : > { %v4104_v31 = vmul.f32 -1.442695, %v3161_v29  ;;  %4633 = vpow2.f32 %v4103_v47  ;;  %v4106_v27 = vmul.f32 -1.442695, %v3175_v54  ;;  %v3034_v29 = vunpack.c.h.bf16 %v3028_v16 }
 0x7ef   : > { %v3076_v36 = vpop.f32.mrf.mxu1  ;;  %v3117_v43 = vpop.f32.mrf.mxu0 }
 0x7f0   : > { %4635 = vpow2.f32 %v4104_v31  ;;  %v3033_v36 = vunpack.c.l.bf16 %v3028_v16 }
 0x7f1   : > { %4637 = vpow2.f32 %v4105_v3 }
 0x7f2   : > { %4639 = vpow2.f32 %v4106_v27 }
 0x7fb   : > { %v4634_v39 = vpop.eup %4633 }
 0x7fc   : > { %v3168_v19 = vadd.f32 1.0, %v4634_v39 }
 0x7fd   : > { %v4636_v9 = vpop.eup %4635 }
 0x7fe   : > { %v3169_v17 = vadd.f32 1.0, %v4636_v9  ;;  %4641 = vrcp.f32 %v3168_v19  ;;  %v4638_v32 = vpop.eup %4637 }
 0x7ff   : > { %v4640_v23 = vpop.eup %4639  ;;  %v3182_v40 = vadd.f32 1.0, %v4638_v32 }
 0x800   : > { %4643 = vrcp.f32 %v3169_v17  ;;  %v3183_v6 = vadd.f32 1.0, %v4640_v23 }
 0x801   : > { %4645 = vrcp.f32 %v3182_v40 }
 0x802   : > { %4647 = vrcp.f32 %v3183_v6 }
 0x80b   : > { %v4642_v2 = vpop.eup %4641 }
 0x80d   : > { %v4644_v5 = vpop.eup %4643 }
 0x80e   : > { %v4646_v63 = vpop.eup %4645 }
 0x80f   : > { %v4648_v57 = vpop.eup %4647  ;;  %v3196_v53 = vsub.f32 1.0, %v4646_v63  ;;  %v3200_v3 = vmul.f32 %v4646_v63, %v6800_v55 }
 0x810   : > { %v3197_v27 = vsub.f32 1.0, %v4648_v57  ;;  %v3201_v17 = vmul.f32 %v4648_v57, %v6802_v62 }
 0x829   : > { %v3153_v8 = vpop.f32.mrf.mxu1 }
 0x82a   : > { %v3188_v28 = vadd.f32 %v3153_v8, %v5590_v26 }
 0x82b   : > { %v3155_v24 = vpop.f32.mrf.mxu1 }
 0x82c   : > { %v3190_v43 = vmul.f32 %v4642_v2, %v3188_v28  ;;  %v3189_v13 = vadd.f32 %v3155_v24, %v5594_v25  ;;  %v3227_v2 = vld [vmem:[%s3225_s12 + $0x8] sm:$0xff] }
 0x82d   : > { %v3157_v42 = vpop.f32.mrf.mxu1  ;;  %v3231_v24 = vunpack.c.l.bf16 %v3227_v2 }
 0x82e   : > { %v3192_v18 = vadd.f32 %v3190_v43, %v3033_v36  ;;  %v3191_v47 = vmul.f32 %v4644_v5, %v3189_v13  ;;  %v3232_v43 = vunpack.c.h.bf16 %v3227_v2 }
 0x82f   : > { %v3158_v31 = vpop.f32.mrf.mxu1 }
 0x830   : > { %4649 = vtanh.f32 %v3192_v18  ;;  %v3193_v14 = vadd.f32 %v3191_v47, %v3034_v29 }
 0x832   : > { %4651 = vtanh.f32 %v3193_v14 }
 0x83d   : > { %v4650_v54 = vpop.eup %4649 }
 0x83e   : > { %v3198_v39 = vmul.f32 %v4650_v54, %v3196_v53  ;;  %v3228_v53 = vld [vmem:[%s3225_s12 + $0x10] sm:$0xff] }
 0x83f   : > { %v4652_v9 = vpop.eup %4651 }
 0x840   : > { %v3199_v19 = vmul.f32 %v4652_v9, %v3197_v27  ;;  %v6924_v32 = vadd.f32 %v3200_v3, %v3198_v39 }
 0x842   : > { %v6926_v23 = vadd.f32 %v3201_v17, %v3199_v19  ;;  %v3206_v40 = vmul.f32 0.01, %v6924_v32  ;;  %vm3204_vm12 = vcmp.ge.f32.partialorder %v6924_v32, 0.0  ;;  %v3235_v8 = vpack.c.bf16 %v6924_v32, %v6924_v32 }
 0x843   : > { %v3233_v19 = vunpack.c.l.bf16 %v3228_v53 }
 0x844   : > { %vm3205_vm13 = vcmp.ge.f32.partialorder %v6926_v23, 0.0  ;;  %v3207_v16 = vmul.f32 0.01, %v6926_v23  ;;  %v3236_v55 = vpack.c.bf16 %v6926_v23, %v6926_v23  ;;  %v3208_v6 = vsel %vm3204_vm12, %v6924_v32, %v3206_v40 }
 0x846   : > { %v3209_v62 = vsel %vm3205_vm13, %v6926_v23, %v3207_v16  ;;  %3269 = vmatprep.mubr.bf16.mxu0 %v3236_v55  ;;  %3310 = vmatprep.mubr.bf16.mxu1 %v3236_v55 }
 0x847   : > { %v4191_v28 = vpack.c.bf16 %v3209_v62, %v3208_v6  ;;  %3270 = vmatmul.mubr.bf16.vlgmr.msra.gmra.mxu0 %v3235_v8  ;;  %3311 = vmatmul.mubr.bf16.vlgmr.msra.gmra.mxu1 %v3235_v8  ;;  %v3234_v62 = vunpack.c.h.bf16 %v3228_v53 }
 0x848   : > { %3320 = vmatpush1.bf16.msra.mxu0 %v6542_v4  ;;  %3351 = vmatprep.mubr.bf16.mxu0 %v3236_v55  ;;  %v4485_v4 = vld [vmem:[%s410_s8 + $0x78] sm:$0xff]  }
 0x849   : > { %3221 = vst [vmem:[%s3220_s28] sm:$0xff] %v4191_v28  ;;  %3321 = vmatprep.subr.bf16.mxu0 %v6546_v30  ;;  %v4486_v30 = vld [vmem:[%s410_s8 + $0x38] sm:$0xff]   ;;  %4196 = vmatprep.subr.bf16.mxu1 %v4485_v4 }
 0x84a   : > { %4197 = vmatpush3.bf16.msra.mxu1 %v4486_v30 }
 0x84c   : > { %3322 = vmatpush1.bf16.msra.mxu0 %v6552_v11  ;;  %v4487_v11 = vld [vmem:[%s410_s8 + $0x70] sm:$0xff]  }
 0x84d   : > { %3323 = vmatprep.subr.bf16.mxu0 %v6556_v0  ;;  %v4488_v0 = vld [vmem:[%s410_s8 + $0x30] sm:$0xff]   ;;  %4198 = vmatprep.subr.bf16.mxu1 %v4487_v11 }
 0x84e   : > { %4199 = vmatpush3.bf16.msra.mxu1 %v4488_v0 }
 0x850   : > { %3324 = vmatpush1.bf16.msra.mxu0 %v6562_v37  ;;  %v4489_v37 = vld [vmem:[%s410_s8 + $0x68] sm:$0xff]  }
 0x851   : > { %3325 = vmatprep.subr.bf16.mxu0 %v6566_v50  ;;  %v4490_v50 = vld [vmem:[%s410_s8 + $0x28] sm:$0xff]   ;;  %4200 = vmatprep.subr.bf16.mxu1 %v4489_v37 }
 0x852   : > { %4201 = vmatpush3.bf16.msra.mxu1 %v4490_v50 }
 0x854   : > { %3326 = vmatpush1.bf16.msra.mxu0 %v6572_v46  ;;  %v4491_v46 = vld [vmem:[%s410_s8 + $0x60] sm:$0xff]  }
 0x855   : > { %3327 = vmatprep.subr.bf16.mxu0 %v6576_v33  ;;  %v4492_v33 = vld [vmem:[%s410_s8 + $0x20] sm:$0xff]   ;;  %4202 = vmatprep.subr.bf16.mxu1 %v4491_v46 }
 0x856   : > { %4203 = vmatpush3.bf16.msra.mxu1 %v4492_v33 }
 0x858   : > { %3328 = vmatpush1.bf16.msra.mxu0 %v6582_v15  ;;  %v4493_v15 = vld [vmem:[%s410_s8 + $0x58] sm:$0xff]  }
 0x859   : > { %3329 = vmatprep.subr.bf16.mxu0 %v6586_v58  ;;  %v4494_v58 = vld [vmem:[%s410_s8 + $0x18] sm:$0xff]   ;;  %4204 = vmatprep.subr.bf16.mxu1 %v4493_v15 }
 0x85a   : > { %4205 = vmatpush3.bf16.msra.mxu1 %v4494_v58 }
 0x85c   : > { %3330 = vmatpush1.bf16.msra.mxu0 %v6592_v56  ;;  %v4495_v56 = vld [vmem:[%s410_s8 + $0x50] sm:$0xff]  }
 0x85d   : > { %3331 = vmatprep.subr.bf16.mxu0 %v6596_v48  ;;  %v4496_v48 = vld [vmem:[%s410_s8 + $0x10] sm:$0xff]   ;;  %4206 = vmatprep.subr.bf16.mxu1 %v4495_v56 }
 0x85e   : > { %4207 = vmatpush3.bf16.msra.mxu1 %v4496_v48 }
 0x860   : > { %3332 = vmatpush1.bf16.msra.mxu0 %v6602_v22  ;;  %v4497_v22 = vld [vmem:[%s410_s8 + $0x48] sm:$0xff]  }
 0x861   : > { %3333 = vmatprep.subr.bf16.mxu0 %v6606_v35  ;;  %v4498_v35 = vld [vmem:[%s410_s8 + $0x8] sm:$0xff]   ;;  %4208 = vmatprep.subr.bf16.mxu1 %v4497_v22 }
 0x862   : > { %4209 = vmatpush3.bf16.msra.mxu1 %v4498_v35 }
 0x864   : > { %3334 = vmatpush1.bf16.msra.mxu0 %v6612_v20  ;;  %v4499_v20 = vld [vmem:[%s410_s8 + $0x40] sm:$0xff]  }
 0x865   : > { %3335 = vmatprep.subr.bf16.mxu0 %v6616_v21  ;;  %v4500_v21 = vld [vmem:[%s410_s8] sm:$0xff]   ;;  %4210 = vmatprep.subr.bf16.mxu1 %v4499_v20 }
 0x866   : > { %4211 = vmatpush3.bf16.msra.mxu1 %v4500_v21 }
 0x868   : > { %3336 = vmatpush2.bf16.msra.mxu0 %v6622_v52 }
 0x869   : > { %3337 = vmatprep.subr.bf16.mxu0 %v6626_v51 }
 0x86c   : > { %3338 = vmatpush2.bf16.msra.mxu0 %v6632_v44 }
 0x86d   : > { %3339 = vmatprep.subr.bf16.mxu0 %v7469_v34 }
 0x870   : > { %3340 = vmatpush2.bf16.msra.mxu0 %v6642_v7 }
 0x871   : > { %3341 = vmatprep.subr.bf16.mxu0 %v7471_v38 }
 0x874   : > { %3342 = vmatpush2.bf16.msra.mxu0 %v7474_v12 }
 0x875   : > { %3343 = vmatprep.subr.bf16.mxu0 %v7475_v60 }
 0x878   : > { %3344 = vmatpush2.bf16.msra.mxu0 %v7478_v59  ;;  %v3226_v59 = vld [vmem:[%s3225_s12] sm:$0xff] }
 0x879   : > { %3345 = vmatprep.subr.bf16.mxu0 %v7479_v45  ;;  %v3229_v45 = vunpack.c.l.bf16 %v3226_v59 }
 0x87c   : > { %3346 = vmatpush2.bf16.msra.mxu0 %v7482_v1 }
 0x87d   : > { %3347 = vmatprep.subr.bf16.mxu0 %v7483_v49  ;;  %v3230_v49 = vunpack.c.h.bf16 %v3226_v59 }
 0x880   : > { %3348 = vmatpush2.bf16.msra.mxu0 %v7486_v61 }
 0x881   : > { %3349 = vmatprep.subr.bf16.mxu0 %v7487_v10 }
 0x884   : > { %3350 = vmatpush2.bf16.msra.mxu0 %v7490_v41 }
 0x887   : > { %3352 = vmatmul.mubr.bf16.vlgmr.msra.gmra.mxu0 %v3235_v8 }
 0x907   : > { %v3271_v52 = vpop.f32.mrf.mxu0  ;;  %v3312_v51 = vpop.f32.mrf.mxu1 }
 0x908   : > { %v3360_v1 = vadd.f32 %v3271_v52, %v3229_v45  ;;  %v3374_v36 = vadd.f32 %v3312_v51, %v3231_v24 }
 0x909   : > { %v3273_v44 = vpop.f32.mrf.mxu0  ;;  %v3314_v7 = vpop.f32.mrf.mxu1 }
 0x90a   : > { %v3361_v61 = vadd.f32 %v3273_v44, %v3230_v49  ;;  %v4111_v10 = vmul.f32 -1.442695, %v3360_v1  ;;  %v3375_v13 = vadd.f32 %v3314_v7, %v3232_v43  ;;  %v4113_v5 = vmul.f32 -1.442695, %v3374_v36 }
 0x90b   : > { %v3275_v34 = vpop.f32.mrf.mxu0  ;;  %v3316_v38 = vpop.f32.mrf.mxu1 }
 0x90c   : > { %v4112_v41 = vmul.f32 -1.442695, %v3361_v61  ;;  %4653 = vpow2.f32 %v4111_v10  ;;  %v4114_v42 = vmul.f32 -1.442695, %v3375_v13 }
 0x90d   : > { %v3276_v12 = vpop.f32.mrf.mxu0  ;;  %v3317_v60 = vpop.f32.mrf.mxu1 }
 0x90e   : > { %4655 = vpow2.f32 %v4112_v41 }
 0x90f   : > { %4657 = vpow2.f32 %v4113_v5 }
 0x910   : > { %4659 = vpow2.f32 %v4114_v42 }
 0x919   : > { %v4654_v18 = vpop.eup %4653 }
 0x91a   : > { %v3368_v47 = vadd.f32 1.0, %v4654_v18 }
 0x91b   : > { %v4656_v29 = vpop.eup %4655 }
 0x91c   : > { %v3369_v31 = vadd.f32 1.0, %v4656_v29  ;;  %4661 = vrcp.f32 %v3368_v47  ;;  %v4658_v14 = vpop.eup %4657 }
 0x91d   : > { %v4660_v63 = vpop.eup %4659  ;;  %v3382_v57 = vadd.f32 1.0, %v4658_v14 }
 0x91e   : > { %4663 = vrcp.f32 %v3369_v31  ;;  %v3383_v3 = vadd.f32 1.0, %v4660_v63 }
 0x91f   : > { %4665 = vrcp.f32 %v3382_v57 }
 0x920   : > { %4667 = vrcp.f32 %v3383_v3 }
 0x929   : > { %v4662_v39 = vpop.eup %4661 }
 0x92b   : > { %v4664_v16 = vpop.eup %4663 }
 0x92c   : > { %v4666_v30 = vpop.eup %4665 }
 0x92d   : > { %v3396_v11 = vsub.f32 1.0, %v4666_v30  ;;  %v3400_v37 = vmul.f32 %v4666_v30, %v6924_v32 }
 0x947   : > { %v3353_v54 = vpop.f32.mrf.mxu0 }
 0x948   : > { %v3388_v27 = vadd.f32 %v3353_v54, %v5590_v26  ;;  %v4668_v26 = vpop.eup %4667 }
 0x949   : > { %v3355_v9 = vpop.f32.mrf.mxu0  ;;  %v3397_v50 = vsub.f32 1.0, %v4668_v26  ;;  %v3401_v33 = vmul.f32 %v4668_v26, %v6926_v23 }
 0x94a   : > { %v3390_v17 = vmul.f32 %v4662_v39, %v3388_v27  ;;  %v3389_v40 = vadd.f32 %v3355_v9, %v5594_v25 }
 0x94b   : > { %v3357_v55 = vpop.f32.mrf.mxu0 }
 0x94c   : > { %v3392_v8 = vadd.f32 %v3390_v17, %v3233_v19  ;;  %v3391_v6 = vmul.f32 %v4664_v16, %v3389_v40 }
 0x94d   : > { %v3358_v28 = vpop.f32.mrf.mxu0 }
 0x94e   : > { %4669 = vtanh.f32 %v3392_v8  ;;  %v3393_v4 = vadd.f32 %v3391_v6, %v3234_v62 }
 0x950   : > { %4671 = vtanh.f32 %v3393_v4 }
 0x95b   : > { %v4670_v0 = vpop.eup %4669 }
 0x95c   : > { %v3398_v46 = vmul.f32 %v4670_v0, %v3396_v11 }
 0x95d   : > { %v4672_v25 = vpop.eup %4671 }
 0x95e   : > { %v3402_v15 = vadd.f32 %v3400_v37, %v3398_v46  ;;  %v3399_v58 = vmul.f32 %v4672_v25, %v3397_v50 }
 0x960   : > { %v3406_v56 = vmul.f32 0.01, %v3402_v15  ;;  %v3403_v48 = vadd.f32 %v3401_v33, %v3399_v58  ;;  %vm3404_vm14 = vcmp.ge.f32.partialorder %v3402_v15, 0.0 }
 0x962   : > { %vm3405_vm15 = vcmp.ge.f32.partialorder %v3403_v48, 0.0  ;;  %v3407_v22 = vmul.f32 0.01, %v3403_v48  ;;  %v3408_v35 = vsel %vm3404_vm14, %v3402_v15, %v3406_v56 }
 0x964   : > { %v3409_v20 = vsel %vm3405_vm15, %v3403_v48, %v3407_v22 }
 0x965   : > { %v4194_v21 = vpack.c.bf16 %v3409_v20, %v3408_v35 }
 0x967   : > { %3421 = vst [vmem:[%s3420_s13] sm:$0xff] %v4194_v21 }
 0x96e   : > { %v4501_v52 = vld [vmem:[#allocation3] ss:$8 sps:$4 sm:$0xff]   ;;  %v4503_v32 = vld [vmem:[#allocation3 + $0x4] ss:$8 sps:$4 sm:$0xff]   ;;  %v4504_v51 = vld [vmem:[#allocation3 + $0x14] ss:$8 sps:$4 sm:$0xff]  }
 0x96f   : > { %3632 = vmatprep.mubr.bf16.mxu1 %v4503_v32  ;;  %v4506_v23 = vld [vmem:[#allocation3 + $0x10] ss:$8 sps:$4 sm:$0xff]   ;;  %v4507_v44 = vld [vmem:[#allocation3 + $0x24] ss:$8 sps:$4 sm:$0xff]   ;;  %v4509_v7 = vld [vmem:[#allocation3 + $0x20] ss:$8 sps:$4 sm:$0xff]  }
 0x970   : > { %3633 = vmatmul.mubr.bf16.vlgmr.msra.gmra.mxu1 %v4501_v52  ;;  %v4510_v34 = vld [vmem:[#allocation3 + $0x34] ss:$8 sps:$4 sm:$0xff]   ;;  %v4512_v38 = vld [vmem:[#allocation3 + $0x30] ss:$8 sps:$4 sm:$0xff]  }
 0x971   : > { %3640 = vmatprep.mubr.bf16.mxu1 %v4504_v51 }
 0x978   : > { %3641 = vmatmul.mubr.bf16.gmra.mxu1 %v4506_v23 }
 0x979   : > { %3648 = vmatprep.mubr.bf16.mxu1 %v4507_v44 }
 0x980   : > { %3649 = vmatmul.mubr.bf16.gmra.mxu1 %v4509_v7 }
 0x981   : > { %3656 = vmatprep.mubr.bf16.mxu1 %v4510_v34 }
 0x988   : > { %3657 = vmatmul.mubr.bf16.gmra.mxu1 %v4512_v38 }
 0xa30   : > { %v4212_v12 = vpop.f32.mrf.mxu1 }
 0xa32   : > { %v4213_v60 = vpop.f32.mrf.mxu1 }
 0xa33   : > { %v4214_v59 = vadd.f32 %v4213_v60, %v4212_v12 }
 0xa34   : > { %v4215_v45 = vpop.f32.mrf.mxu1 }
 0xa35   : > { %3665 = vst [vmem:[%s6988_s17] sm:$0xff] %v4214_v59 }
 0xa36   : > { %v4216_v1 = vpop.f32.mrf.mxu1 }
 0xa37   : > { %v4217_v49 = vadd.f32 %v4216_v1, %v4215_v45 }
 0xa38   : > { %v4218_v61 = vpop.f32.mrf.mxu1 }
 0xa39   : > { %3666 = vst [vmem:[%s6988_s17 + $0x8] sm:$0xff] %v4217_v49 }
 0xa3a   : > { %v4219_v10 = vpop.f32.mrf.mxu1 }
 0xa3b   : > { %v4220_v41 = vadd.f32 %v4219_v10, %v4218_v61 }
 0xa3c   : > { %v4221_v2 = vpop.f32.mrf.mxu1 }
 0xa3d   : > { %3667 = vst [vmem:[%s6988_s17 + $0x10] sm:$0xff] %v4220_v41 }
 0xa3e   : > { %v4222_v24 = vpop.f32.mrf.mxu1 }
 0xa3f   : > { %v4223_v36 = vadd.f32 %v4222_v24, %v4221_v2 }
 0xa40   : > { %v4224_v43 = vpop.f32.mrf.mxu1 }
 0xa41   : > { %3668 = vst [vmem:[%s6988_s17 + $0x18] sm:$0xff] %v4223_v36 }
 0xa42   : > { %v4225_v13 = vpop.f32.mrf.mxu1 }
 0xa43   : > { %v4226_v5 = vadd.f32 %v4225_v13, %v4224_v43 }
 0xa44   : > { %v4227_v42 = vpop.f32.mrf.mxu1 }
 0xa45   : > { %3669 = vst [vmem:[%s6988_s17 + $0x20] sm:$0xff] %v4226_v5 }
 0xa46   : > { %v4228_v18 = vpop.f32.mrf.mxu1 }
 0xa47   : > { %v4229_v29 = vadd.f32 %v4228_v18, %v4227_v42 }
 0xa48   : > { %v4230_v47 = vpop.f32.mrf.mxu1 }
 0xa49   : > { %3670 = vst [vmem:[%s6988_s17 + $0x28] sm:$0xff] %v4229_v29 }
 0xa4a   : > { %v4231_v31 = vpop.f32.mrf.mxu1 }
 0xa4b   : > { %v4232_v14 = vadd.f32 %v4231_v31, %v4230_v47 }
 0xa4c   : > { %v4233_v63 = vpop.f32.mrf.mxu1 }
 0xa4d   : > { %3671 = vst [vmem:[%s6988_s17 + $0x30] sm:$0xff] %v4232_v14 }
 0xa4e   : > { %v4234_v57 = vpop.f32.mrf.mxu1 }
 0xa4f   : > { %v4235_v53 = vadd.f32 %v4234_v57, %v4233_v63 }
 0xa51   : > { %3672 = vst [vmem:[%s6988_s17 + $0x38] sm:$0xff] %v4235_v53 }
 0xa52 PF: > { %s16_s23 = sadd.s32 1, %s4887_s23   ;;  %s7525_s21 = smov %s4883_s22 }
 0xa53   : > { %p13_p6 = scmp.ge.s32.totalorder %s16_s23, 4   ;;  %s7526_s22 = smov %s7528_s24 }
 0xa55   :  { %15 = sbr.rel (!%p13_p6) target bundleno = 2 (0x2), region = 111 }

</bundles_post_ra>
